<compile_context>
chip_gen: v7x
topology: tpu7x:2x2x1
jax: 0.10.0
libtpu: 0.0.40
codegen_flags: <defaults>
</compile_context>

<pallas_src>
import functools

import jax
import jax.numpy as jnp
from jax.experimental import pallas as pl
from jax.experimental.pallas import tpu as pltpu


def _round_up(x, m):
    return (x + m - 1) // m * m


def _fused_gat_kernel(feat_ref, el_ref, er_ref, adj_ref, res_ref, out_ref, *,
                      num_heads, out_feats, d_aug, negative_slope):
    """One grid step == one lane-dense tile of destination nodes, all heads.

    Transposed orientation (source nodes on sublanes, dst nodes on lanes):
      feat_ref: (H, d_aug, N_pad) bf16  per-head [feat_src^T ; ones ; 0-pad],
                                        resident across dst tiles
      el_ref  : (N_pad, H)        f32   per-source logits, resident
      er_ref  : (H, T)            f32   per-dst logits, this tile
      adj_ref : (N_pad, T)        int8  adj^T[src, dst] in {0,1}, this tile
      res_ref : (H*D, T)          f32   residual projection^T, this tile
      out_ref : (H*D, T)          f32   rst^T, this tile
    """
    H, D = num_heads, out_feats

    # Additive mask bias, built ONCE per dst tile and reused by every head:
    # adj==1 -> 0, adj==0 -> -1e30 (exp underflows masked entries to exactly 0).
    bias = (adj_ref[...].astype(jnp.float32) - 1.0) * 1e30        # (N, T)

    for h in range(H):
        el_col = el_ref[:, h:h + 1]                               # (N, 1) src
        er_row = er_ref[h:h + 1, :]                               # (1, T) dst
        e = el_col + er_row                                       # (N, T)
        e = jnp.maximum(e, negative_slope * e)                    # leaky_relu
        e = e + bias                                              # mask edges
        m = jnp.max(e, axis=0, keepdims=True)                     # (1, T)
        p = jnp.exp(e - m).astype(jnp.bfloat16)                   # masked -> 0

        # MXU: (d_aug, N) @ (N, T) -> (d_aug, T) with f32 accumulation.
        # Row D of the LHS is all-ones, so row D of the product is the softmax
        # denominator for free (idle MXU output rows when D < 256).
        acc = jnp.dot(feat_ref[h], p,
                      preferred_element_type=jnp.float32)         # (d_aug, T)
        agg = acc[:D, :]                                          # (D, T)
        inv = pl.reciprocal(acc[D:D + 1, :], approx=False)        # exact (1,T)
        out_ref[h * D:(h + 1) * D, :] = (
            agg * inv + res_ref[h * D:(h + 1) * D, :])


def _pick_tile(n, requested):
    """128-aligned dst tile whose (N_src x tile) f32 temporaries stay v7x-sized."""
    t = _round_up(max(min(requested, max(n, 1)), 1), 128)
    n_min = _round_up(max(n, 1), 128)
    while t > 128 and n_min * t * 16 > (40 << 20):
        t -= 128
    return t


def egl_gat_forward(feat, adj, w_fc, w_res, attn_l, attn_r,
                    num_heads, out_feats, negative_slope=0.2, tile_dst=256):
    """feat: (N, F); adj: (N, N) dense mask, adj[dst, src] != 0 for an edge;
    w_fc, w_res: (H*D, F) PyTorch Linear weights; attn_l/attn_r: (H, D).
    Returns (N, H, D) float32 (PyTorch convention)."""
    N, F = feat.shape
    H, D = num_heads, out_feats
    HD = H * D
    d_aug = _round_up(D + 1, 8)            # feat rows + ones row, sublane-aligned

    # ---- prologue: ONE fused bf16 projection, already transposed -----------
    # proj_t[o, n] = (fc | res_fc)(feat)[n, o];  bf16 MXU, f32 accumulation.
    w_all = jnp.concatenate([w_fc, w_res], axis=0)                # (2*HD, F)
    proj_t = jnp.dot(w_all.astype(jnp.bfloat16),
                     feat.T.astype(jnp.bfloat16),
                     preferred_element_type=jnp.float32)          # (2*HD, N)
    fs_t = proj_t[:HD].reshape(H, D, N)                           # feat_src^T
    res_t = proj_t[HD:]                                           # (HD, N)
    el = jnp.sum(fs_t * attn_l[:, :, None], axis=1)               # (H, N) src
    er = jnp.sum(fs_t * attn_r[:, :, None], axis=1)               # (H, N) dst

    # ---- pad node axis to a multiple of the 128-aligned dst tile -----------
    tile = _pick_tile(N, tile_dst)
    n_pad = _round_up(N, tile)
    pad = n_pad - N
    adj_t = (adj.T != 0)                                          # adj^T[src,dst]
    if pad:
        fs_t = jnp.pad(fs_t, ((0, 0), (0, 0), (0, pad)))
        res_t = jnp.pad(res_t, ((0, 0), (0, pad)))
        el = jnp.pad(el, ((0, 0), (0, pad)))
        er = jnp.pad(er, ((0, 0), (0, pad)))
        adj_t = jnp.pad(adj_t, ((0, pad), (0, pad)))

    # Per-head MXU LHS: rows [0:D] = feat_src^T, row D = ones (denominator
    # fold), remaining rows = zeros.  Padded sources are masked so the ones
    # row over them never contributes to the denominator.
    feat_aug = jnp.zeros((H, d_aug, n_pad), jnp.float32)
    feat_aug = feat_aug.at[:, :D, :].set(fs_t)
    feat_aug = feat_aug.at[:, D, :].set(1.0)
    feat_aug = feat_aug.astype(jnp.bfloat16)                      # MXU operand

    el_src = el.T                                                 # (n_pad, H)
    adj_i8 = adj_t.astype(jnp.int8)                               # 1 B / entry

    # ---- VMEM budget (capped at 64 MiB so the config also fits v7x) --------
    resident = H * d_aug * n_pad * 2 + n_pad * 128 * 4            # feat_aug + el
    per_step = n_pad * tile + 8 * tile * 4 + 2 * HD * tile * 4    # adj + er + res/out
    temps = 6 * n_pad * tile * 4                                  # e / p / bias
    vmem_limit = int(min(max(2 * resident + 2 * per_step + temps + (8 << 20),
                             32 << 20), 64 << 20))

    kernel = functools.partial(_fused_gat_kernel, num_heads=H, out_feats=D,
                               d_aug=d_aug, negative_slope=negative_slope)
    out_t = pl.pallas_call(
        kernel,
        out_shape=jax.ShapeDtypeStruct((HD, n_pad), jnp.float32),
        grid=(n_pad // tile,),
        in_specs=[
            pl.BlockSpec((H, d_aug, n_pad), lambda i: (0, 0, 0)),  # resident
            pl.BlockSpec((n_pad, H), lambda i: (0, 0)),            # resident
            pl.BlockSpec((H, tile), lambda i: (0, i)),             # er tile
            pl.BlockSpec((n_pad, tile), lambda i: (0, i)),         # adj tile
            pl.BlockSpec((HD, tile), lambda i: (0, i)),            # res tile
        ],
        out_specs=pl.BlockSpec((HD, tile), lambda i: (0, i)),
        compiler_params=pltpu.CompilerParams(
            dimension_semantics=("parallel",),
            vmem_limit_bytes=vmem_limit),
    )(feat_aug, el_src, er, adj_i8, res_t)

    # (HD, N) -> (N, H, D): cheap wrapper-side transpose of the final result.
    return out_t[:, :N].reshape(H, D, N).transpose(2, 0, 1)


def egl_gat_reference(feat, adj, w_fc, w_res, attn_l, attn_r, H, D, slope):
    """Pure-JAX f32 reference for correctness checking."""
    N = feat.shape[0]
    feat_src = (feat @ w_fc.T).reshape(N, H, D)
    el = jnp.sum(feat_src * attn_l[None], axis=-1)               # (N, H)
    er = jnp.sum(feat_src * attn_r[None], axis=-1)               # (N, H)
    e = er[:, None, :] + el[None, :, :]                          # (dst, src, H)
    e = jnp.where(e > 0, e, slope * e)
    mask = (adj > 0)[:, :, None]
    e = jnp.where(mask, e, -1e30)
    m = jnp.max(e, axis=1, keepdims=True)
    p = jnp.where(mask, jnp.exp(e - m), 0.0)
    alpha = p / jnp.sum(p, axis=1, keepdims=True)
    rst = jnp.einsum('dsh,shk->dhk', alpha, feat_src)
    res = (feat @ w_res.T).reshape(N, H, D)
    return rst + res


if __name__ == "__main__":
    N, F, H, D = 256, 16, 4, 8          # nodes, in_feats, num_heads, out_feats
    slope = 0.2
    gain = 2.0 ** 0.5                   # nn.init.calculate_gain('relu')

    key = jax.random.PRNGKey(0)
    k = jax.random.split(key, 6)

    feat = jax.random.normal(k[0], (N, F), jnp.float32)

    # synthetic graph: random sparse edges + self-loops, adj[dst, src]
    adj = (jax.random.uniform(k[1], (N, N)) < 0.05).astype(jnp.float32)
    adj = jnp.maximum(adj, jnp.eye(N, dtype=jnp.float32))

    # xavier_normal_ with gain=sqrt(2), deterministic
    std_fc = gain * (2.0 / (F + H * D)) ** 0.5
    std_attn = gain * (2.0 / (H + D)) ** 0.5
    w_fc = jax.random.normal(k[2], (H * D, F), jnp.float32) * std_fc
    w_res = jax.random.normal(k[3], (H * D, F), jnp.float32) * std_fc
    attn_l = jax.random.normal(k[4], (H, D), jnp.float32) * std_attn
    attn_r = jax.random.normal(k[5], (H, D), jnp.float32) * std_attn

    # tile_dst=128 -> 2 dst tiles, exercises the tiled (parallel) grid path.
    out = egl_gat_forward(feat, adj, w_fc, w_res, attn_l, attn_r, H, D, slope,
                          tile_dst=128)
    out = jax.block_until_ready(out)

    ref = egl_gat_reference(feat, adj, w_fc, w_res, attn_l, attn_r, H, D, slope)
    assert out.shape == (N, H, D), out.shape
    # bf16 MXU operands in both the fused prologue projection and the in-kernel
    # aggregation (f32 accumulation, exact reciprocal); typical max error is a
    # few 1e-3, tolerance leaves headroom for tail cases.
    err = float(jnp.max(jnp.abs(out - ref)))
    assert jnp.allclose(out, ref, atol=4e-2, rtol=4e-2), err

    print("KERNEL_OK")
</pallas_src>

<mosaic_0001>
module attributes {stable_mosaic.version = 11 : i64} {
  func.func @_fused_gat_kernel(%arg0: i32, %arg1: memref<4x16x256xbf16, #tpu.memory_space<vmem>>, %arg2: memref<256x4xf32, #tpu.memory_space<vmem>>, %arg3: memref<4x128xf32, #tpu.memory_space<vmem>>, %arg4: memref<256x128xi8, #tpu.memory_space<vmem>>, %arg5: memref<32x128xf32, #tpu.memory_space<vmem>>, %arg6: memref<32x128xf32, #tpu.memory_space<vmem>>) attributes {dimension_semantics = [#tpu.dimension_semantics<parallel>], iteration_bounds = array<i64: 2>, scalar_prefetch = 0 : i64, scratch_operands = 0 : i64, tpu.core_type = #tpu.core_type<tc>, window_params = [{pipeline_mode = #tpu.pipeline_mode<synchronous>, transform_indices = @transform_0, window_bounds = array<i64: 4, 16, 256>}, {pipeline_mode = #tpu.pipeline_mode<synchronous>, transform_indices = @transform_1, window_bounds = array<i64: 256, 4>}, {transform_indices = @transform_2, window_bounds = array<i64: 4, 128>}, {transform_indices = @transform_3, window_bounds = array<i64: 256, 128>}, {transform_indices = @transform_4, window_bounds = array<i64: 32, 128>}, {transform_indices = @transform_5, window_bounds = array<i64: 32, 128>}]} {
    %c0 = arith.constant 0 : index
    %c0_0 = arith.constant 0 : index
    %0 = vector.load %arg4[%c0, %c0_0] : memref<256x128xi8, #tpu.memory_space<vmem>>, vector<256x128xi8>
    %1 = arith.sitofp %0 : vector<256x128xi8> to vector<256x128xf32>
    %cst = arith.constant 1.000000e+00 : f32
    %2 = vector.broadcast %cst : f32 to vector<256x128xf32>
    %3 = arith.subf %1, %2 : vector<256x128xf32>
    %cst_1 = arith.constant 1.000000e+30 : f32
    %4 = vector.broadcast %cst_1 : f32 to vector<256x128xf32>
    %5 = arith.mulf %3, %4 : vector<256x128xf32>
    %c0_2 = arith.constant 0 : index
    %c0_3 = arith.constant 0 : index
    %6 = vector.load %arg2[%c0_2, %c0_3] : memref<256x4xf32, #tpu.memory_space<vmem>>, vector<256x1xf32>
    %c0_4 = arith.constant 0 : index
    %c0_5 = arith.constant 0 : index
    %7 = vector.load %arg3[%c0_4, %c0_5] : memref<4x128xf32, #tpu.memory_space<vmem>>, vector<1x128xf32>
    %8 = vector.broadcast %6 : vector<256x1xf32> to vector<256x128xf32>
    %9 = vector.broadcast %7 : vector<1x128xf32> to vector<256x128xf32>
    %10 = arith.addf %8, %9 : vector<256x128xf32>
    %cst_6 = arith.constant 2.000000e-01 : f32
    %11 = vector.broadcast %cst_6 : f32 to vector<256x128xf32>
    %12 = arith.mulf %11, %10 : vector<256x128xf32>
    %13 = arith.maximumf %10, %12 : vector<256x128xf32>
    %14 = arith.addf %13, %5 : vector<256x128xf32>
    %cst_7 = arith.constant dense<0xFF800000> : vector<128xf32>
    %15 = vector.multi_reduction <maximumf>, %14, %cst_7 [0] : vector<256x128xf32> to vector<128xf32>
    %16 = vector.shape_cast %15 : vector<128xf32> to vector<1x128xf32>
    %17 = vector.broadcast %16 : vector<1x128xf32> to vector<256x128xf32>
    %18 = arith.subf %14, %17 : vector<256x128xf32>
    %19 = math.exp %18 : vector<256x128xf32>
    %20 = arith.truncf %19 : vector<256x128xf32> to vector<256x128xbf16>
    %c0_8 = arith.constant 0 : index
    %c0_9 = arith.constant 0 : index
    %c0_10 = arith.constant 0 : index
    %21 = vector.load %arg1[%c0_8, %c0_9, %c0_10] : memref<4x16x256xbf16, #tpu.memory_space<vmem>>, vector<1x16x256xbf16>
    %22 = vector.shape_cast %21 : vector<1x16x256xbf16> to vector<16x256xbf16>
    %cst_11 = arith.constant dense<0.000000e+00> : vector<16x128xf32>
    %23 = tpu.matmul %22, %20, %cst_11 {dimension_numbers = #tpu.dot_dimension_numbers<[1], [0], [0], [1], [0, 0, 1, 1], [], []>} : vector<16x256xbf16>, vector<256x128xbf16>, vector<16x128xf32> -> vector<16x128xf32>
    %24 = vector.extract_strided_slice %23 {offsets = [0, 0], sizes = [8, 128], strides = [1, 1]} : vector<16x128xf32> to vector<8x128xf32>
    %25 = vector.extract_strided_slice %23 {offsets = [8, 0], sizes = [1, 128], strides = [1, 1]} : vector<16x128xf32> to vector<1x128xf32>
    %26 = tpu.reciprocal %25 : vector<1x128xf32> -> vector<1x128xf32>
    %27 = vector.broadcast %26 : vector<1x128xf32> to vector<8x128xf32>
    %28 = arith.mulf %24, %27 : vector<8x128xf32>
    %c0_12 = arith.constant 0 : index
    %c0_13 = arith.constant 0 : index
    %29 = vector.load %arg5[%c0_12, %c0_13] : memref<32x128xf32, #tpu.memory_space<vmem>>, vector<8x128xf32>
    %30 = arith.addf %28, %29 : vector<8x128xf32>
    %c0_14 = arith.constant 0 : index
    %c0_15 = arith.constant 0 : index
    %31 = vector.load %arg6[%c0_14, %c0_15] : memref<32x128xf32, #tpu.memory_space<vmem>>, vector<8x128xf32>
    tpu.vector_store %arg6[%c0_14, %c0_15], %30 {strides = array<i32>} : memref<32x128xf32, #tpu.memory_space<vmem>>, vector<8x128xf32>,
    %c0_16 = arith.constant 0 : index
    %c1 = arith.constant 1 : index
    %32 = vector.load %arg2[%c0_16, %c1] : memref<256x4xf32, #tpu.memory_space<vmem>>, vector<256x1xf32>
    %c1_17 = arith.constant 1 : index
    %c0_18 = arith.constant 0 : index
    %33 = vector.load %arg3[%c1_17, %c0_18] : memref<4x128xf32, #tpu.memory_space<vmem>>, vector<1x128xf32>
    %34 = vector.broadcast %32 : vector<256x1xf32> to vector<256x128xf32>
    %35 = vector.broadcast %33 : vector<1x128xf32> to vector<256x128xf32>
    %36 = arith.addf %34, %35 : vector<256x128xf32>
    %cst_19 = arith.constant 2.000000e-01 : f32
    %37 = vector.broadcast %cst_19 : f32 to vector<256x128xf32>
    %38 = arith.mulf %37, %36 : vector<256x128xf32>
    %39 = arith.maximumf %36, %38 : vector<256x128xf32>
    %40 = arith.addf %39, %5 : vector<256x128xf32>
    %cst_20 = arith.constant dense<0xFF800000> : vector<128xf32>
    %41 = vector.multi_reduction <maximumf>, %40, %cst_20 [0] : vector<256x128xf32> to vector<128xf32>
    %42 = vector.shape_cast %41 : vector<128xf32> to vector<1x128xf32>
    %43 = vector.broadcast %42 : vector<1x128xf32> to vector<256x128xf32>
    %44 = arith.subf %40, %43 : vector<256x128xf32>
    %45 = math.exp %44 : vector<256x128xf32>
    %46 = arith.truncf %45 : vector<256x128xf32> to vector<256x128xbf16>
    %c1_21 = arith.constant 1 : index
    %c0_22 = arith.constant 0 : index
    %c0_23 = arith.constant 0 : index
    %47 = vector.load %arg1[%c1_21, %c0_22, %c0_23] : memref<4x16x256xbf16, #tpu.memory_space<vmem>>, vector<1x16x256xbf16>
    %48 = vector.shape_cast %47 : vector<1x16x256xbf16> to vector<16x256xbf16>
    %cst_24 = arith.constant dense<0.000000e+00> : vector<16x128xf32>
    %49 = tpu.matmul %48, %46, %cst_24 {dimension_numbers = #tpu.dot_dimension_numbers<[1], [0], [0], [1], [0, 0, 1, 1], [], []>} : vector<16x256xbf16>, vector<256x128xbf16>, vector<16x128xf32> -> vector<16x128xf32>
    %50 = vector.extract_strided_slice %49 {offsets = [0, 0], sizes = [8, 128], strides = [1, 1]} : vector<16x128xf32> to vector<8x128xf32>
    %51 = vector.extract_strided_slice %49 {offsets = [8, 0], sizes = [1, 128], strides = [1, 1]} : vector<16x128xf32> to vector<1x128xf32>
    %52 = tpu.reciprocal %51 : vector<1x128xf32> -> vector<1x128xf32>
    %53 = vector.broadcast %52 : vector<1x128xf32> to vector<8x128xf32>
    %54 = arith.mulf %50, %53 : vector<8x128xf32>
    %c8 = arith.constant 8 : index
    %c0_25 = arith.constant 0 : index
    %55 = vector.load %arg5[%c8, %c0_25] : memref<32x128xf32, #tpu.memory_space<vmem>>, vector<8x128xf32>
    %56 = arith.addf %54, %55 : vector<8x128xf32>
    %c8_26 = arith.constant 8 : index
    %c0_27 = arith.constant 0 : index
    %57 = vector.load %arg6[%c8_26, %c0_27] : memref<32x128xf32, #tpu.memory_space<vmem>>, vector<8x128xf32>
    tpu.vector_store %arg6[%c8_26, %c0_27], %56 {strides = array<i32>} : memref<32x128xf32, #tpu.memory_space<vmem>>, vector<8x128xf32>,
    %c0_28 = arith.constant 0 : index
    %c2 = arith.constant 2 : index
    %58 = vector.load %arg2[%c0_28, %c2] : memref<256x4xf32, #tpu.memory_space<vmem>>, vector<256x1xf32>
    %c2_29 = arith.constant 2 : index
    %c0_30 = arith.constant 0 : index
    %59 = vector.load %arg3[%c2_29, %c0_30] : memref<4x128xf32, #tpu.memory_space<vmem>>, vector<1x128xf32>
    %60 = vector.broadcast %58 : vector<256x1xf32> to vector<256x128xf32>
    %61 = vector.broadcast %59 : vector<1x128xf32> to vector<256x128xf32>
    %62 = arith.addf %60, %61 : vector<256x128xf32>
    %cst_31 = arith.constant 2.000000e-01 : f32
    %63 = vector.broadcast %cst_31 : f32 to vector<256x128xf32>
    %64 = arith.mulf %63, %62 : vector<256x128xf32>
    %65 = arith.maximumf %62, %64 : vector<256x128xf32>
    %66 = arith.addf %65, %5 : vector<256x128xf32>
    %cst_32 = arith.constant dense<0xFF800000> : vector<128xf32>
    %67 = vector.multi_reduction <maximumf>, %66, %cst_32 [0] : vector<256x128xf32> to vector<128xf32>
    %68 = vector.shape_cast %67 : vector<128xf32> to vector<1x128xf32>
    %69 = vector.broadcast %68 : vector<1x128xf32> to vector<256x128xf32>
    %70 = arith.subf %66, %69 : vector<256x128xf32>
    %71 = math.exp %70 : vector<256x128xf32>
    %72 = arith.truncf %71 : vector<256x128xf32> to vector<256x128xbf16>
    %c2_33 = arith.constant 2 : index
    %c0_34 = arith.constant 0 : index
    %c0_35 = arith.constant 0 : index
    %73 = vector.load %arg1[%c2_33, %c0_34, %c0_35] : memref<4x16x256xbf16, #tpu.memory_space<vmem>>, vector<1x16x256xbf16>
    %74 = vector.shape_cast %73 : vector<1x16x256xbf16> to vector<16x256xbf16>
    %cst_36 = arith.constant dense<0.000000e+00> : vector<16x128xf32>
    %75 = tpu.matmul %74, %72, %cst_36 {dimension_numbers = #tpu.dot_dimension_numbers<[1], [0], [0], [1], [0, 0, 1, 1], [], []>} : vector<16x256xbf16>, vector<256x128xbf16>, vector<16x128xf32> -> vector<16x128xf32>
    %76 = vector.extract_strided_slice %75 {offsets = [0, 0], sizes = [8, 128], strides = [1, 1]} : vector<16x128xf32> to vector<8x128xf32>
    %77 = vector.extract_strided_slice %75 {offsets = [8, 0], sizes = [1, 128], strides = [1, 1]} : vector<16x128xf32> to vector<1x128xf32>
    %78 = tpu.reciprocal %77 : vector<1x128xf32> -> vector<1x128xf32>
    %79 = vector.broadcast %78 : vector<1x128xf32> to vector<8x128xf32>
    %80 = arith.mulf %76, %79 : vector<8x128xf32>
    %c16 = arith.constant 16 : index
    %c0_37 = arith.constant 0 : index
    %81 = vector.load %arg5[%c16, %c0_37] : memref<32x128xf32, #tpu.memory_space<vmem>>, vector<8x128xf32>
    %82 = arith.addf %80, %81 : vector<8x128xf32>
    %c16_38 = arith.constant 16 : index
    %c0_39 = arith.constant 0 : index
    %83 = vector.load %arg6[%c16_38, %c0_39] : memref<32x128xf32, #tpu.memory_space<vmem>>, vector<8x128xf32>
    tpu.vector_store %arg6[%c16_38, %c0_39], %82 {strides = array<i32>} : memref<32x128xf32, #tpu.memory_space<vmem>>, vector<8x128xf32>,
    %c0_40 = arith.constant 0 : index
    %c3 = arith.constant 3 : index
    %84 = vector.load %arg2[%c0_40, %c3] : memref<256x4xf32, #tpu.memory_space<vmem>>, vector<256x1xf32>
    %c3_41 = arith.constant 3 : index
    %c0_42 = arith.constant 0 : index
    %85 = vector.load %arg3[%c3_41, %c0_42] : memref<4x128xf32, #tpu.memory_space<vmem>>, vector<1x128xf32>
    %86 = vector.broadcast %84 : vector<256x1xf32> to vector<256x128xf32>
    %87 = vector.broadcast %85 : vector<1x128xf32> to vector<256x128xf32>
    %88 = arith.addf %86, %87 : vector<256x128xf32>
    %cst_43 = arith.constant 2.000000e-01 : f32
    %89 = vector.broadcast %cst_43 : f32 to vector<256x128xf32>
    %90 = arith.mulf %89, %88 : vector<256x128xf32>
    %91 = arith.maximumf %88, %90 : vector<256x128xf32>
    %92 = arith.addf %91, %5 : vector<256x128xf32>
    %cst_44 = arith.constant dense<0xFF800000> : vector<128xf32>
    %93 = vector.multi_reduction <maximumf>, %92, %cst_44 [0] : vector<256x128xf32> to vector<128xf32>
    %94 = vector.shape_cast %93 : vector<128xf32> to vector<1x128xf32>
    %95 = vector.broadcast %94 : vector<1x128xf32> to vector<256x128xf32>
    %96 = arith.subf %92, %95 : vector<256x128xf32>
    %97 = math.exp %96 : vector<256x128xf32>
    %98 = arith.truncf %97 : vector<256x128xf32> to vector<256x128xbf16>
    %c3_45 = arith.constant 3 : index
    %c0_46 = arith.constant 0 : index
    %c0_47 = arith.constant 0 : index
    %99 = vector.load %arg1[%c3_45, %c0_46, %c0_47] : memref<4x16x256xbf16, #tpu.memory_space<vmem>>, vector<1x16x256xbf16>
    %100 = vector.shape_cast %99 : vector<1x16x256xbf16> to vector<16x256xbf16>
    %cst_48 = arith.constant dense<0.000000e+00> : vector<16x128xf32>
    %101 = tpu.matmul %100, %98, %cst_48 {dimension_numbers = #tpu.dot_dimension_numbers<[1], [0], [0], [1], [0, 0, 1, 1], [], []>} : vector<16x256xbf16>, vector<256x128xbf16>, vector<16x128xf32> -> vector<16x128xf32>
    %102 = vector.extract_strided_slice %101 {offsets = [0, 0], sizes = [8, 128], strides = [1, 1]} : vector<16x128xf32> to vector<8x128xf32>
    %103 = vector.extract_strided_slice %101 {offsets = [8, 0], sizes = [1, 128], strides = [1, 1]} : vector<16x128xf32> to vector<1x128xf32>
    %104 = tpu.reciprocal %103 : vector<1x128xf32> -> vector<1x128xf32>
    %105 = vector.broadcast %104 : vector<1x128xf32> to vector<8x128xf32>
    %106 = arith.mulf %102, %105 : vector<8x128xf32>
    %c24 = arith.constant 24 : index
    %c0_49 = arith.constant 0 : index
    %107 = vector.load %arg5[%c24, %c0_49] : memref<32x128xf32, #tpu.memory_space<vmem>>, vector<8x128xf32>
    %108 = arith.addf %106, %107 : vector<8x128xf32>
    %c24_50 = arith.constant 24 : index
    %c0_51 = arith.constant 0 : index
    %109 = vector.load %arg6[%c24_50, %c0_51] : memref<32x128xf32, #tpu.memory_space<vmem>>, vector<8x128xf32>
    tpu.vector_store %arg6[%c24_50, %c0_51], %108 {strides = array<i32>} : memref<32x128xf32, #tpu.memory_space<vmem>>, vector<8x128xf32>,
    return
  }
  func.func @transform_0(%arg0: i32) -> (i32, i32, i32) {
    %c0_i32 = arith.constant 0 : i32
    %c0_i32_0 = arith.constant 0 : i32
    %c0_i32_1 = arith.constant 0 : i32
    %c0_i32_2 = arith.constant 0 : i32
    return %c0_i32, %c0_i32_0, %c0_i32_1 : i32, i32, i32
  }
  func.func @transform_1(%arg0: i32) -> (i32, i32) {
    %c0_i32 = arith.constant 0 : i32
    %c0_i32_0 = arith.constant 0 : i32
    %c0_i32_1 = arith.constant 0 : i32
    return %c0_i32, %c0_i32_0 : i32, i32
  }
  func.func @transform_2(%arg0: i32) -> (i32, i32) {
    %c0_i32 = arith.constant 0 : i32
    %c0_i32_0 = arith.constant 0 : i32
    return %c0_i32, %arg0 : i32, i32
  }
  func.func @transform_3(%arg0: i32) -> (i32, i32) {
    %c0_i32 = arith.constant 0 : i32
    %c0_i32_0 = arith.constant 0 : i32
    return %c0_i32, %arg0 : i32, i32
  }
  func.func @transform_4(%arg0: i32) -> (i32, i32) {
    %c0_i32 = arith.constant 0 : i32
    %c0_i32_0 = arith.constant 0 : i32
    return %c0_i32, %arg0 : i32, i32
  }
  func.func @transform_5(%arg0: i32) -> (i32, i32) {
    %c0_i32 = arith.constant 0 : i32
    %c0_i32_0 = arith.constant 0 : i32
    return %c0_i32, %arg0 : i32, i32
  }
}

</mosaic_0001>

<bundles_post_ra>
// kernel: tpu_custom_call.1
= control target key start
LH: loop header
LB: loop body
LE: loop exit
PB: predicated region body
PF: predicated region fallthrough
CT: control target
= control target key end

     0   :  { %10 = vsyncpa [#allocation5], 0  ;;  %s5713_s0 = inlined_call_operand.vmem [shape: bf16[4,16,256], index: 0, kind: input, shape index: {}]   ;;  %s5714_s1 = inlined_call_operand.vmem [shape: f32[256,4], index: 1, kind: input, shape index: {}]   ;;  %s5715_s2 = inlined_call_operand.vmem [shape: f32[4,256], index: 2, kind: input, shape index: {}]   ;;  %s5716_s3 = inlined_call_operand.vmem [shape: s8[256,256], index: 3, kind: input, shape index: {}]   ;;  %s5717_s4 = inlined_call_operand.vmem [shape: f32[32,256], index: 4, kind: input, shape index: {}]   ;;  %s5718_s5 = inlined_call_operand.hbm [shape: f32[32,256], index: 5, kind: output, shape index: {}]  }
   0x1   :  { %12 = vsyncpa [#allocation5 + $0x1], 0  ;;  %s3367_s18 = smov 0   ;;  %s3369_s19 = smov 0  }
   0x2   :  { %s3371_s20 = smov 0   ;;  %s3373_s21 = smov 0  }
   0x3 LB: > { %s3388_s22 = sadd.s32 4294967295, %s3327_s21   ;;  %s2763_s23 = sadd.s32 4294967294, %s3327_s21   ;;  %s3327_s21 = sphi %s3373_s21, %s6289_s21   ;;  %s3323_s20 = sphi %s3371_s20, %s6288_s20   ;;  %s3319_s19 = sphi %s3369_s19, %s6287_s19   ;;  %s3315_s18 = sphi %s3367_s18, %s6286_s18  }
   0x4   : > { %s3392_s24 = sadd.s32 1, %s3327_s21   ;;  %s93_s25 = sadd.s32 1, %s3323_s20 }
   0x5   : > { %s90_s26 = ssub.s32 %s3327_s21, %s3392_s24  ;;  %p100_p0 = scmp.ne.s32.totalorder %s3323_s20, %s3319_s19 }
   0x6   : > { %p91_p1 = scmp.eq.s32.totalorder %s90_s26, 0  ;;  %p101_p2 = scmp.eq.s32.totalorder %s3327_s21, 0 }
   0x7   : > { %p156_p3 = scmp.eq.s32.totalorder %s3388_s22, 1  ;;  %p161_p4 = scmp.ne.s32.totalorder %s3319_s19, %s3315_s18 }
   0x8   : > { %s3404_s27 = scalar_select %p91_p1, %s3323_s20, %s93_s25  }
   0x9   : > { %p3406_p5 = por %p101_p2, %p100_p0  ;;  %p3410_p6 = por %p156_p3, %p100_p0 }
   0xa   : > { %p162_p7 = scmp.eq.s32.totalorder %s2763_s23, 1  ;;  %p2765_p9 = scmp.ge.s32.totalorder %s3327_s21, 2 }
   0xc   : > { %p3414_p8 = por %p162_p7, %p161_p4  ;;  %184 = sbr.rel (%p2765_p9) target bundleno = 34 (0x22), region = 24 }
  0x13   : > { %194 = sbr.rel (!%p3406_p5) target bundleno = 27 (0x1b), region = 32  ;;  %s196_s6 = sand.u32 (%p3406_p5), 1, %s3323_s20  }
  0x14   : > { %s2767_s7 = sshll.u32 (%p3406_p5), %s3327_s21, 3  ;;  %s2766_s8 = sshll.u32 (%p3406_p5), %s196_s6, 6 }
  0x15   : > { %s200_s11 = scalar_lea.vmem (%p3406_p5), %s5716_s3, %s2767_s7  ;;  %s198_s12 = scalar_lea.vmem (%p3406_p5), [#allocation2], %s2766_s8 }
  0x16   : > { %v242_v0 = vld [vmem:[%s200_s11] sm:$0xff] (%p3406_p5)  ;;  %v244_v1 = vld [vmem:[%s200_s11 + $0x10] sm:$0xff] (%p3406_p5) }
  0x17   : > { %v246_v2 = vld [vmem:[%s200_s11 + $0x20] sm:$0xff] (%p3406_p5)  ;;  %243 = vst [vmem:[%s198_s12] sm:$0xff] (%p3406_p5), %v242_v0  ;;  %245 = vst [vmem:[%s198_s12 + $0x8] sm:$0xff] (%p3406_p5), %v244_v1  ;;  %v248_v3 = vld [vmem:[%s200_s11 + $0x30] sm:$0xff] (%p3406_p5) }
  0x18   : > { %247 = vst [vmem:[%s198_s12 + $0x10] sm:$0xff] (%p3406_p5), %v246_v2  ;;  %v250_v4 = vld [vmem:[%s200_s11 + $0x40] sm:$0xff] (%p3406_p5)  ;;  %v252_v5 = vld [vmem:[%s200_s11 + $0x50] sm:$0xff] (%p3406_p5)  ;;  %249 = vst [vmem:[%s198_s12 + $0x18] sm:$0xff] (%p3406_p5), %v248_v3 }
  0x19   : > { %251 = vst [vmem:[%s198_s12 + $0x20] sm:$0xff] (%p3406_p5), %v250_v4  ;;  %253 = vst [vmem:[%s198_s12 + $0x28] sm:$0xff] (%p3406_p5), %v252_v5  ;;  %v254_v6 = vld [vmem:[%s200_s11 + $0x60] sm:$0xff] (%p3406_p5)  ;;  %v256_v7 = vld [vmem:[%s200_s11 + $0x70] sm:$0xff] (%p3406_p5) }
  0x1a   : > { %255 = vst [vmem:[%s198_s12 + $0x30] sm:$0xff] %v254_v6  ;;  %257 = vst [vmem:[%s198_s12 + $0x38] sm:$0xff] %v256_v7 }
  0x1b PF: > { %263 = sbr.rel (!%p3406_p5) target bundleno = 34 (0x22), region = 70  ;;  %s265_s13 = sand.u32 (%p3406_p5), 1, %s3323_s20  }
  0x1c   : > { %s2769_s14 = sshll.u32 (%p3406_p5), %s3327_s21, 3  ;;  %s2768_s15 = sshll.u32 (%p3406_p5), %s265_s13, 5 }
  0x1d   : > { %s269_s23 = scalar_lea.vmem (%p3406_p5), %s5717_s4, %s2769_s14  ;;  %s267_s25 = scalar_lea.vmem (%p3406_p5), [#allocation3], %s2768_s15 }
  0x1e   : > { %v303_v8 = vld [vmem:[%s269_s23] sm:$0xff] (%p3406_p5)  ;;  %v305_v9 = vld [vmem:[%s269_s23 + $0x10] sm:$0xff] (%p3406_p5) }
  0x1f   : > { %v307_v10 = vld [vmem:[%s269_s23 + $0x20] sm:$0xff] (%p3406_p5)  ;;  %304 = vst [vmem:[%s267_s25] sm:$0xff] (%p3406_p5), %v303_v8  ;;  %306 = vst [vmem:[%s267_s25 + $0x8] sm:$0xff] (%p3406_p5), %v305_v9  ;;  %v309_v11 = vld [vmem:[%s269_s23 + $0x30] sm:$0xff] (%p3406_p5) }
  0x20   : > { %308 = vst [vmem:[%s267_s25 + $0x10] sm:$0xff] (%p3406_p5), %v307_v10  ;;  %310 = vst [vmem:[%s267_s25 + $0x18] sm:$0xff] (%p3406_p5), %v309_v11 }
  0x22 PF: > { %p2770_p10 = scmp.ge.s32.totalorder %s3327_s21, 1  ;;  %p315_p11 = scmp.lt.s32.totalorder %s3327_s21, 3 }
  0x24   : > { %p316_p12 = pnand %p2770_p10, %p315_p11 }
  0x26   : > { %319 = sbr.rel (%p316_p12) target bundleno = 843 (0x34b), region = 108 }
  0x2d   : > { %v3440_v12 = vld [vmem:[%s5714_s1 + $0x10] sm:$0xff]  ;;  %v3445_v13 = vld [vmem:[%s5714_s1] sm:$0xff]  ;;  %v3329_v14 = vmov 0   ;;  %v3454_v15 = vld [vmem:[%s5714_s1 + $0x18] sm:$0xff]  ;;  %v3330_v38 = vmov 1   ;;  %s3627_s14 = sand.u32 1, %s3319_s19  }
  0x2e   : > { %2964 = vset.pattern.permute.xlu1 %v3329_v14  ;;  %2963 = vset.pattern.permute.xlu0 %v3329_v14  ;;  %v3459_v16 = vld [vmem:[%s5714_s1 + $0x8] sm:$0xff]  ;;  %v3471_v18 = vld [vmem:[%s5714_s1 + $0x20] sm:$0xff]  ;;  %v3478_v19 = vld [vmem:[%s5714_s1 + $0x38] sm:$0xff]  ;;  %s2771_s17 = sshll.u32 %s3627_s14, 6  ;;  %v5719_v48 = vmov 2   ;;  %p364_p13 = scmp.lt.s32.totalorder %s3388_s22, 1 }
  0x2f   : > { %550 = vperm.xlu1 %2964, %v3440_v12   ;;  %540 = vperm.xlu0 %2963, %v3445_v13   ;;  %v3466_v17 = vld [vmem:[%s5714_s1 + $0x28] sm:$0xff]  ;;  %v3483_v20 = vld [vmem:[%s5714_s1 + $0x30] sm:$0xff]  ;;  %v3495_v22 = vld [vmem:[%s5714_s1 + $0x40] sm:$0xff]  ;;  %s3642_s26 = scalar_lea.vmem [#allocation2], %s2771_s17  ;;  %s2772_s13 = sshll.u32 %s3627_s14, 5 }
  0x30   : > { %v3490_v21 = vld [vmem:[%s5714_s1 + $0x48] sm:$0xff]  ;;  %v3502_v23 = vld [vmem:[%s5714_s1 + $0x58] sm:$0xff]  ;;  %v3507_v24 = vld [vmem:[%s5714_s1 + $0x50] sm:$0xff]  ;;  %s3676_s7 = scalar_select %p364_p13, %s3388_s22, 1 }
  0x31   : > { %5915 = vst [vmem:[#allocation7_spill] sm:$0xff] %v3490_v21  ;;  %5916 = vst [vmem:[#allocation8_spill] sm:$0xff] %v3502_v23  ;;  %v3514_v25 = vld [vmem:[%s5714_s1 + $0x68] sm:$0xff]  ;;  %v3519_v26 = vld [vmem:[%s5714_s1 + $0x60] sm:$0xff]  ;;  %s5650_s15 = scalar_lea.vmem [#allocation3], %s2772_s13  ;;  %s5653_s16 = scalar_lea.vmem [#allocation4], %s2772_s13 }
  0x32   : > { %5917 = vst [vmem:[#allocation9_spill] sm:$0xff] %v3507_v24  ;;  %5918 = vst [vmem:[#allocation10_spill] sm:$0xff] %v3519_v26  ;;  %v3526_v27 = vld [vmem:[%s5714_s1 + $0x78] sm:$0xff]  ;;  %v519_v28 = vld [vmem:[%s5714_s1 + $0x70] sm:$0xff]  ;;  %s2774_s8 = sshll.u32 %s3676_s7, 2  ;;  %s2826_s17 = sshll.u32 %s3388_s22, 7 }
  0x33   : > { %555 = vperm.xlu1 %2964, %v3454_v15   ;;  %545 = vperm.xlu0 %2963, %v3459_v16   ;;  %5919 = vst [vmem:[#allocation11_spill] sm:$0xff] %v3526_v27  ;;  %v3535_v29 = vld [vmem:[%s5714_s1 + $0x88] sm:$0xff]  ;;  %v3540_v30 = vld [vmem:[%s5714_s1 + $0x80] sm:$0xff]  ;;  %v3547_v31 = vld [vmem:[%s5714_s1 + $0x98] sm:$0xff]  ;;  %s3708_s11 = scalar_lea.vmem %s5715_s2, %s2774_s8  ;;  %s2665_s23 = sshll.u32 %s5653_s16, 4  ;;  %s5668_s23 = int_to_ptr.vmem [resolvable:$true] %s2665_s23 }
  0x34   : > { %5920 = vst [vmem:[#allocation12_spill] sm:$0xff] %v3540_v30  ;;  %5921 = vst [vmem:[#allocation13_spill] sm:$0xff] %v3547_v31  ;;  %v523_v32 = vld [vmem:[%s5714_s1 + $0x90] sm:$0xff]  ;;  %v3556_v33 = vld [vmem:[%s5714_s1 + $0xa8] sm:$0xff]  ;;  %s5666_s28 = scalar_lea.hbm %s5718_s5, %s2826_s17  ;;  %s2653_s6 = scalar_lea.sflag [#allocation5], %s3627_s14 }
  0x35   : > { %v3561_v34 = vld [vmem:[%s5714_s1 + $0xa0] sm:$0xff]  ;;  %v3568_v35 = vld [vmem:[%s5714_s1 + $0xb8] sm:$0xff]  ;;  %v527_v36 = vld [vmem:[%s5714_s1 + $0xb0] sm:$0xff]  ;;  %s3265_s7 = scalar_lea.vmem %s5668_s23, 512  ;;  %s3333_s22 = smov [#allocation4]  }
  0x36   : > { %5922 = vst [vmem:[#allocation14_spill] sm:$0xff] %v3561_v34  ;;  %5923 = vst [vmem:[#allocation15_spill] sm:$0xff] %v3568_v35  ;;  %v3577_v37 = vld [vmem:[%s5714_s1 + $0xc8] sm:$0xff]  ;;  %v3610_v40 = vld [vmem:[%s5714_s1 + $0xc0] sm:$0xff]  ;;  %p3266_p0 = scmp.ne.s32.totalorder %s5668_s23, %s3265_s7  ;;  %s3269_s8 = sshll.u32 %s3333_s22, 4  ;;  %s3270_s8 = int_to_ptr.vmem [resolvable:$false] %s3269_s8 }
  0x37   : > { %565 = vperm.xlu1 %2964, %v3466_v17   ;;  %560 = vperm.xlu0 %2963, %v3471_v18   ;;  %v3585_v39 = vld [vmem:[%s5714_s1 + $0xe8] sm:$0xff]  ;;  %5924 = vst [vmem:[#allocation16_spill] sm:$0xff] %v3610_v40  ;;  %v531_v41 = vld [vmem:[%s5714_s1 + $0xd0] sm:$0xff]  ;;  %v3622_v42 = vld [vmem:[%s5714_s1 + $0xd8] sm:$0xff]  ;;  %p3272_p3 = scmp.lt.s32.totalorder %s5668_s23, %s3270_s8 }
  0x38   : > { %5925 = vst [vmem:[#allocation17_spill] sm:$0xff] %v3622_v42  ;;  %v3634_v43 = vld [vmem:[%s5714_s1 + $0xe0] sm:$0xff]  ;;  %v1072_v44 = vld [vmem:[%s5714_s1 + $0xf8] sm:$0xff]  ;;  %v370_v47 = vld [vmem:[%s3642_s26 + $0x8] sm:$0xff]  ;;  %p3267_p1 = pnand %p3266_p0, %p3410_p6 }
  0x39   : > { %5926 = vst [vmem:[#allocation18_spill] sm:$0xff] %v3634_v43  ;;  %v369_v45 = vld [vmem:[%s3642_s26] sm:$0xff]  ;;  %v3652_v49 = vld [vmem:[%s5714_s1 + $0xf0] sm:$0xff]  ;;  %v382_v53 = vunpack.c.1.s8 %v370_v47  ;;  %v384_v54 = vunpack.c.3.s8 %v370_v47  ;;  %v383_v56 = vunpack.c.2.s8 %v370_v47  ;;  %v381_v4 = vunpack.c.0.s8 %v370_v47  ;;  %v372_v6 = vld [vmem:[%s3642_s26 + $0x18] sm:$0xff] }
  0x3a   : > { %v379_v46 = vunpack.c.2.s8 %v369_v45  ;;  %v377_v50 = vunpack.c.0.s8 %v369_v45  ;;  %v380_v51 = vunpack.c.3.s8 %v369_v45  ;;  %v378_v52 = vunpack.c.1.s8 %v369_v45  ;;  %v371_v57 = vld [vmem:[%s3642_s26 + $0x10] sm:$0xff]  ;;  %p3268_p2 = pneg %p3267_p1 }
  0x3b   : > { %575 = vperm.xlu1 %2964, %v3478_v19   ;;  %570 = vperm.xlu0 %2963, %v3483_v20   ;;  %v414_v63 = vcvt.s32.f32 %v382_v53  ;;  %v416_v0 = vcvt.s32.f32 %v384_v54  ;;  %v415_v2 = vcvt.s32.f32 %v383_v56  ;;  %v386_v3 = vunpack.c.1.s8 %v371_v57 }
  0x3c   : > { %v411_v55 = vcvt.s32.f32 %v379_v46  ;;  %v409_v58 = vcvt.s32.f32 %v377_v50  ;;  %v412_v59 = vcvt.s32.f32 %v380_v51  ;;  %v410_v62 = vcvt.s32.f32 %v378_v52  ;;  %v373_v46 = vld [vmem:[%s3642_s26 + $0x20] sm:$0xff] }
  0x3d   : > { %v388_v5 = vunpack.c.3.s8 %v371_v57  ;;  %v387_v9 = vunpack.c.2.s8 %v371_v57  ;;  %v390_v45 = vunpack.c.1.s8 %v372_v6  ;;  %v413_v47 = vcvt.s32.f32 %v381_v4  ;;  %v3693_v4 = vld [vmem:[%s3642_s26 + $0x28] sm:$0xff] }
  0x3e   : > { %v2777_v1 = vadd.f32 -1.0, %v411_v55  ;;  %v2775_v7 = vadd.f32 -1.0, %v409_v58  ;;  %v2778_v8 = vadd.f32 -1.0, %v412_v59  ;;  %v385_v50 = vunpack.c.0.s8 %v371_v57 }
  0x3f   : > { %585 = vperm.xlu1 %2964, %v3490_v21   ;;  %580 = vperm.xlu0 %2963, %v3495_v22   ;;  %v420_v51 = vcvt.s32.f32 %v388_v5  ;;  %v392_v52 = vunpack.c.3.s8 %v372_v6  ;;  %v391_v55 = vunpack.c.2.s8 %v372_v6  ;;  %v389_v57 = vunpack.c.0.s8 %v372_v6 }
  0x40   : > { %v3679_v53 = vmul.f32 1e+30, %v2775_v7  ;;  %v3681_v54 = vmul.f32 1e+30, %v2778_v8  ;;  %v2779_v5 = vadd.f32 -1.0, %v413_v47  ;;  %v417_v7 = vcvt.s32.f32 %v385_v50 }
  0x41   : > { %v2786_v8 = vadd.f32 -1.0, %v420_v51  ;;  %v393_v6 = vunpack.c.0.s8 %v373_v46  ;;  %v398_v47 = vunpack.c.1.s8 %v3693_v4  ;;  %v397_v50 = vunpack.c.0.s8 %v3693_v4 }
  0x42   : > { %5928 = vst [vmem:[#allocation20_spill] sm:$0xff] %v3679_v53  ;;  %5929 = vst [vmem:[#allocation21_spill] sm:$0xff] %v3681_v54  ;;  %v3713_v51 = vmul.f32 1e+30, %v2779_v5 }
  0x43   : > { %595 = vperm.xlu1 %2964, %v3502_v23   ;;  %590 = vperm.xlu0 %2963, %v3507_v24  }
  0x44   : > { %5935 = vst [vmem:[#allocation27_spill] sm:$0xff] %v3713_v51 }
  0x47   : > { %605 = vperm.xlu1 %2964, %v3514_v25   ;;  %600 = vperm.xlu0 %2963, %v3519_v26  }
  0x4b   : > { %615 = vperm.xlu1 %2964, %v3526_v27   ;;  %610 = vperm.xlu0 %2963, %v519_v28  }
  0x4f   : > { %625 = vperm.xlu1 %2964, %v3535_v29   ;;  %620 = vperm.xlu0 %2963, %v3540_v30  }
  0x53   : > { %635 = vperm.xlu1 %2964, %v3547_v31   ;;  %630 = vperm.xlu0 %2963, %v523_v32  }
  0x57   : > { %645 = vperm.xlu1 %2964, %v3556_v33   ;;  %640 = vperm.xlu0 %2963, %v3561_v34  }
  0x5b   : > { %655 = vperm.xlu1 %2964, %v3568_v35   ;;  %650 = vperm.xlu0 %2963, %v527_v36  }
  0x5f   : > { %2965 = vset.pattern.permute.xlu1 %v3330_v38  ;;  %665 = vperm.xlu0 %2963, %v3577_v37  }
  0x60   : > { %1081 = vperm.xlu1 %2965, %v3459_v16  }
  0x63   : > { %685 = vperm.xlu0 %2963, %v3585_v39  }
  0x64   : > { %1086 = vperm.xlu1 %2965, %v3440_v12  }
  0x67   : > { %2969 = vset.pattern.permute.xlu0 %v3330_v38 }
  0x68   : > { %1096 = vperm.xlu1 %2965, %v3471_v18   ;;  %1076 = vperm.xlu0 %2969, %v3445_v13  }
  0x6c   : > { %1106 = vperm.xlu1 %2965, %v3483_v20   ;;  %1091 = vperm.xlu0 %2969, %v3454_v15  }
  0x70   : > { %1116 = vperm.xlu1 %2965, %v3495_v22   ;;  %1101 = vperm.xlu0 %2969, %v3466_v17  }
  0x74   : > { %1126 = vperm.xlu1 %2965, %v3507_v24   ;;  %1111 = vperm.xlu0 %2969, %v3478_v19  }
  0x78   : > { %1136 = vperm.xlu1 %2965, %v3519_v26   ;;  %1121 = vperm.xlu0 %2969, %v3490_v21  }
  0x7c   : > { %1146 = vperm.xlu1 %2965, %v519_v28   ;;  %1131 = vperm.xlu0 %2969, %v3502_v23   ;;  %v2780_v28 = vadd.f32 -1.0, %v414_v63  ;;  %v394_v63 = vunpack.c.1.s8 %v373_v46 }
  0x7e   : > { %v3688_v59 = vmul.f32 1e+30, %v2780_v28  ;;  %v423_v28 = vcvt.s32.f32 %v391_v55 }
  0x80   : > { %1156 = vperm.xlu1 %2965, %v3540_v30   ;;  %1141 = vperm.xlu0 %2969, %v3514_v25   ;;  %5931 = vst [vmem:[#allocation23_spill] sm:$0xff] %v3688_v59 }
  0x84   : > { %1166 = vperm.xlu1 %2965, %v523_v32   ;;  %1151 = vperm.xlu0 %2969, %v3526_v27   ;;  %v2782_v32 = vadd.f32 -1.0, %v416_v0 }
  0x86   : > { %v3690_v0 = vmul.f32 1e+30, %v2782_v32 }
  0x88   : > { %1176 = vperm.xlu1 %2965, %v3561_v34   ;;  %1161 = vperm.xlu0 %2969, %v3535_v29   ;;  %5932 = vst [vmem:[#allocation24_spill] sm:$0xff] %v3690_v0 }
  0x8c   : > { %1186 = vperm.xlu1 %2965, %v527_v36   ;;  %1171 = vperm.xlu0 %2969, %v3547_v31   ;;  %v3669_v36 = vmul.f32 1e+30, %v2777_v1 }
  0x8e   : > { %5927 = vst [vmem:[#allocation19_spill] sm:$0xff] %v3669_v36 }
  0x90   : > { %2966 = vset.pattern.permute.xlu1 %v3329_v14  ;;  %1181 = vperm.xlu0 %2969, %v3556_v33  }
  0x91   : > { %660 = vperm.xlu1 %2966, %v3610_v40  }
  0x94   : > { %1191 = vperm.xlu0 %2969, %v3568_v35  }
  0x95   : > { %670 = vperm.xlu1 %2966, %v531_v41  }
  0x98   : > { %1196 = vperm.xlu0 %2969, %v3610_v40  }
  0x99   : > { %675 = vperm.xlu1 %2966, %v3622_v42  }
  0x9c   : > { %1211 = vperm.xlu0 %2969, %v3622_v42   ;;  %v426_v42 = vcvt.s32.f32 %v394_v63  ;;  %v2789_v63 = vadd.f32 -1.0, %v423_v28 }
  0x9d   : > { %2967 = vset.pattern.permute.xlu1 %v3330_v38 }
  0x9e   : > { %1201 = vperm.xlu1 %2967, %v3577_v37  }
  0xa0   : > { %1216 = vperm.xlu0 %2969, %v3634_v43  }
  0xa2   : > { %1206 = vperm.xlu1 %2967, %v531_v41   ;;  %v2781_v41 = vadd.f32 -1.0, %v415_v2  ;;  %v422_v2 = vcvt.s32.f32 %v390_v45 }
  0xa4   : > { %1231 = vperm.xlu0 %2969, %v1072_v44   ;;  %v3702_v45 = vmul.f32 1e+30, %v2781_v41  ;;  %v5936_v41 = vmov 2  }
  0xa6   : > { %2968 = vset.pattern.permute.xlu1 %v3329_v14  ;;  %v2776_v14 = vadd.f32 -1.0, %v410_v62  ;;  %5933 = vst [vmem:[#allocation25_spill] sm:$0xff] %v3702_v45 }
  0xa7   : > { %680 = vperm.xlu1 %2968, %v3634_v43   ;;  %v421_v43 = vcvt.s32.f32 %v389_v57 }
  0xa8   : > { %2972 = vset.pattern.permute.xlu0 %v5719_v48  ;;  %v3684_v56 = vmul.f32 1e+30, %v2776_v14  ;;  %v395_v48 = vunpack.c.2.s8 %v373_v46 }
  0xa9   : > { %1618 = vperm.xlu0 %2972, %v3459_v16   ;;  %v2787_v35 = vadd.f32 -1.0, %v421_v43  ;;  %v3742_v43 = vld [vmem:[%s3642_s26 + $0x30] sm:$0xff] }
  0xaa   : > { %5930 = vst [vmem:[#allocation22_spill] sm:$0xff] %v3684_v56  ;;  %5942 = vst [vmem:[#allocation33_spill] sm:$0xff] %v3742_v43  ;;  %v402_v24 = vunpack.c.1.s8 %v3742_v43  ;;  %v3788_v43 = vld [vmem:[%s3642_s26 + $0x38] sm:$0xff] }
  0xab   : > { %690 = vperm.xlu1 %2968, %v3652_v49   ;;  %5950 = vst [vmem:[#allocation41_spill] sm:$0xff] %v3788_v43 }
  0xad   : > { %1633 = vperm.xlu0 %2972, %v3471_v18  }
  0xae   : > { %v3658_v60 = vpop.permute.xlu1 %550  ;;  %v3660_v61 = vpop.permute.xlu0 %540 }
  0xaf   : > { %695 = vperm.xlu1 %2968, %v1072_v44   ;;  %v418_v44 = vcvt.s32.f32 %v386_v3  ;;  %v396_v3 = vunpack.c.3.s8 %v373_v46 }
  0xb1   : > { %1643 = vperm.xlu0 %2972, %v3483_v20   ;;  %v2784_v1 = vadd.f32 -1.0, %v418_v44  ;;  %v428_v46 = vcvt.s32.f32 %v396_v3  ;;  %v3723_v3 = vld [vmem:[%s3708_s11] ss:$0 sm:$0xff] }
  0xb2   : > { %v3665_v10 = vpop.permute.xlu1 %555  ;;  %v3667_v11 = vpop.permute.xlu0 %545 }
  0xb3   : > { %2970 = vset.pattern.permute.xlu1 %v3330_v38  ;;  %v419_v38 = vcvt.s32.f32 %v387_v9  ;;  %v424_v9 = vcvt.s32.f32 %v392_v52  ;;  %v2783_v52 = vadd.f32 -1.0, %v417_v7  ;;  %v2792_v7 = vadd.f32 -1.0, %v426_v42 }
  0xb4   : > { %1221 = vperm.xlu1 %2970, %v3585_v39   ;;  %v2794_v31 = vadd.f32 -1.0, %v428_v46  ;;  %v704_v42 = vadd.f32 %v3723_v3, %v3658_v60  ;;  %v399_v60 = vunpack.c.2.s8 %v3693_v4 }
  0xb5   : > { %1658 = vperm.xlu0 %2972, %v3490_v21   ;;  %v2785_v14 = vadd.f32 -1.0, %v419_v38  ;;  %v3716_v38 = vmul.f32 1e+30, %v2786_v8  ;;  %v2790_v55 = vadd.f32 -1.0, %v424_v9  ;;  %v430_v8 = vcvt.s32.f32 %v398_v47 }
  0xb6   : > { %v3686_v58 = vpop.permute.xlu1 %565  ;;  %v561_v62 = vpop.permute.xlu0 %560  ;;  %v400_v9 = vunpack.c.3.s8 %v3693_v4  ;;  %v3737_v28 = vmul.f32 1e+30, %v2783_v52  ;;  %v3748_v47 = vmul.f32 1e+30, %v2789_v63  ;;  %v3752_v52 = vmul.f32 1e+30, %v2792_v7 }
  0xb7   : > { %5937 = vst [vmem:[#allocation28_spill] sm:$0xff] %v3716_v38  ;;  %v3720_v57 = vmul.f32 1e+30, %v2785_v14  ;;  %v3732_v14 = vadd.f32 %v3723_v3, %v3660_v61  ;;  %v3754_v30 = vmul.f32 1e+30, %v2794_v31  ;;  %v3761_v63 = vadd.f32 %v3723_v3, %v3667_v11 }
  0xb8   : > { %1226 = vperm.xlu1 %2970, %v3652_v49   ;;  %v2788_v49 = vadd.f32 -1.0, %v422_v2  ;;  %v427_v2 = vcvt.s32.f32 %v395_v48  ;;  %v3735_v48 = vadd.f32 %v3723_v3, %v561_v62  ;;  %5940 = vst [vmem:[#allocation31_spill] sm:$0xff] %v3737_v28  ;;  %5943 = vst [vmem:[#allocation34_spill] sm:$0xff] %v3748_v47  ;;  %v432_v21 = vcvt.s32.f32 %v400_v9 }
  0xb9   : > { %1678 = vperm.xlu0 %2972, %v3514_v25   ;;  %v3710_v25 = vmul.f32 1e+30, %v2784_v1  ;;  %5938 = vst [vmem:[#allocation29_spill] sm:$0xff] %v3720_v57  ;;  %v425_v1 = vcvt.s32.f32 %v393_v6  ;;  %v3739_v6 = vmul.f32 1e+30, %v2790_v55  ;;  %5945 = vst [vmem:[#allocation36_spill] sm:$0xff] %v3752_v52  ;;  %v3769_v31 = vadd.f32 %v3723_v3, %v3686_v58 }
  0xba   : > { %v3698_v32 = vpop.permute.xlu1 %575  ;;  %v3700_v44 = vpop.permute.xlu0 %570  ;;  %v3728_v34 = vmul.f32 1e+30, %v2788_v49  ;;  %v2793_v49 = vadd.f32 -1.0, %v427_v2  ;;  %v2796_v55 = vadd.f32 -1.0, %v430_v8  ;;  %5946 = vst [vmem:[#allocation37_spill] sm:$0xff] %v3754_v30 }
  0xbb   : > { %5934 = vst [vmem:[#allocation26_spill] sm:$0xff] %v3710_v25  ;;  %5941 = vst [vmem:[#allocation32_spill] sm:$0xff] %v3739_v6  ;;  %v2791_v61 = vadd.f32 -1.0, %v425_v1  ;;  %v736_v2 = vmul.f32 0.2, %v704_v42  ;;  %v3779_v11 = vadd.f32 %v3723_v3, %v3698_v32  ;;  %v434_v32 = vcvt.s32.f32 %v402_v24 }
  0xbc   : > { %2971 = vset.pattern.permute.xlu1 %v5936_v41  ;;  %5939 = vst [vmem:[#allocation30_spill] sm:$0xff] %v3728_v34  ;;  %v3775_v7 = vmul.f32 1e+30, %v2793_v49  ;;  %v3785_v58 = vmul.f32 1e+30, %v2796_v55  ;;  %v431_v49 = vcvt.s32.f32 %v399_v60  ;;  %v406_v24 = vunpack.c.1.s8 %v3788_v43 }
  0xbd   : > { %1613 = vperm.xlu1 %2971, %v3445_v13   ;;  %1698 = vperm.xlu0 %2972, %v3535_v29   ;;  %v429_v29 = vcvt.s32.f32 %v397_v50  ;;  %v3750_v50 = vmul.f32 1e+30, %v2787_v35  ;;  %v738_v35 = vmul.f32 0.2, %v3735_v48  ;;  %v3773_v4 = vmul.f32 1e+30, %v2791_v61 }
  0xbe   : > { %v3725_v5 = vpop.permute.xlu1 %585  ;;  %v581_v40 = vpop.permute.xlu0 %580  ;;  %5948 = vst [vmem:[#allocation39_spill] sm:$0xff] %v3775_v7  ;;  %5949 = vst [vmem:[#allocation40_spill] sm:$0xff] %v3785_v58  ;;  %v768_v41 = vmax.f32 %v704_v42, %v736_v2  ;;  %v3818_v2 = vadd.f32 -1.0, %v431_v49 }
  0xbf   : > { %5944 = vst [vmem:[#allocation35_spill] sm:$0xff] %v3750_v50  ;;  %v2795_v27 = vadd.f32 -1.0, %v429_v29  ;;  %v3765_v1 = vadd.f32 %v3723_v3, %v581_v40  ;;  %5947 = vst [vmem:[#allocation38_spill] sm:$0xff] %v3773_v4  ;;  %v3783_v40 = vadd.f32 %v3723_v3, %v3700_v44  ;;  %v2798_v29 = vadd.f32 -1.0, %v432_v21 }
  0xc0   : > { %v735_v44 = vmul.f32 0.2, %v3761_v63  ;;  %v770_v23 = vmax.f32 %v3735_v48, %v738_v35  ;;  %v739_v21 = vmul.f32 0.2, %v3769_v31 }
  0xc1   : > { %1623 = vperm.xlu1 %2971, %v3440_v12   ;;  %1718 = vperm.xlu0 %2972, %v3556_v33   ;;  %v734_v33 = vmul.f32 0.2, %v3732_v14  ;;  %v3794_v61 = vmul.f32 1e+30, %v2795_v27  ;;  %v742_v55 = vmul.f32 0.2, %v3765_v1 }
  0xc2   : > { %v596_v46 = vpop.permute.xlu1 %595  ;;  %v591_v62 = vpop.permute.xlu0 %590  ;;  %v741_v27 = vmul.f32 0.2, %v3779_v11  ;;  %v3812_v60 = vmul.f32 1e+30, %v2798_v29  ;;  %v767_v43 = vmax.f32 %v3761_v63, %v735_v44 }
  0xc3   : > { %5951 = vst [vmem:[#allocation42_spill] sm:$0xff] %v3794_v61  ;;  %v766_v26 = vmax.f32 %v3732_v14, %v734_v33  ;;  %v3810_v14 = vadd.f32 %v3723_v3, %v596_v46  ;;  %v3816_v35 = vadd.f32 %v3723_v3, %v591_v62  ;;  %v3827_v46 = vadd.f32 %v770_v23, %v3713_v51 }
  0xc4   : > { %5952 = vst [vmem:[#allocation43_spill] sm:$0xff] %v3812_v60  ;;  %v774_v29 = vmax.f32 %v3765_v1, %v742_v55  ;;  %v3831_v60 = vadd.f32 %v768_v41, %v3669_v36  ;;  %v771_v62 = vmax.f32 %v3769_v31, %v739_v21  ;;  %v773_v63 = vmax.f32 %v3779_v11, %v741_v27 }
  0xc5   : > { %1628 = vperm.xlu1 %2971, %v3454_v15   ;;  %1738 = vperm.xlu0 %2972, %v3577_v37   ;;  %v3792_v37 = vadd.f32 %v3723_v3, %v3665_v10  ;;  %v740_v10 = vmul.f32 0.2, %v3783_v40  ;;  %5954 = vst [vmem:[#allocation45_spill] sm:$0xff] %v3827_v46  ;;  %v711_v1 = vadd.f32 %v3723_v3, %v3725_v5  ;;  %v745_v41 = vmul.f32 0.2, %v3810_v14 }
  0xc6   : > { %v606_v8 = vpop.permute.xlu1 %605  ;;  %v601_v9 = vpop.permute.xlu0 %600  ;;  %5955 = vst [vmem:[#allocation46_spill] sm:$0xff] %v3831_v60  ;;  %v744_v21 = vmul.f32 0.2, %v3816_v35  ;;  %v3850_v11 = vadd.f32 %v767_v43, %v3684_v56  ;;  %v3859_v27 = vadd.f32 %v771_v62, %v3688_v59  ;;  %v3865_v43 = vadd.f32 %v773_v63, %v3690_v0 }
  0xc7   : > { %v3802_v58 = vadd.f32 %v3723_v3, %v601_v9  ;;  %v737_v33 = vmul.f32 0.2, %v3792_v37  ;;  %v3823_v9 = vadd.f32 %v766_v26, %v3679_v53  ;;  %v3837_v26 = vcvt.s32.f32 %v406_v24 }
  0xc8   : > { %v772_v23 = vmax.f32 %v3783_v40, %v740_v10  ;;  %5956 = vst [vmem:[#allocation47_spill] sm:$0xff] %v3850_v11  ;;  %v3855_v40 = vadd.f32 %v774_v29, %v3737_v28  ;;  %5958 = vst [vmem:[#allocation49_spill] sm:$0xff] %v3859_v27  ;;  %v743_v29 = vmul.f32 0.2, %v711_v1 }
  0xc9   : > { %1638 = vperm.xlu1 %2971, %v3466_v17   ;;  %1758 = vperm.xlu0 %2972, %v3585_v39   ;;  %v3820_v39 = vadd.f32 -1.0, %v434_v32  ;;  %5953 = vst [vmem:[#allocation44_spill] sm:$0xff] %v3823_v9  ;;  %v746_v49 = vmul.f32 0.2, %v3802_v58  ;;  %v5740_v32 = vmov 3   ;;  %v769_v55 = vmax.f32 %v3792_v37, %v737_v33  ;;  %5960 = vst [vmem:[#allocation50_spill] sm:$0xff] %v3865_v43 }
  0xca   : > { %v616_v48 = vpop.permute.xlu1 %615  ;;  %v611_v42 = vpop.permute.xlu0 %610  ;;  %v830_v5 = vmax.f32 %v3823_v9, %v3827_v46  ;;  %5957 = vst [vmem:[#allocation48_spill] sm:$0xff] %v3855_v40  ;;  %v715_v37 = vadd.f32 %v3723_v3, %v606_v8  ;;  %v5959_v33 = vmov 3   ;;  %v777_v46 = vmax.f32 %v3810_v14, %v745_v41 }
  0xcb   : > { %v717_v24 = vadd.f32 %v3723_v3, %v616_v48  ;;  %v778_v10 = vmax.f32 %v3802_v58, %v746_v49  ;;  %v776_v58 = vmax.f32 %v3816_v35, %v744_v21  ;;  %v3877_v9 = vadd.f32 %v769_v55, %v3681_v54 }
  0xcc   : > { %v831_v35 = vmax.f32 %v3850_v11, %v3859_v27 }
  0xcd   : > { %1648 = vperm.xlu1 %2971, %v3478_v19   ;;  %2985 = vset.pattern.permute.xlu0 %v5740_v32  ;;  %v749_v62 = vmul.f32 0.2, %v717_v24  ;;  %5962 = vst [vmem:[#allocation52_spill] sm:$0xff] %v3877_v9  ;;  %v3882_v41 = vadd.f32 %v778_v10, %v3750_v50  ;;  %v833_v21 = vmax.f32 %v3877_v9, %v3865_v43 }
  0xce   : > { %v626_v44 = vpop.permute.xlu1 %625  ;;  %2150 = vperm.xlu0 %2985, %v3445_v13   ;;  %v621_v31 = vpop.permute.xlu0 %620  ;;  %v716_v13 = vadd.f32 %v3723_v3, %v611_v42 }
  0xcf   : > { %v718_v32 = vadd.f32 %v3723_v3, %v621_v31  ;;  %v3868_v31 = vadd.f32 %v772_v23, %v3702_v45  ;;  %v834_v23 = vmax.f32 %v830_v5, %v3855_v40  ;;  %v719_v14 = vadd.f32 %v3723_v3, %v626_v44  ;;  %5963 = vst [vmem:[#allocation53_spill] sm:$0xff] %v3882_v41 }
  0xd0   : > { %v748_v0 = vmul.f32 0.2, %v716_v13 }
  0xd1   : > { %v750_v48 = vmul.f32 0.2, %v718_v32  ;;  %2973 = vset.pattern.permute.xlu1 %v5959_v33  ;;  %5961 = vst [vmem:[#allocation51_spill] sm:$0xff] %v3868_v31  ;;  %v832_v10 = vmax.f32 %v3831_v60, %v3868_v31  ;;  %v751_v43 = vmul.f32 0.2, %v719_v14 }
  0xd2   : > { %2155 = vperm.xlu1 %2973, %v3459_v16   ;;  %v636_v42 = vpop.permute.xlu1 %635  ;;  %2165 = vperm.xlu0 %2985, %v3454_v15   ;;  %v631_v8 = vpop.permute.xlu0 %630  ;;  %v747_v16 = vmul.f32 0.2, %v715_v37  ;;  %v780_v27 = vmax.f32 %v716_v13, %v748_v0 }
  0xd3   : > { %v721_v49 = vadd.f32 %v3723_v3, %v636_v42  ;;  %v720_v63 = vadd.f32 %v3723_v3, %v631_v8  ;;  %v782_v15 = vmax.f32 %v718_v32, %v750_v48  ;;  %v775_v42 = vmax.f32 %v711_v1, %v743_v29 }
  0xd4   : > { %v3893_v32 = vadd.f32 %v777_v46, %v3716_v38  ;;  %v3896_v48 = vadd.f32 %v776_v58, %v3720_v57  ;;  %v781_v8 = vmax.f32 %v717_v24, %v749_v62  ;;  %v779_v29 = vmax.f32 %v715_v37, %v747_v16 }
  0xd5   : > { %v753_v59 = vmul.f32 0.2, %v721_v49  ;;  %v752_v55 = vmul.f32 0.2, %v720_v63  ;;  %v3902_v9 = vadd.f32 %v782_v15, %v3773_v4  ;;  %v3905_v46 = vadd.f32 %v775_v42, %v3710_v25 }
  0xd6   : > { %2160 = vperm.xlu1 %2973, %v3440_v12   ;;  %v646_v5 = vpop.permute.xlu1 %645  ;;  %2175 = vperm.xlu0 %2985, %v3466_v17   ;;  %v641_v44 = vpop.permute.xlu0 %640  ;;  %5964 = vst [vmem:[#allocation54_spill] sm:$0xff] %v3893_v32  ;;  %5965 = vst [vmem:[#allocation55_spill] sm:$0xff] %v3896_v48  ;;  %v838_v17 = vmax.f32 %v834_v23, %v3882_v41  ;;  %v837_v13 = vmax.f32 %v833_v21, %v3893_v32 }
  0xd7   : > { %v723_v1 = vadd.f32 %v3723_v3, %v646_v5  ;;  %v722_v12 = vadd.f32 %v3723_v3, %v641_v44  ;;  %5966 = vst [vmem:[#allocation56_spill] sm:$0xff] %v3902_v9  ;;  %v785_v31 = vmax.f32 %v721_v49, %v753_v59  ;;  %5967 = vst [vmem:[#allocation57_spill] sm:$0xff] %v3905_v46 }
  0xd8   : > { %v784_v60 = vmax.f32 %v720_v63, %v752_v55  ;;  %v3911_v37 = vadd.f32 %v781_v8, %v3739_v6  ;;  %v836_v49 = vmax.f32 %v832_v10, %v3896_v48  ;;  %v3917_v63 = vadd.f32 %v780_v27, %v3748_v47  ;;  %v6004_v48 = vld [vmem:[#allocation41_spill] sm:$0xff] }
  0xd9   : > { %v755_v58 = vmul.f32 0.2, %v723_v1  ;;  %v754_v11 = vmul.f32 0.2, %v722_v12  ;;  %v783_v23 = vmax.f32 %v719_v14, %v751_v43  ;;  %v3920_v16 = vadd.f32 %v779_v29, %v3728_v34  ;;  %v5976_v29 = vld [vmem:[#allocation43_spill] sm:$0xff] }
  0xda   : > { %2170 = vperm.xlu1 %2973, %v3471_v18   ;;  %v656_v0 = vpop.permute.xlu1 %655  ;;  %2185 = vperm.xlu0 %2985, %v3478_v19   ;;  %v651_v24 = vpop.permute.xlu0 %650  ;;  %5968 = vst [vmem:[#allocation58_spill] sm:$0xff] %v3911_v37  ;;  %5969 = vst [vmem:[#allocation59_spill] sm:$0xff] %v3917_v63  ;;  %v842_v19 = vmax.f32 %v838_v17, %v3902_v9  ;;  %v3924_v15 = vadd.f32 %v785_v31, %v3754_v30  ;;  %v3935_v27 = vmul.f32 1e+30, %v3820_v39 }
  0xdb   : > { %v725_v62 = vadd.f32 %v3723_v3, %v656_v0  ;;  %v724_v59 = vadd.f32 %v3723_v3, %v651_v24  ;;  %v786_v18 = vmax.f32 %v722_v12, %v754_v11  ;;  %5970 = vst [vmem:[#allocation60_spill] sm:$0xff] %v3920_v16  ;;  %v3927_v42 = vadd.f32 %v784_v60, %v3775_v7 }
  0xdc   : > { %5971 = vst [vmem:[#allocation61_spill] sm:$0xff] %v3924_v15  ;;  %v787_v55 = vmax.f32 %v723_v1, %v755_v58  ;;  %5974 = vst [vmem:[#allocation64_spill] sm:$0xff] %v3935_v27  ;;  %v841_v43 = vmax.f32 %v837_v13, %v3911_v37  ;;  %v835_v10 = vmax.f32 %v831_v35, %v3905_v46  ;;  %v2804_v1 = vadd.f32 -1.0, %v3837_v26  ;;  %v5978_v35 = vld [vmem:[#allocation40_spill] sm:$0xff]  ;;  %v1594_v37 = vld [vmem:[%s5714_s1 + $0x80] sm:$0xff] }
  0xdd   : > { %v757_v21 = vmul.f32 0.2, %v725_v62  ;;  %5972 = vst [vmem:[#allocation62_spill] sm:$0xff] %v3927_v42  ;;  %v3930_v5 = vadd.f32 %v786_v18, %v3794_v61  ;;  %v756_v14 = vmul.f32 0.2, %v724_v59  ;;  %v840_v8 = vmax.f32 %v836_v49, %v3917_v63  ;;  %v5982_v26 = vld [vmem:[#allocation8_spill] sm:$0xff] }
  0xde   : > { %2180 = vperm.xlu1 %2973, %v3483_v20   ;;  %2190 = vperm.xlu0 %2985, %v3495_v22   ;;  %v666_v11 = vpop.permute.xlu0 %665  ;;  %v3944_v20 = vadd.f32 %v783_v23, %v3752_v52  ;;  %v845_v39 = vmax.f32 %v841_v43, %v3924_v15  ;;  %v839_v0 = vmax.f32 %v835_v10, %v3920_v16  ;;  %v5981_v49 = vmov 2  }
  0xdf   : > { %5973 = vst [vmem:[#allocation63_spill] sm:$0xff] %v3930_v5  ;;  %v789_v31 = vmax.f32 %v725_v62, %v757_v21  ;;  %v727_v44 = vadd.f32 %v3723_v3, %v666_v11  ;;  %v3939_v60 = vpop.permute.xlu1 %1081  ;;  %v846_v12 = vmax.f32 %v842_v19, %v3930_v5  ;;  %v844_v24 = vmax.f32 %v840_v8, %v3927_v42  ;;  %v5985_v5 = vld [vmem:[#allocation10_spill] sm:$0xff] }
  0xe0   : > { %5975 = vst [vmem:[#allocation65_spill] sm:$0xff] %v3944_v20  ;;  %v3955_v13 = vadd.f32 %v787_v55, %v5978_v35  ;;  %v3958_v62 = vmul.f32 1e+30, %v3818_v2  ;;  %v788_v19 = vmax.f32 %v724_v59, %v756_v14  ;;  %v3967_v55 = vmul.f32 1e+30, %v2804_v1 }
  0xe1   : > { %v3950_v17 = vadd.f32 %v789_v31, %v5976_v29  ;;  %v759_v58 = vmul.f32 0.2, %v727_v44  ;;  %v843_v2 = vmax.f32 %v839_v0, %v3944_v20  ;;  %v848_v31 = vmax.f32 %v844_v24, %v846_v12  ;;  %v5989_v24 = vld [vmem:[#allocation11_spill] sm:$0xff] }
  0xe2   : > { %5979 = vst [vmem:[#allocation67_spill] sm:$0xff] %v3955_v13  ;;  %5980 = vst [vmem:[#allocation68_spill] sm:$0xff] %v3958_v62  ;;  %2974 = vset.pattern.permute.xlu1 %v5981_v49  ;;  %2205 = vperm.xlu0 %2985, %v5982_v26   ;;  %v686_v23 = vpop.permute.xlu0 %685  ;;  %v405_v46 = vunpack.c.0.s8 %v6004_v48 }
  0xe3   : > { %5977 = vst [vmem:[#allocation66_spill] sm:$0xff] %v3950_v17  ;;  %v849_v18 = vmax.f32 %v845_v39, %v3950_v17  ;;  %v791_v21 = vmax.f32 %v727_v44, %v759_v58  ;;  %v731_v11 = vadd.f32 %v3723_v3, %v686_v23  ;;  %1653 = vperm.xlu1 %2974, %v3495_v22   ;;  %v3965_v43 = vpop.permute.xlu1 %1086  ;;  %5983 = vst [vmem:[#allocation8_spill] sm:$0xff] %v3967_v55  ;;  %v5987_v39 = vld [vmem:[#allocation9_spill] sm:$0xff] }
  0xe4   : > { %v847_v59 = vmax.f32 %v843_v2, %v3955_v13  ;;  %v3976_v44 = vadd.f32 %v788_v19, %v3958_v62  ;;  %v4073_v13 = vld [vmem:[%s3708_s11 + $0x1] ss:$0 sm:$0xff]  ;;  %v437_v35 = vcvt.s32.f32 %v405_v46 }
  0xe5   : > { %v3971_v10 = vadd.f32 %v791_v21, %v3935_v27  ;;  %v763_v8 = vmul.f32 0.2, %v731_v11  ;;  %v850_v14 = vmax.f32 %v849_v18, %v848_v31 }
  0xe6   : > { %2210 = vperm.xlu0 %2985, %v5985_v5   ;;  %5986 = vst [vmem:[#allocation10_spill] sm:$0xff] %v3976_v44 }
  0xe7   : > { %5984 = vst [vmem:[#allocation69_spill] sm:$0xff] %v3971_v10  ;;  %v795_v22 = vmax.f32 %v731_v11, %v763_v8  ;;  %1663 = vperm.xlu1 %2974, %v5987_v39   ;;  %v3979_v1 = vpop.permute.xlu1 %1096  ;;  %v3981_v58 = vpop.permute.xlu0 %1076  ;;  %v851_v12 = vmax.f32 %v847_v59, %v3971_v10  ;;  %v852_v5 = vmax.f32 %v3976_v44, %v850_v14  ;;  %v5991_v11 = vld [vmem:[#allocation12_spill] sm:$0xff]  ;;  %v5992_v8 = vld [vmem:[#allocation7_spill] sm:$0xff]  ;;  %v5993_v59 = vld [vmem:[#allocation13_spill] sm:$0xff] }
  0xe8   : > { %v5994_v39 = vld [vmem:[#allocation14_spill] sm:$0xff]  ;;  %v2128_v44 = vld [vmem:[%s5714_s1 + $0x68] sm:$0xff]  ;;  %v1238_v40 = vadd.f32 %v4073_v13, %v3981_v58 }
  0xe9   : > { %v3985_v0 = vadd.f32 %v795_v22, %v3967_v55 }
  0xea   : > { %2225 = vperm.xlu0 %2985, %v5989_v24  }
  0xeb   : > { %5988 = vst [vmem:[#allocation9_spill] sm:$0xff] %v3985_v0  ;;  %v855_v23 = vmax.f32 %v851_v12, %v3985_v0  ;;  %1668 = vperm.xlu1 %2974, %v5982_v26   ;;  %v3991_v18 = vpop.permute.xlu1 %1106  ;;  %v3993_v19 = vpop.permute.xlu0 %1091  ;;  %v2125_v26 = vld [vmem:[%s5714_s1 + $0x50] sm:$0xff]  ;;  %v1590_v12 = vld [vmem:[%s5714_s1 + $0x60] sm:$0xff] }
  0xec   : > { %v1244_v29 = vadd.f32 %v4073_v13, %v3991_v18  ;;  %v1240_v18 = vadd.f32 %v4073_v13, %v3965_v43 }
  0xed   : > { %v3995_v21 = vmax.f32 %v855_v23, %v852_v5  ;;  %v5995_v23 = vld [vmem:[#allocation15_spill] sm:$0xff] }
  0xee   : > { %2230 = vperm.xlu0 %2985, %v5991_v11   ;;  %v1592_v11 = vld [vmem:[%s5714_s1 + $0x70] sm:$0xff]  ;;  %v1276_v6 = vmul.f32 0.2, %v1244_v29  ;;  %v1272_v34 = vmul.f32 0.2, %v1240_v18 }
  0xef   : > { %5990 = vst [vmem:[#allocation11_spill] sm:$0xff] %v3995_v21  ;;  %2975 = vset.pattern.permute.xlu1 %v5959_v33  ;;  %v3999_v2 = vpop.permute.xlu1 %1116  ;;  %v4001_v31 = vpop.permute.xlu0 %1101 }
  0xf0   : > { %2195 = vperm.xlu1 %2975, %v5992_v8   ;;  %v1243_v46 = vadd.f32 %v4073_v13, %v4001_v31  ;;  %v1308_v21 = vmax.f32 %v1244_v29, %v1276_v6 }
  0xf2   : > { %2245 = vperm.xlu0 %2985, %v5993_v59   ;;  %v5996_v59 = vld [vmem:[#allocation16_spill] sm:$0xff] }
  0xf3   : > { %v4008_v14 = vpop.permute.xlu1 %1126  ;;  %v4010_v22 = vpop.permute.xlu0 %1111 }
  0xf4   : > { %2200 = vperm.xlu1 %2975, %v2125_v26  }
  0xf6   : > { %2250 = vperm.xlu0 %2985, %v5994_v39   ;;  %v1593_v39 = vld [vmem:[%s5714_s1 + $0x78] sm:$0xff] }
  0xf7   : > { %v4016_v24 = vpop.permute.xlu1 %1136  ;;  %v4018_v5 = vpop.permute.xlu0 %1121 }
  0xf8   : > { %2976 = vset.pattern.permute.xlu1 %v5981_v49  ;;  %v1250_v7 = vadd.f32 %v4073_v13, %v4016_v24 }
  0xf9   : > { %1673 = vperm.xlu1 %2976, %v1590_v12  }
  0xfa   : > { %2265 = vperm.xlu0 %2985, %v5995_v23   ;;  %v5997_v23 = vld [vmem:[#allocation17_spill] sm:$0xff] }
  0xfb   : > { %v4025_v8 = vpop.permute.xlu1 %1146  ;;  %v4027_v26 = vpop.permute.xlu0 %1131 }
  0xfd   : > { %1683 = vperm.xlu1 %2976, %v1592_v11  }
  0xfe   : > { %2270 = vperm.xlu0 %2985, %v5996_v59   ;;  %v5998_v59 = vld [vmem:[#allocation18_spill] sm:$0xff] }
  0xff   : > { %v4033_v0 = vpop.permute.xlu1 %1156  ;;  %v4035_v12 = vpop.permute.xlu0 %1141 }
 0x101   : > { %1688 = vperm.xlu1 %2976, %v1593_v39   ;;  %v4054_v39 = vld [vmem:[%s5714_s1 + $0xf8] sm:$0xff] }
 0x102   : > { %2285 = vperm.xlu0 %2985, %v5997_v23   ;;  %6000 = vst [vmem:[#allocation7_spill] sm:$0xff] %v4054_v39  ;;  %v6001_v23 = vld [vmem:[#allocation33_spill] sm:$0xff] }
 0x103   : > { %v4038_v10 = vpop.permute.xlu1 %1166  ;;  %v4040_v17 = vpop.permute.xlu0 %1151  ;;  %v401_v20 = vunpack.c.0.s8 %v6001_v23  ;;  %v403_v9 = vunpack.c.2.s8 %v6001_v23  ;;  %v404_v41 = vunpack.c.3.s8 %v6001_v23  ;;  %v407_v23 = vunpack.c.2.s8 %v6004_v48 }
 0x105   : > { %2977 = vset.pattern.permute.xlu1 %v5959_v33  ;;  %v433_v63 = vcvt.s32.f32 %v401_v20  ;;  %v435_v32 = vcvt.s32.f32 %v403_v9  ;;  %v4078_v20 = vld [vmem:[%s5714_s1 + $0x90] sm:$0xff]  ;;  %v1242_v9 = vadd.f32 %v4073_v13, %v3979_v1  ;;  %v1246_v1 = vadd.f32 %v4073_v13, %v3999_v2 }
 0x106   : > { %2215 = vperm.xlu1 %2977, %v2128_v44   ;;  %2290 = vperm.xlu0 %2985, %v5998_v59   ;;  %v439_v58 = vcvt.s32.f32 %v407_v23  ;;  %v1241_v2 = vadd.f32 %v4073_v13, %v3993_v19  ;;  %v1245_v23 = vadd.f32 %v4073_v13, %v4010_v22 }
 0x107   : > { %v4047_v15 = vpop.permute.xlu1 %1176  ;;  %v4049_v42 = vpop.permute.xlu0 %1161  ;;  %v2799_v16 = vadd.f32 -1.0, %v433_v63  ;;  %v2801_v27 = vadd.f32 -1.0, %v435_v32  ;;  %v1597_v32 = vld [vmem:[%s5714_s1 + $0x98] sm:$0xff]  ;;  %v1274_v30 = vmul.f32 0.2, %v1242_v9 }
 0x108   : > { %5999 = vst [vmem:[#allocation12_spill] sm:$0xff] %v4047_v15  ;;  %v1277_v15 = vmul.f32 0.2, %v1245_v23 }
 0x109   : > { %v4107_v52 = vmul.f32 1e+30, %v2801_v27  ;;  %v2132_v27 = vld [vmem:[%s5714_s1 + $0x88] sm:$0xff]  ;;  %v1306_v4 = vmax.f32 %v1242_v9, %v1274_v30 }
 0x10a   : > { %2220 = vperm.xlu1 %2977, %v1592_v11   ;;  %2305 = vperm.xlu0 %2985, %v4054_v39   ;;  %v408_v39 = vunpack.c.3.s8 %v6004_v48  ;;  %v1239_v48 = vadd.f32 %v4073_v13, %v3939_v60  ;;  %v1270_v60 = vmul.f32 0.2, %v1238_v40 }
 0x10b   : > { %v4059_v44 = vpop.permute.xlu1 %1186  ;;  %v4061_v59 = vpop.permute.xlu0 %1171  ;;  %6007 = vst [vmem:[#allocation17_spill] sm:$0xff] %v4107_v52 }
 0x10c   : > { %6002 = vst [vmem:[#allocation13_spill] sm:$0xff] %v4059_v44  ;;  %v440_v62 = vcvt.s32.f32 %v408_v39  ;;  %v1271_v31 = vmul.f32 0.2, %v1239_v48  ;;  %v1275_v44 = vmul.f32 0.2, %v1243_v46 }
 0x10e   : > { %2978 = vset.pattern.permute.xlu1 %v5981_v49  ;;  %v1303_v30 = vmax.f32 %v1239_v48, %v1271_v31  ;;  %v1307_v6 = vmax.f32 %v1243_v46, %v1275_v44  ;;  %v1309_v31 = vmax.f32 %v1245_v23, %v1277_v15 }
 0x10f   : > { %1693 = vperm.xlu1 %2978, %v1594_v37   ;;  %v4068_v11 = vpop.permute.xlu0 %1181  ;;  %v436_v37 = vcvt.s32.f32 %v404_v41  ;;  %v4094_v41 = vmul.f32 1e+30, %v2799_v16  ;;  %v1248_v16 = vadd.f32 %v4073_v13, %v4008_v14  ;;  %v2805_v14 = vadd.f32 -1.0, %v439_v58 }
 0x110   : > { %6003 = vst [vmem:[#allocation14_spill] sm:$0xff] %v4068_v11  ;;  %v661_v55 = vpop.permute.xlu1 %660  ;;  %v2806_v11 = vadd.f32 -1.0, %v440_v62  ;;  %v1247_v62 = vadd.f32 %v4073_v13, %v4018_v5 }
 0x111   : > { %6006 = vst [vmem:[#allocation16_spill] sm:$0xff] %v4094_v41  ;;  %v2802_v39 = vadd.f32 -1.0, %v436_v37  ;;  %v1278_v37 = vmul.f32 0.2, %v1246_v1  ;;  %v726_v29 = vadd.f32 %v3723_v3, %v661_v55  ;;  %v4149_v55 = vadd.f32 %v1303_v30, %v3684_v56 }
 0x112   : > { %v4127_v58 = vmul.f32 1e+30, %v2806_v11  ;;  %v1279_v48 = vmul.f32 0.2, %v1247_v62 }
 0x113   : > { %1703 = vperm.xlu1 %2978, %v4078_v20   ;;  %v4088_v63 = vpop.permute.xlu0 %1191  ;;  %v4118_v22 = vmul.f32 1e+30, %v2802_v39  ;;  %v1310_v9 = vmax.f32 %v1246_v1, %v1278_v37  ;;  %v1282_v39 = vmul.f32 0.2, %v1250_v7  ;;  %v4141_v1 = vadd.f32 %v1308_v21, %v3702_v45  ;;  %6017 = vst [vmem:[#allocation76_spill] sm:$0xff] %v4149_v55  ;;  %v6020_v21 = vld [vmem:[#allocation23_spill] sm:$0xff] }
 0x114   : > { %6005 = vst [vmem:[#allocation15_spill] sm:$0xff] %v4088_v63  ;;  %v671_v61 = vpop.permute.xlu1 %670  ;;  %v2803_v63 = vadd.f32 -1.0, %v437_v35  ;;  %v1280_v35 = vmul.f32 0.2, %v1248_v16  ;;  %6012 = vst [vmem:[#allocation71_spill] sm:$0xff] %v4127_v58  ;;  %v1598_v37 = vld [vmem:[%s5714_s1 + $0xa0] sm:$0xff] }
 0x115   : > { %6009 = vst [vmem:[#allocation33_spill] sm:$0xff] %v4118_v22  ;;  %v4132_v22 = vadd.f32 %v1306_v4, %v3713_v51  ;;  %6016 = vst [vmem:[#allocation75_spill] sm:$0xff] %v4141_v1  ;;  %v728_v4 = vadd.f32 %v3723_v3, %v671_v61  ;;  %v1314_v46 = vmax.f32 %v1250_v7, %v1282_v39  ;;  %v758_v61 = vmul.f32 0.2, %v726_v29 }
 0x116   : > { %v4125_v38 = vmul.f32 1e+30, %v2803_v63  ;;  %v1254_v39 = vadd.f32 %v4073_v13, %v4033_v0  ;;  %v1256_v0 = vadd.f32 %v4073_v13, %v4038_v10 }
 0x117   : > { %1708 = vperm.xlu1 %2978, %v1597_v32   ;;  %v4111_v43 = vpop.permute.xlu0 %1196  ;;  %v1302_v32 = vmax.f32 %v1238_v40, %v1270_v60  ;;  %v4129_v40 = vmul.f32 1e+30, %v2805_v14  ;;  %v1304_v60 = vmax.f32 %v1240_v18, %v1272_v34  ;;  %6014 = vst [vmem:[#allocation73_spill] sm:$0xff] %v4132_v22  ;;  %v1252_v34 = vadd.f32 %v4073_v13, %v4025_v8 }
 0x118   : > { %6008 = vst [vmem:[#allocation18_spill] sm:$0xff] %v4111_v43  ;;  %v676_v19 = vpop.permute.xlu1 %675  ;;  %v1273_v43 = vmul.f32 0.2, %v1241_v2  ;;  %6011 = vst [vmem:[#allocation70_spill] sm:$0xff] %v4125_v38  ;;  %v4152_v18 = vadd.f32 %v1310_v9, %v3737_v28  ;;  %v4161_v8 = vadd.f32 %v1307_v6, %v6020_v21  ;;  %v1251_v6 = vadd.f32 %v4073_v13, %v4035_v12  ;;  %v4212_v12 = vld [vmem:[%s5714_s1 + $0xb0] sm:$0xff] }
 0x119   : > { %6013 = vst [vmem:[#allocation72_spill] sm:$0xff] %v4129_v40  ;;  %v4138_v63 = vadd.f32 %v1302_v32, %v3679_v53  ;;  %v4158_v15 = vadd.f32 %v1304_v60, %v3669_v36  ;;  %v1284_v32 = vmul.f32 0.2, %v1252_v34  ;;  %v1286_v28 = vmul.f32 0.2, %v1254_v39 }
 0x11a   : > { %v1305_v11 = vmax.f32 %v1241_v2, %v1273_v43  ;;  %6018 = vst [vmem:[#allocation77_spill] sm:$0xff] %v4152_v18  ;;  %v1249_v2 = vadd.f32 %v4073_v13, %v4027_v26  ;;  %6021 = vst [vmem:[#allocation79_spill] sm:$0xff] %v4161_v8  ;;  %v1367_v60 = vmax.f32 %v4149_v55, %v4161_v8 }
 0x11b   : > { %2979 = vset.pattern.permute.xlu1 %v5959_v33  ;;  %v4123_v24 = vpop.permute.xlu0 %1211  ;;  %6015 = vst [vmem:[#allocation74_spill] sm:$0xff] %v4138_v63  ;;  %6019 = vst [vmem:[#allocation78_spill] sm:$0xff] %v4158_v15  ;;  %v1366_v43 = vmax.f32 %v4138_v63, %v4132_v22  ;;  %v6032_v22 = vld [vmem:[#allocation11_spill] sm:$0xff] }
 0x11c   : > { %6010 = vst [vmem:[#allocation41_spill] sm:$0xff] %v4123_v24  ;;  %2235 = vperm.xlu1 %2979, %v2132_v27   ;;  %v1312_v24 = vmax.f32 %v1248_v16, %v1280_v35  ;;  %v729_v16 = vadd.f32 %v3723_v3, %v676_v19  ;;  %v4169_v7 = vadd.f32 %v1305_v11, %v3681_v54  ;;  %v6024_v19 = vld [vmem:[#allocation24_spill] sm:$0xff]  ;;  %v760_v35 = vmul.f32 0.2, %v728_v4 }
 0x11d   : > { %v4135_v5 = vpop.permute.xlu1 %1201  ;;  %v1368_v27 = vmax.f32 %v4158_v15, %v4141_v1  ;;  %v4180_v14 = vadd.f32 %v1309_v31, %v6024_v19  ;;  %v4185_v9 = vmax.f32 %v1366_v43, %v4152_v18  ;;  %v790_v11 = vmax.f32 %v726_v29, %v758_v61 }
 0x11e   : > { %6022 = vst [vmem:[#allocation80_spill] sm:$0xff] %v4169_v7  ;;  %v4172_v26 = vadd.f32 %v1312_v24, %v3720_v57  ;;  %v4188_v24 = vadd.f32 %v1314_v46, %v3750_v50  ;;  %v4207_v43 = vadd.f32 %v4073_v13, %v4040_v17  ;;  %v1316_v61 = vmax.f32 %v1252_v34, %v1284_v32  ;;  %v1601_v32 = vld [vmem:[%s5714_s1 + $0xb8] sm:$0xff] }
 0x11f   : > { %v4146_v44 = vpop.permute.xlu0 %1216  ;;  %6025 = vst [vmem:[#allocation82_spill] sm:$0xff] %v4180_v14  ;;  %v1369_v29 = vmax.f32 %v4169_v7, %v4180_v14  ;;  %v1255_v17 = vadd.f32 %v4073_v13, %v4049_v42  ;;  %v1283_v19 = vmul.f32 0.2, %v1251_v6 }
 0x120   : > { %2240 = vperm.xlu1 %2979, %v4078_v20   ;;  %6023 = vst [vmem:[#allocation81_spill] sm:$0xff] %v4172_v26  ;;  %v1311_v20 = vmax.f32 %v1247_v62, %v1279_v48  ;;  %6026 = vst [vmem:[#allocation83_spill] sm:$0xff] %v4188_v24  ;;  %v1281_v62 = vmul.f32 0.2, %v1249_v2  ;;  %v761_v48 = vmul.f32 0.2, %v729_v16  ;;  %v4198_v31 = vmax.f32 %v1368_v27, %v4172_v26 }
 0x121   : > { %v4164_v23 = vpop.permute.xlu1 %1206  ;;  %v1374_v10 = vmax.f32 %v4185_v9, %v4188_v24  ;;  %v4222_v26 = vadd.f32 %v790_v11, %v4094_v41  ;;  %v1315_v8 = vmax.f32 %v1251_v6, %v1283_v19  ;;  %v2136_v6 = vld [vmem:[%s5714_s1 + $0xa8] sm:$0xff] }
 0x122   : > { %v4201_v46 = vadd.f32 %v1311_v20, %v3710_v25  ;;  %v1313_v27 = vmax.f32 %v1249_v2, %v1281_v62  ;;  %v793_v18 = vmax.f32 %v729_v16, %v761_v48  ;;  %v4231_v2 = vadd.f32 %v4073_v13, %v4061_v59  ;;  %v6031_v59 = vld [vmem:[#allocation12_spill] sm:$0xff] }
 0x123   : > { %v4182_v30 = vpop.permute.xlu0 %1231  ;;  %v4237_v16 = vadd.f32 %v1316_v61, %v3748_v47  ;;  %v1318_v48 = vmax.f32 %v1254_v39, %v1286_v28  ;;  %v1258_v24 = vadd.f32 %v4073_v13, %v6031_v59  ;;  %v854_v61 = vmax.f32 %v4222_v26, %v6032_v22  ;;  %v6033_v47 = vld [vmem:[#allocation33_spill] sm:$0xff] }
 0x124   : > { %2980 = vset.pattern.permute.xlu1 %v5981_v49  ;;  %6027 = vst [vmem:[#allocation84_spill] sm:$0xff] %v4201_v46  ;;  %v4226_v34 = vmax.f32 %v1367_v60, %v4201_v46  ;;  %v6029_v60 = vld [vmem:[#allocation28_spill] sm:$0xff]  ;;  %v1287_v46 = vmul.f32 0.2, %v1255_v17  ;;  %v4251_v7 = vadd.f32 %v793_v18, %v6033_v47  ;;  %v1289_v39 = vmul.f32 0.2, %v4231_v2 }
 0x125   : > { %1713 = vperm.xlu1 %2980, %v1598_v37   ;;  %v792_v37 = vmax.f32 %v728_v4, %v760_v35  ;;  %v1285_v4 = vmul.f32 0.2, %v4207_v43  ;;  %6028 = vst [vmem:[#allocation85_spill] sm:$0xff] %v4237_v16  ;;  %v4244_v11 = vadd.f32 %v1313_v27, %v6029_v60  ;;  %v6034_v27 = vld [vmem:[#allocation13_spill] sm:$0xff] }
 0x126   : > { %v681_v50 = vpop.permute.xlu1 %680  ;;  %v1260_v28 = vadd.f32 %v4073_v13, %v6034_v27 }
 0x127   : > { %v730_v20 = vadd.f32 %v3723_v3, %v681_v50  ;;  %v1288_v50 = vmul.f32 0.2, %v1256_v0  ;;  %v4240_v35 = vadd.f32 %v792_v37, %v4107_v52  ;;  %6030 = vst [vmem:[#allocation86_spill] sm:$0xff] %v4244_v11 }
 0x128   : > { %v1619_v57 = vpop.permute.xlu0 %1618 }
 0x129   : > { %v762_v1 = vmul.f32 0.2, %v730_v20  ;;  %1723 = vperm.xlu1 %2980, %v4212_v12   ;;  %v858_v59 = vmax.f32 %v854_v61, %v4240_v35  ;;  %v6038_v61 = vld [vmem:[#allocation30_spill] sm:$0xff] }
 0x12a   : > { %v691_v42 = vpop.permute.xlu1 %690  ;;  %v4270_v60 = vadd.f32 %v1315_v8, %v6038_v61  ;;  %v4285_v8 = vld [vmem:[%s3708_s11 + $0x2] ss:$0 sm:$0xff] }
 0x12b   : > { %v794_v9 = vmax.f32 %v730_v20, %v762_v1  ;;  %v732_v62 = vadd.f32 %v3723_v3, %v691_v42  ;;  %v1320_v1 = vmax.f32 %v1256_v0, %v1288_v50  ;;  %v1317_v20 = vmax.f32 %v4207_v43, %v1285_v4  ;;  %v6036_v43 = vld [vmem:[#allocation38_spill] sm:$0xff] }
 0x12c   : > { %v1634_v14 = vpop.permute.xlu0 %1633  ;;  %v1373_v0 = vmax.f32 %v1369_v29, %v4244_v11  ;;  %v4267_v50 = vadd.f32 %v1318_v48, %v6036_v43  ;;  %v1290_v4 = vmul.f32 0.2, %v1258_v24  ;;  %6039 = vst [vmem:[#allocation13_spill] sm:$0xff] %v4270_v60  ;;  %v1292_v29 = vmul.f32 0.2, %v1260_v28  ;;  %v6043_v48 = vld [vmem:[#allocation14_spill] sm:$0xff] }
 0x12d   : > { %v764_v37 = vmul.f32 0.2, %v732_v62  ;;  %1728 = vperm.xlu1 %2980, %v1601_v32   ;;  %v4259_v19 = vadd.f32 %v794_v9, %v4125_v38  ;;  %v1319_v32 = vmax.f32 %v1255_v17, %v1287_v46  ;;  %v856_v9 = vmax.f32 %v4251_v7, %v858_v59  ;;  %v6044_v46 = vld [vmem:[#allocation15_spill] sm:$0xff]  ;;  %v6045_v59 = vld [vmem:[#allocation32_spill] sm:$0xff] }
 0x12e   : > { %v696_v42 = vpop.permute.xlu1 %695  ;;  %6037 = vst [vmem:[#allocation11_spill] sm:$0xff] %v4267_v50  ;;  %v1259_v43 = vadd.f32 %v4073_v13, %v6043_v48  ;;  %v1261_v17 = vadd.f32 %v4073_v13, %v6044_v46  ;;  %v4288_v11 = vadd.f32 %v1317_v20, %v6045_v59  ;;  %v4295_v48 = vmax.f32 %v1374_v10, %v4267_v50  ;;  %v6047_v46 = vld [vmem:[#allocation36_spill] sm:$0xff] }
 0x12f   : > { %6035 = vst [vmem:[#allocation12_spill] sm:$0xff] %v4259_v19  ;;  %v796_v22 = vmax.f32 %v732_v62, %v764_v37  ;;  %v733_v18 = vadd.f32 %v3723_v3, %v696_v42  ;;  %v6041_v37 = vld [vmem:[#allocation39_spill] sm:$0xff]  ;;  %v857_v15 = vmax.f32 %v4259_v19, %v856_v9  ;;  %v1322_v63 = vmax.f32 %v1258_v24, %v1290_v4  ;;  %v6049_v4 = vld [vmem:[#allocation37_spill] sm:$0xff] }
 0x130   : > { %v1644_v27 = vpop.permute.xlu0 %1643  ;;  %v4278_v42 = vadd.f32 %v1320_v1, %v6041_v37  ;;  %6046 = vst [vmem:[#allocation14_spill] sm:$0xff] %v4288_v11  ;;  %v1376_v37 = vmax.f32 %v4198_v31, %v4237_v16  ;;  %v4298_v21 = vadd.f32 %v1319_v32, %v6047_v46  ;;  %v1776_v20 = vadd.f32 %v4285_v8, %v1619_v57  ;;  %v6051_v32 = vld [vmem:[#allocation42_spill] sm:$0xff] }
 0x131   : > { %v4274_v3 = vadd.f32 %v796_v22, %v4129_v40  ;;  %v765_v62 = vmul.f32 0.2, %v733_v18  ;;  %2981 = vset.pattern.permute.xlu1 %v5959_v33  ;;  %v1321_v22 = vmax.f32 %v4231_v2, %v1289_v39  ;;  %v1779_v2 = vadd.f32 %v4285_v8, %v1634_v14 }
 0x132   : > { %6042 = vst [vmem:[#allocation88_spill] sm:$0xff] %v4278_v42  ;;  %2255 = vperm.xlu1 %2981, %v2136_v6   ;;  %6048 = vst [vmem:[#allocation15_spill] sm:$0xff] %v4298_v21  ;;  %v1375_v31 = vmax.f32 %v4226_v34, %v4270_v60  ;;  %v1291_v10 = vmul.f32 0.2, %v1259_v43  ;;  %v1293_v9 = vmul.f32 0.2, %v1261_v17  ;;  %v4310_v24 = vmax.f32 %v1376_v37, %v4278_v42 }
 0x133   : > { %6040 = vst [vmem:[#allocation87_spill] sm:$0xff] %v4274_v3  ;;  %v797_v55 = vmax.f32 %v733_v18, %v765_v62  ;;  %v1222_v1 = vpop.permute.xlu1 %1221  ;;  %v859_v59 = vmax.f32 %v4274_v3, %v857_v15  ;;  %v1324_v18 = vmax.f32 %v1260_v28, %v1292_v29  ;;  %v1377_v57 = vmax.f32 %v1373_v0, %v4288_v11  ;;  %v6052_v34 = vld [vmem:[#allocation41_spill] sm:$0xff]  ;;  %v1602_v29 = vld [vmem:[%s5714_s1 + $0xc0] sm:$0xff]  ;;  %v6055_v11 = vld [vmem:[#allocation18_spill] sm:$0xff] }
 0x134   : > { %v1659_v6 = vpop.permute.xlu0 %1658  ;;  %v4314_v15 = vadd.f32 %v1321_v22, %v6049_v4  ;;  %v4318_v62 = vadd.f32 %v1322_v63, %v6051_v32  ;;  %v1265_v28 = vadd.f32 %v4073_v13, %v6052_v34  ;;  %v4326_v37 = vadd.f32 %v4073_v13, %v4164_v23  ;;  %v6053_v32 = vld [vmem:[#allocation68_spill] sm:$0xff] }
 0x135   : > { %v4304_v39 = vadd.f32 %v797_v55, %v4127_v58  ;;  %v1808_v63 = vmul.f32 0.2, %v1776_v20  ;;  %v1811_v22 = vmul.f32 0.2, %v1779_v2  ;;  %v4335_v34 = vadd.f32 %v1324_v18, %v6053_v32 }
 0x136   : > { %2260 = vperm.xlu1 %2981, %v4212_v12   ;;  %6050 = vst [vmem:[#allocation89_spill] sm:$0xff] %v4314_v15  ;;  %v1263_v12 = vadd.f32 %v4073_v13, %v4135_v5  ;;  %v1323_v42 = vmax.f32 %v1259_v43, %v1291_v10  ;;  %v1325_v5 = vmax.f32 %v1261_v17, %v1293_v9  ;;  %v4350_v43 = vld [vmem:[%s5714_s1 + $0xd0] sm:$0xff]  ;;  %v1297_v17 = vmul.f32 0.2, %v1265_v28 }
 0x137   : > { %v860_v14 = vmax.f32 %v4304_v39, %v859_v59  ;;  %v1227_v55 = vpop.permute.xlu1 %1226  ;;  %v4332_v59 = vmax.f32 %v1375_v31, %v4298_v21  ;;  %6054 = vst [vmem:[#allocation41_spill] sm:$0xff] %v4335_v34  ;;  %v1781_v50 = vadd.f32 %v4285_v8, %v1644_v27  ;;  %v4340_v23 = vmax.f32 %v1377_v57, %v4314_v15  ;;  %v6057_v15 = vld [vmem:[#allocation43_spill] sm:$0xff] }
 0x138   : > { %v1679_v0 = vpop.permute.xlu0 %1678  ;;  %v4344_v16 = vadd.f32 %v4073_v13, %v6055_v11  ;;  %v1268_v21 = vadd.f32 %v4073_v13, %v1227_v55  ;;  %v1295_v27 = vmul.f32 0.2, %v1263_v12  ;;  %v1296_v18 = vmul.f32 0.2, %v4326_v37 }
 0x139   : > { %v861_v4 = vrot.slane %v860_v14, 4  ;;  %v4355_v10 = vadd.f32 %v4073_v13, %v4182_v30  ;;  %v1840_v57 = vmax.f32 %v1776_v20, %v1808_v63  ;;  %v1267_v55 = vadd.f32 %v4073_v13, %v1222_v1 }
 0x13a   : > { %2982 = vset.pattern.permute.xlu1 %v5981_v49  ;;  %v4362_v60 = vadd.f32 %v1325_v5, %v6057_v15  ;;  %v1813_v54 = vmul.f32 0.2, %v1781_v50  ;;  %v1784_v36 = vadd.f32 %v4285_v8, %v1659_v6  ;;  %v1294_v3 = vmul.f32 0.2, %v4344_v16  ;;  %v1605_v6 = vld [vmem:[%s5714_s1 + $0xd8] sm:$0xff] }
 0x13b   : > { %v862_v31 = vmax.f32 %v860_v14, %v861_v4  ;;  %1733 = vperm.xlu1 %2982, %v1602_v29   ;;  %v1843_v4 = vmax.f32 %v1779_v2, %v1811_v22  ;;  %v6056_v29 = vld [vmem:[#allocation40_spill] sm:$0xff]  ;;  %v1266_v30 = vadd.f32 %v4073_v13, %v4146_v44  ;;  %v1300_v20 = vmul.f32 0.2, %v1268_v21 }
 0x13c   : > { %v1614_v9 = vpop.permute.xlu1 %1613  ;;  %v1699_v11 = vpop.permute.xlu0 %1698  ;;  %v4359_v32 = vadd.f32 %v1323_v42, %v6056_v29  ;;  %6058 = vst [vmem:[#allocation18_spill] sm:$0xff] %v4362_v60  ;;  %v1329_v2 = vmax.f32 %v1265_v28, %v1297_v17  ;;  %v1327_v1 = vmax.f32 %v1263_v12, %v1295_v27  ;;  %v1328_v42 = vmax.f32 %v4326_v37, %v1296_v18 }
 0x13d   : > { %v863_v14 = vrot.slane %v862_v31, 2  ;;  %v1301_v63 = vmul.f32 0.2, %v4355_v10  ;;  %v4379_v13 = vadd.f32 %v1840_v57, %v3684_v56  ;;  %v4382_v44 = vadd.f32 %v1843_v4, %v3713_v51 }
 0x13e   : > { %v1299_v12 = vmul.f32 0.2, %v1267_v55  ;;  %v1384_v37 = vmax.f32 %v4310_v24, %v4335_v34  ;;  %v1816_v17 = vmul.f32 0.2, %v1784_v36  ;;  %v1788_v27 = vadd.f32 %v4285_v8, %v1679_v0 }
 0x13f   : > { %v864_v19 = vmax.f32 %v862_v31, %v863_v14  ;;  %1743 = vperm.xlu1 %2982, %v4350_v43   ;;  %6059 = vst [vmem:[#allocation90_spill] sm:$0xff] %v4379_v13  ;;  %6060 = vst [vmem:[#allocation91_spill] sm:$0xff] %v4382_v44  ;;  %v1845_v31 = vmax.f32 %v1781_v50, %v1813_v54  ;;  %v1383_v18 = vmax.f32 %v4332_v59, %v4359_v32  ;;  %v6062_v54 = vld [vmem:[#allocation64_spill] sm:$0xff] }
 0x140   : > { %v4371_v22 = vpop.permute.xlu1 %1623  ;;  %v4373_v5 = vpop.permute.xlu0 %1718  ;;  %v1298_v14 = vmul.f32 0.2, %v1266_v30  ;;  %v1332_v57 = vmax.f32 %v1268_v21, %v1300_v20  ;;  %v1385_v4 = vmax.f32 %v4340_v23, %v4362_v60  ;;  %v1326_v51 = vmax.f32 %v4344_v16, %v1294_v3  ;;  %v2140_v16 = vld [vmem:[%s5714_s1 + $0xc8] sm:$0xff] }
 0x141   : > { %v865_v28 = vrot.slane %v864_v19, 1  ;;  %v4395_v56 = vadd.f32 %v1329_v2, %v6033_v47  ;;  %v4398_v50 = vadd.f32 %v1327_v1, %v6062_v54  ;;  %v1333_v21 = vmax.f32 %v4355_v10, %v1301_v63 }
 0x142   : > { %v1903_v59 = vmax.f32 %v4379_v13, %v4382_v44  ;;  %v1331_v23 = vmax.f32 %v1267_v55, %v1299_v12  ;;  %v4414_v3 = vadd.f32 %v1845_v31, %v3702_v45  ;;  %v1848_v20 = vmax.f32 %v1784_v36, %v1816_v17  ;;  %v6099_v45 = vld [vmem:[#allocation63_spill] sm:$0xff] }
 0x143   : > { %v4389_v15 = vmax.f32 %v864_v19, %v865_v28  ;;  %1748 = vperm.xlu1 %2982, %v1605_v6   ;;  %6061 = vst [vmem:[#allocation92_spill] sm:$0xff] %v4395_v56  ;;  %6063 = vst [vmem:[#allocation93_spill] sm:$0xff] %v4398_v50  ;;  %v4405_v19 = vadd.f32 %v1328_v42, %v4107_v52  ;;  %v1820_v2 = vmul.f32 0.2, %v1788_v27  ;;  %v6066_v42 = vld [vmem:[#allocation48_spill] sm:$0xff] }
 0x144   : > { %v4400_v24 = vpop.permute.xlu1 %1628  ;;  %v4402_v0 = vpop.permute.xlu0 %1738  ;;  %6065 = vst [vmem:[#allocation95_spill] sm:$0xff] %v4414_v3  ;;  %v1775_v1 = vadd.f32 %v4285_v8, %v1614_v9  ;;  %v1330_v6 = vmax.f32 %v1266_v30, %v1298_v14  ;;  %v4420_v10 = vadd.f32 %v1332_v57, %v4129_v40  ;;  %v1792_v55 = vadd.f32 %v4285_v8, %v1699_v11  ;;  %v6068_v9 = vld [vmem:[#allocation60_spill] sm:$0xff] }
 0x145   : > { %6064 = vst [vmem:[#allocation94_spill] sm:$0xff] %v4405_v19  ;;  %v1382_v63 = vmax.f32 %v4295_v48, %v4318_v62  ;;  %v4427_v12 = vadd.f32 %v1326_v51, %v4094_v41  ;;  %v1389_v36 = vmax.f32 %v1385_v4, %v4395_v56  ;;  %v1387_v11 = vmax.f32 %v1383_v18, %v4398_v50  ;;  %v6070_v48 = vld [vmem:[#allocation8_spill] sm:$0xff]  ;;  %v6074_v18 = vld [vmem:[#allocation67_spill] sm:$0xff]  ;;  %v6095_v56 = vld [vmem:[#allocation62_spill] sm:$0xff] }
 0x146   : > { %v1388_v14 = vmax.f32 %v1384_v37, %v4405_v19  ;;  %v4439_v57 = vadd.f32 %v1333_v21, %v4127_v58  ;;  %v4442_v51 = vadd.f32 %v1331_v23, %v6070_v48  ;;  %v1905_v4 = vmax.f32 %v1903_v59, %v4414_v3  ;;  %v6102_v50 = vld [vmem:[#allocation69_spill] sm:$0xff] }
 0x147   : > { %2983 = vset.pattern.permute.xlu1 %v5959_v33  ;;  %6067 = vst [vmem:[#allocation48_spill] sm:$0xff] %v4427_v12  ;;  %v4446_v28 = vadd.f32 %v1848_v20, %v3710_v25  ;;  %v1807_v30 = vmul.f32 0.2, %v1775_v1  ;;  %v4449_v44 = vadd.f32 %v1330_v6, %v4125_v38  ;;  %v1824_v21 = vmul.f32 0.2, %v1792_v55  ;;  %v6097_v25 = vld [vmem:[#allocation7_spill] sm:$0xff] }
 0x148   : > { %2275 = vperm.xlu1 %2983, %v2140_v16   ;;  %v4432_v31 = vpop.permute.xlu1 %1638  ;;  %v4434_v17 = vpop.permute.xlu0 %1758  ;;  %6069 = vst [vmem:[#allocation60_spill] sm:$0xff] %v4439_v57  ;;  %6071 = vst [vmem:[#allocation96_spill] sm:$0xff] %v4442_v51  ;;  %v1852_v16 = vmax.f32 %v1788_v27, %v1820_v2  ;;  %v1392_v37 = vmax.f32 %v1388_v14, %v4420_v10  ;;  %v1386_v59 = vmax.f32 %v1382_v63, %v4427_v12 }
 0x149   : > { %6072 = vst [vmem:[#allocation97_spill] sm:$0xff] %v4446_v28  ;;  %6073 = vst [vmem:[#allocation98_spill] sm:$0xff] %v4449_v44  ;;  %v1393_v20 = vmax.f32 %v1389_v36, %v4439_v57  ;;  %v1391_v27 = vmax.f32 %v1387_v11, %v4442_v51  ;;  %v1904_v6 = vmax.f32 %v4446_v28, %v1905_v4  ;;  %v6093_v51 = vld [vmem:[#allocation56_spill] sm:$0xff] }
 0x14a   : > { %v4464_v3 = vadd.f32 %v1852_v16, %v6038_v61  ;;  %v1839_v13 = vmax.f32 %v1775_v1, %v1807_v30  ;;  %v4468_v14 = vadd.f32 %v4285_v8, %v4371_v22  ;;  %v1390_v63 = vmax.f32 %v1386_v59, %v4449_v44  ;;  %v6076_v22 = vld [vmem:[#allocation44_spill] sm:$0xff]  ;;  %v6077_v59 = vld [vmem:[#allocation47_spill] sm:$0xff]  ;;  %v6090_v61 = vld [vmem:[#allocation53_spill] sm:$0xff] }
 0x14b   : > { %v898_v36 = vsub.f32 %v4304_v39, %v4389_v15  ;;  %v1395_v11 = vmax.f32 %v1392_v37, %v1393_v20  ;;  %v1856_v58 = vmax.f32 %v1792_v55, %v1824_v21  ;;  %v4478_v4 = vadd.f32 %v4285_v8, %v4373_v5  ;;  %v6079_v21 = vld [vmem:[#allocation46_spill] sm:$0xff] }
 0x14c   : > { %2280 = vperm.xlu1 %2983, %v4350_v43   ;;  %v4455_v23 = vpop.permute.xlu1 %1648  ;;  %6075 = vst [vmem:[#allocation67_spill] sm:$0xff] %v4464_v3  ;;  %v1606_v43 = vld [vmem:[%s5714_s1 + $0xe0] sm:$0xff]  ;;  %v867_v1 = vsub.f32 %v6076_v22, %v4389_v15  ;;  %v1394_v30 = vmax.f32 %v1390_v63, %v1391_v27  ;;  %v868_v28 = vsub.f32 %v6077_v59, %v4389_v15  ;;  %v4494_v5 = vmul.f32 0.2, %v4468_v14  ;;  %v6083_v22 = vld [vmem:[#allocation45_spill] sm:$0xff]  ;;  %v6100_v44 = vld [vmem:[#allocation10_spill] sm:$0xff] }
 0x14d   : > { %v4460_v2 = vpop.permute.xlu0 %2150  ;;  %v4488_v39 = vmax.f32 %v1904_v6, %v4464_v3  ;;  %v4491_v55 = vadd.f32 %v1839_v13, %v3679_v53  ;;  %v961_v37 = vmul.f32 1.442695, %v898_v36  ;;  %v869_v20 = vsub.f32 %v6079_v21, %v4389_v15  ;;  %v6082_v13 = vld [vmem:[#allocation52_spill] sm:$0xff]  ;;  %v6084_v3 = vld [vmem:[#allocation49_spill] sm:$0xff]  ;;  %v6085_v21 = vld [vmem:[#allocation51_spill] sm:$0xff] }
 0x14e   : > { %v1396_v27 = vmax.f32 %v1394_v30, %v1395_v11  ;;  %v870_v63 = vsub.f32 %v6082_v13, %v4389_v15  ;;  %v871_v59 = vsub.f32 %v6083_v22, %v4389_v15  ;;  %v872_v40 = vsub.f32 %v6084_v3, %v4389_v15  ;;  %v6088_v22 = vld [vmem:[#allocation55_spill] sm:$0xff]  ;;  %v6092_v53 = vld [vmem:[#allocation58_spill] sm:$0xff] }
 0x14f   : > { %6078 = vst [vmem:[#allocation44_spill] sm:$0xff] %v4491_v55  ;;  %v4515_v36 = vmul.f32 0.2, %v4478_v4  ;;  %v873_v11 = vsub.f32 %v6085_v21, %v4389_v15  ;;  %v899_v52 = vmul.f32 1.442695, %v867_v1  ;;  %v877_v3 = vsub.f32 %v6088_v22, %v4389_v15  ;;  %v6094_v22 = vld [vmem:[#allocation65_spill] sm:$0xff] }
 0x150   : > { %2984 = vset.pattern.permute.xlu1 %v5981_v49  ;;  %v4499_v49 = vld [vmem:[%s5714_s1 + $0xf0] sm:$0xff]  ;;  %v879_v21 = vsub.f32 %v6090_v61, %v4389_v15  ;;  %v901_v41 = vmul.f32 1.442695, %v868_v28  ;;  %2999 = vpow2.f32 %v961_v37  ;;  %v1397_v1 = vrot.slane %v1396_v27, 4  ;;  %v6101_v61 = vld [vmem:[#allocation66_spill] sm:$0xff] }
 0x151   : > { %1753 = vperm.xlu1 %2984, %v1606_v43   ;;  %v4483_v16 = vpop.permute.xlu1 %2155  ;;  %v4504_v43 = vadd.f32 %v1856_v58, %v6047_v46  ;;  %v4506_v6 = vpop.permute.xlu0 %2165  ;;  %v6086_v58 = vld [vmem:[#allocation50_spill] sm:$0xff]  ;;  %v6087_v46 = vld [vmem:[#allocation57_spill] sm:$0xff]  ;;  %v882_v57 = vsub.f32 %v6092_v53, %v4389_v15  ;;  %v907_v19 = vmul.f32 1.442695, %v871_v59  ;;  %3001 = vpow2.f32 %v899_v52 }
 0x152   : > { %6081 = vst [vmem:[#allocation46_spill] sm:$0xff] %v4506_v6  ;;  %v874_v30 = vsub.f32 %v6086_v58, %v4389_v15  ;;  %v876_v47 = vsub.f32 %v6087_v46, %v4389_v15  ;;  %v6089_v6 = vld [vmem:[#allocation54_spill] sm:$0xff]  ;;  %v6091_v58 = vld [vmem:[#allocation59_spill] sm:$0xff]  ;;  %v903_v46 = vmul.f32 1.442695, %v869_v20  ;;  %v6096_v28 = vld [vmem:[#allocation61_spill] sm:$0xff]  ;;  %3003 = vpow2.f32 %v901_v41 }
 0x153   : > { %6080 = vst [vmem:[#allocation47_spill] sm:$0xff] %v4504_v43  ;;  %v878_v38 = vsub.f32 %v6089_v6, %v4389_v15  ;;  %v905_v6 = vmul.f32 1.442695, %v870_v63  ;;  %v909_v12 = vmul.f32 1.442695, %v872_v40  ;;  %v1398_v52 = vmax.f32 %v1396_v27, %v1397_v1  ;;  %v6104_v1 = vld [vmem:[#allocation12_spill] sm:$0xff] }
 0x154   : > { %v911_v37 = vmul.f32 1.442695, %v873_v11  ;;  %3005 = vpow2.f32 %v903_v46  ;;  %v913_v34 = vmul.f32 1.442695, %v874_v30  ;;  %v6103_v27 = vsub.f32 %v6066_v42, %v4389_v15 }
 0x155   : > { %1763 = vperm.xlu1 %2984, %v4499_v49   ;;  %v4524_v13 = vpop.permute.xlu1 %2160  ;;  %v4544_v20 = vpop.permute.xlu0 %2175  ;;  %3007 = vpow2.f32 %v905_v6  ;;  %v1912_v30 = vmax.f32 %v4488_v39, %v4491_v55  ;;  %v1841_v6 = vmax.f32 %v4468_v14, %v4494_v5  ;;  %v917_v40 = vmul.f32 1.442695, %v876_v47 }
 0x156   : > { %v915_v11 = vmul.f32 1.442695, %v6103_v27  ;;  %3009 = vpow2.f32 %v907_v19  ;;  %v1399_v42 = vrot.slane %v1398_v52, 2  ;;  %v4580_v19 = vadd.f32 %v4285_v8, %v4402_v0  ;;  %v6106_v27 = vld [vmem:[#allocation9_spill] sm:$0xff] }
 0x157   : > { %3011 = vpow2.f32 %v909_v12  ;;  %v6107_v12 = vld [vmem:[#allocation87_spill] sm:$0xff]  ;;  %v919_v39 = vmul.f32 1.442695, %v877_v3  ;;  %v921_v14 = vmul.f32 1.442695, %v878_v38  ;;  %v6109_v5 = vsub.f32 %v6068_v9, %v4389_v15 }
 0x158   : > { %3013 = vpow2.f32 %v911_v37  ;;  %v923_v47 = vmul.f32 1.442695, %v879_v21  ;;  %v1916_v0 = vmax.f32 %v1912_v30, %v4504_v43  ;;  %v1400_v9 = vmax.f32 %v1398_v52, %v1399_v42 }
 0x159   : > { %1768 = vperm.xlu1 %2984, %v6097_v25   ;;  %v4547_v53 = vpop.permute.xlu1 %2170  ;;  %v2144_v25 = vld [vmem:[%s5714_s1 + $0xe8] sm:$0xff]  ;;  %3015 = vpow2.f32 %v913_v34  ;;  %v925_v37 = vmul.f32 1.442695, %v6109_v5  ;;  %v4601_v34 = vadd.f32 %v4285_v8, %v4400_v24  ;;  %v1832_v21 = vmul.f32 0.2, %v4580_v19 }
 0x15a   : > { %6098 = vst [vmem:[#allocation52_spill] sm:$0xff] %v4547_v53  ;;  %v4588_v59 = vpop.eup %2999  ;;  %3017 = vpow2.f32 %v915_v11  ;;  %v1860_v53 = vmax.f32 %v4478_v4, %v4515_v36  ;;  %v4611_v11 = vadd.f32 %v4285_v8, %v4432_v31  ;;  %v6113_v24 = vsub.f32 %v6091_v58, %v4389_v15 }
 0x15b   : > { %6108 = vst [vmem:[#allocation49_spill] sm:$0xff] %v4588_v59  ;;  %v4606_v3 = vpop.eup %3001  ;;  %3019 = vpow2.f32 %v917_v40  ;;  %v929_v36 = vmul.f32 1.442695, %v882_v57  ;;  %v6114_v52 = vsub.f32 %v6093_v51, %v4389_v15  ;;  %v6115_v31 = vsub.f32 %v6094_v22, %v4389_v15 }
 0x15c   : > { %v4613_v30 = vpop.eup %3003  ;;  %v927_v4 = vmul.f32 1.442695, %v6113_v24  ;;  %3021 = vpow2.f32 %v919_v39  ;;  %v6116_v58 = vsub.f32 %v6095_v56, %v4389_v15  ;;  %v4639_v24 = vadd.f32 %v1860_v53, %v6056_v29  ;;  %v6178_v29 = vld [vmem:[#allocation93_spill] sm:$0xff] }
 0x15d   : > { %2986 = vset.pattern.permute.xlu1 %v5959_v33  ;;  %v4570_v46 = vpop.permute.xlu1 %2180  ;;  %v4582_v33 = vpop.permute.xlu0 %2185  ;;  %v933_v42 = vmul.f32 1.442695, %v6115_v31  ;;  %3023 = vpow2.f32 %v921_v14  ;;  %v1810_v51 = vmul.f32 0.2, %v4601_v34  ;;  %v1401_v56 = vrot.slane %v1400_v9, 1 }
 0x15e   : > { %2295 = vperm.xlu1 %2986, %v2144_v25   ;;  %6105 = vst [vmem:[#allocation45_spill] sm:$0xff] %v4582_v33  ;;  %v6110_v25 = vld [vmem:[#allocation19_spill] sm:$0xff]  ;;  %v4622_v40 = vpop.eup %3005  ;;  %v935_v5 = vmul.f32 1.442695, %v6116_v58  ;;  %3025 = vpow2.f32 %v923_v47  ;;  %6117 = vst [vmem:[#allocation57_spill] sm:$0xff] %v4639_v24  ;;  %v1864_v14 = vmax.f32 %v4580_v19, %v1832_v21  ;;  %v6119_v47 = vsub.f32 %v6096_v28, %v4389_v15 }
 0x15f   : > { %v4595_v60 = vadd.f32 %v1841_v6, %v6110_v25  ;;  %v931_v6 = vmul.f32 1.442695, %v6114_v52  ;;  %v4635_v39 = vpop.eup %3007  ;;  %3027 = vpow2.f32 %v925_v37  ;;  %v1812_v31 = vmul.f32 0.2, %v4611_v11 }
 0x160   : > { %v4644_v22 = vpop.eup %3009  ;;  %v6120_v53 = vsub.f32 %v6099_v45, %v4389_v15  ;;  %3029 = vpow2.f32 %v927_v4  ;;  %v6121_v19 = vsub.f32 %v6074_v18, %v4389_v15  ;;  %v6122_v21 = vsub.f32 %v6100_v44, %v4389_v15 }
 0x161   : > { %6111 = vst [vmem:[#allocation51_spill] sm:$0xff] %v4595_v60  ;;  %v4633_v57 = vpop.permute.xlu0 %2190  ;;  %v4648_v58 = vpop.eup %3011  ;;  %v6123_v28 = vsub.f32 %v6101_v61, %v4389_v15  ;;  %3031 = vpow2.f32 %v929_v36  ;;  %v6124_v4 = vsub.f32 %v4222_v26, %v4389_v15  ;;  %v1842_v18 = vmax.f32 %v4601_v34, %v1810_v51 }
 0x162   : > { %2300 = vperm.xlu1 %2986, %v4499_v49   ;;  %v4604_v38 = vpop.permute.xlu1 %1653  ;;  %v4620_v49 = vadd.f32 %v4285_v8, %v4434_v17  ;;  %v1920_v17 = vmax.f32 %v1916_v0, %v4595_v60  ;;  %v937_v0 = vmul.f32 1.442695, %v6119_v47  ;;  %v939_v41 = vmul.f32 1.442695, %v6120_v53  ;;  %v4657_v43 = vpop.eup %3013 }
 0x163   : > { %6112 = vst [vmem:[#allocation50_spill] sm:$0xff] %v4604_v38  ;;  %v941_v37 = vmul.f32 1.442695, %v6121_v19  ;;  %v943_v60 = vmul.f32 1.442695, %v6122_v21  ;;  %v4668_v45 = vpop.eup %3015  ;;  %3033 = vpow2.f32 %v931_v6  ;;  %v4681_v61 = vmax.f32 %v1400_v9, %v1401_v56 }
 0x164   : > { %v1836_v63 = vmul.f32 0.2, %v4620_v49  ;;  %v945_v47 = vmul.f32 1.442695, %v6123_v28  ;;  %v947_v53 = vmul.f32 1.442695, %v6124_v4  ;;  %v4674_v55 = vmax.f32 %v1920_v17, %v4639_v24  ;;  %v4679_v44 = vpop.eup %3017 }
 0x165   : > { %3035 = vpow2.f32 %v933_v42  ;;  %v4684_v36 = vadd.f32 %v1864_v14, %v6062_v54  ;;  %v1844_v21 = vmax.f32 %v4611_v11, %v1812_v31  ;;  %v4687_v26 = vpop.permute.xlu0 %2205  ;;  %v6128_v6 = vsub.f32 %v6102_v50, %v4389_v15  ;;  %v4697_v9 = vpop.eup %3019  ;;  %v6135_v31 = vld [vmem:[#allocation21_spill] sm:$0xff]  ;;  %v6153_v54 = vld [vmem:[#allocation75_spill] sm:$0xff] }
 0x166   : > { %v4642_v52 = vpop.permute.xlu1 %1663  ;;  %6127 = vst [vmem:[#allocation59_spill] sm:$0xff] %v4687_v26  ;;  %3037 = vpow2.f32 %v935_v5  ;;  %v1868_v34 = vmax.f32 %v4620_v49, %v1836_v63  ;;  %v4695_v42 = vadd.f32 %v4285_v8, %v4455_v23  ;;  %v6129_v51 = vsub.f32 %v4240_v35, %v4389_v15  ;;  %v4708_v63 = vpop.eup %3021  ;;  %v6161_v26 = vld [vmem:[#allocation13_spill] sm:$0xff] }
 0x167   : > { %6118 = vst [vmem:[#allocation55_spill] sm:$0xff] %v4642_v52  ;;  %6126 = vst [vmem:[#allocation53_spill] sm:$0xff] %v4684_v36  ;;  %v949_v17 = vmul.f32 1.442695, %v6128_v6  ;;  %v6130_v56 = vsub.f32 %v4251_v7, %v4389_v15  ;;  %v6131_v50 = vsub.f32 %v6104_v1, %v4389_v15  ;;  %3039 = vpow2.f32 %v937_v0  ;;  %v4720_v7 = vld [vmem:[%s3708_s11 + $0x3] ss:$0 sm:$0xff]  ;;  %v4722_v4 = vpop.eup %3023 }
 0x168   : > { %v951_v11 = vmul.f32 1.442695, %v6129_v51  ;;  %6132 = vst [vmem:[#allocation58_spill] sm:$0xff] %v4708_v63  ;;  %v6133_v8 = vsub.f32 %v6106_v27, %v4389_v15  ;;  %v6134_v49 = vsub.f32 %v6107_v12, %v4389_v15  ;;  %3041 = vpow2.f32 %v939_v41  ;;  %6137 = vst [vmem:[#allocation65_spill] sm:$0xff] %v4722_v4  ;;  %v6138_v0 = vld [vmem:[#allocation23_spill] sm:$0xff]  ;;  %v4733_v41 = vpop.eup %3025  ;;  %v6145_v51 = vld [vmem:[#allocation76_spill] sm:$0xff] }
 0x169   : > { %v953_v14 = vmul.f32 1.442695, %v6130_v56  ;;  %v955_v5 = vmul.f32 1.442695, %v6131_v50  ;;  %v4717_v28 = vadd.f32 %v1842_v18, %v6135_v31  ;;  %3043 = vpow2.f32 %v941_v37  ;;  %6141 = vst [vmem:[#allocation7_spill] sm:$0xff] %v4733_v41  ;;  %v6164_v52 = vld [vmem:[#allocation11_spill] sm:$0xff] }
 0x16a   : > { %v4677_v19 = vpop.permute.xlu1 %1668  ;;  %v957_v23 = vmul.f32 1.442695, %v6133_v8  ;;  %v959_v35 = vmul.f32 1.442695, %v6134_v49  ;;  %v1433_v1 = vsub.f32 %v4420_v10, %v4681_v61  ;;  %v1928_v27 = vmax.f32 %v4674_v55, %v4684_v36  ;;  %v4743_v10 = vpop.eup %3027  ;;  %v6144_v55 = vld [vmem:[#allocation74_spill] sm:$0xff] }
 0x16b   : > { %6125 = vst [vmem:[#allocation54_spill] sm:$0xff] %v4677_v19  ;;  %6136 = vst [vmem:[#allocation56_spill] sm:$0xff] %v4717_v28  ;;  %v4729_v6 = vadd.f32 %v1844_v21, %v6138_v0  ;;  %3045 = vpow2.f32 %v943_v60  ;;  %v4736_v12 = vadd.f32 %v1868_v34, %v6070_v48  ;;  %v1814_v18 = vmul.f32 0.2, %v4695_v42  ;;  %v4753_v34 = vpop.permute.xlu0 %2210  ;;  %v4755_v50 = vpop.eup %3029  ;;  %v6158_v48 = vld [vmem:[#allocation81_spill] sm:$0xff]  ;;  %v6159_v19 = vld [vmem:[#allocation86_spill] sm:$0xff] }
 0x16c   : > { %v4741_v37 = vadd.f32 %v4720_v7, %v4460_v2  ;;  %6143 = vst [vmem:[#allocation10_spill] sm:$0xff] %v4743_v10  ;;  %3047 = vpow2.f32 %v945_v47  ;;  %v1403_v21 = vsub.f32 %v6144_v55, %v4681_v61  ;;  %v1404_v56 = vsub.f32 %v6145_v51, %v4681_v61  ;;  %6146 = vst [vmem:[#allocation66_spill] sm:$0xff] %v4753_v34  ;;  %v6148_v2 = vld [vmem:[#allocation78_spill] sm:$0xff]  ;;  %v6149_v47 = vld [vmem:[#allocation80_spill] sm:$0xff]  ;;  %v4763_v24 = vpop.eup %3031 }
 0x16d   : > { %6139 = vst [vmem:[#allocation62_spill] sm:$0xff] %v4729_v6  ;;  %6142 = vst [vmem:[#allocation63_spill] sm:$0xff] %v4736_v12  ;;  %v4751_v60 = vadd.f32 %v4720_v7, %v4483_v16  ;;  %3049 = vpow2.f32 %v947_v53  ;;  %v1405_v8 = vsub.f32 %v6148_v2, %v4681_v61  ;;  %v1406_v49 = vsub.f32 %v6149_v47, %v4681_v61  ;;  %v6150_v55 = vld [vmem:[#allocation73_spill] sm:$0xff]  ;;  %v6152_v16 = vld [vmem:[#allocation79_spill] sm:$0xff]  ;;  %v4771_v31 = vpop.eup %3033 }
 0x16e   : > { %6147 = vst [vmem:[#allocation69_spill] sm:$0xff] %v4755_v50  ;;  %v1407_v36 = vsub.f32 %v6150_v55, %v4681_v61  ;;  %6151 = vst [vmem:[#allocation12_spill] sm:$0xff] %v4763_v24  ;;  %3051 = vpow2.f32 %v949_v17  ;;  %v1495_v51 = vmul.f32 1.442695, %v1433_v1  ;;  %v6155_v2 = vld [vmem:[#allocation82_spill] sm:$0xff]  ;;  %v6156_v55 = vld [vmem:[#allocation77_spill] sm:$0xff]  ;;  %v1419_v41 = vsub.f32 %v6164_v52, %v4681_v61 }
 0x16f   : > { %v4731_v15 = vpop.permute.xlu1 %2195  ;;  %3053 = vpow2.f32 %v951_v11  ;;  %v6157_v17 = vld [vmem:[#allocation84_spill] sm:$0xff]  ;;  %v4779_v33 = vpop.eup %3035  ;;  %v6160_v11 = vld [vmem:[#allocation83_spill] sm:$0xff]  ;;  %v6162_v1 = vld [vmem:[#allocation85_spill] sm:$0xff]  ;;  %v1435_v59 = vmul.f32 1.442695, %v1403_v21  ;;  %v1907_v21 = vmax.f32 %v4729_v6, %v1928_v27  ;;  %v1846_v50 = vmax.f32 %v4695_v42, %v1814_v18 }
 0x170   : > { %6140 = vst [vmem:[#allocation61_spill] sm:$0xff] %v4731_v15  ;;  %3055 = vpow2.f32 %v953_v14  ;;  %v4787_v24 = vpop.eup %3037  ;;  %v1437_v38 = vmul.f32 1.442695, %v1404_v56  ;;  %v6166_v47 = vld [vmem:[#allocation15_spill] sm:$0xff]  ;;  %v6168_v52 = vld [vmem:[#allocation88_spill] sm:$0xff]  ;;  %v6169_v10 = vld [vmem:[#allocation89_spill] sm:$0xff]  ;;  %v4822_v42 = vadd.f32 %v4720_v7, %v4544_v20  ;;  %v4837_v20 = vadd.f32 %v4720_v7, %v4524_v13 }
 0x171   : > { %3057 = vpow2.f32 %v955_v5  ;;  %v4793_v14 = vpop.eup %3039  ;;  %v1420_v4 = vsub.f32 %v6166_v47, %v4681_v61  ;;  %v1421_v56 = vsub.f32 %v6168_v52, %v4681_v61  ;;  %v1439_v15 = vmul.f32 1.442695, %v1405_v8  ;;  %v6170_v47 = vld [vmem:[#allocation24_spill] sm:$0xff] }
 0x172   : > { %3059 = vpow2.f32 %v957_v23  ;;  %v4801_v5 = vpop.eup %3041  ;;  %v1441_v34 = vmul.f32 1.442695, %v1406_v49  ;;  %v4818_v27 = vadd.f32 %v1846_v50, %v6170_v47  ;;  %v1443_v8 = vmul.f32 1.442695, %v1407_v36 }
 0x173   : > { %v4769_v53 = vpop.permute.xlu1 %2200  ;;  %3061 = vpow2.f32 %v959_v35  ;;  %v4809_v63 = vpop.eup %3043  ;;  %v1909_v50 = vmax.f32 %v4736_v12, %v1907_v21 }
 0x174   : > { %6154 = vst [vmem:[#allocation9_spill] sm:$0xff] %v4769_v53  ;;  %v4799_v53 = vpop.permute.xlu0 %2225  ;;  %3063 = vpow2.f32 %v1495_v51  ;;  %6171 = vst [vmem:[#allocation23_spill] sm:$0xff] %v4818_v27  ;;  %v1423_v51 = vsub.f32 %v4318_v62, %v4681_v61  ;;  %v1906_v49 = vmax.f32 %v4717_v28, %v4818_v27  ;;  %v1471_v27 = vmul.f32 1.442695, %v1421_v56 }
 0x175   : > { %6165 = vst [vmem:[#allocation87_spill] sm:$0xff] %v4799_v53  ;;  %v1422_v53 = vsub.f32 %v6169_v10, %v4681_v61  ;;  %v4815_v35 = vpop.eup %3045  ;;  %3065 = vpow2.f32 %v1435_v59  ;;  %v1424_v10 = vsub.f32 %v4359_v32, %v4681_v61  ;;  %v1467_v59 = vmul.f32 1.442695, %v1419_v41  ;;  %v6173_v32 = vld [vmem:[#allocation41_spill] sm:$0xff] }
 0x176   : > { %v4824_v18 = vpop.eup %3047  ;;  %3067 = vpow2.f32 %v1437_v38  ;;  %v1425_v36 = vsub.f32 %v6173_v32, %v4681_v61  ;;  %v6174_v38 = vld [vmem:[#allocation18_spill] sm:$0xff]  ;;  %v1469_v41 = vmul.f32 1.442695, %v1420_v4  ;;  %v4851_v13 = vmax.f32 %v1906_v49, %v1909_v50 }
 0x177   : > { %v4830_v52 = vpop.eup %3049  ;;  %v1426_v47 = vsub.f32 %v6174_v38, %v4681_v61  ;;  %3069 = vpow2.f32 %v1439_v15  ;;  %v2349_v28 = vmul.f32 0.2, %v4822_v42  ;;  %v1428_v38 = vsub.f32 %v6178_v29, %v4681_v61 }
 0x178   : > { %v4807_v23 = vpop.permute.xlu1 %1673  ;;  %v4841_v62 = vpop.eup %3051  ;;  %3071 = vpow2.f32 %v1441_v34  ;;  %6176 = vst [vmem:[#allocation78_spill] sm:$0xff] %v4851_v13  ;;  %v1473_v4 = vmul.f32 1.442695, %v1422_v53  ;;  %v2345_v56 = vmul.f32 0.2, %v4751_v60  ;;  %v971_v50 = vpack.c.bf16 %v4779_v33, %v4771_v31 }
 0x179   : > { %6167 = vst [vmem:[#allocation19_spill] sm:$0xff] %v4807_v23  ;;  %v4847_v21 = vpop.permute.xlu0 %2230  ;;  %v4849_v12 = vpop.eup %3053  ;;  %v6177_v23 = vld [vmem:[#allocation48_spill] sm:$0xff]  ;;  %3073 = vpow2.f32 %v1443_v8  ;;  %v2346_v34 = vmul.f32 0.2, %v4837_v20  ;;  %v963_v29 = vpack.c.bf16 %v4613_v30, %v4606_v3  ;;  %v2381_v8 = vmax.f32 %v4822_v42, %v2349_v28 }
 0x17a   : > { %6175 = vst [vmem:[#allocation76_spill] sm:$0xff] %v4847_v21  ;;  %v1427_v32 = vsub.f32 %v6177_v23, %v4681_v61  ;;  %3075 = vpow2.f32 %v1467_v59  ;;  %v1475_v23 = vmul.f32 1.442695, %v1423_v51  ;;  %v1477_v21 = vmul.f32 1.442695, %v1424_v10  ;;  %2829 = vmatprep.subr.bf16.mxu0 %v971_v50  ;;  %v6179_v51 = vld [vmem:[#allocation94_spill] sm:$0xff] }
 0x17b   : > { %3077 = vpow2.f32 %v1469_v41  ;;  %v972_v59 = vpack.c.bf16 %v4793_v14, %v4787_v24  ;;  %v2318_v33 = vadd.f32 %v4720_v7, %v4570_v46  ;;  %v1429_v10 = vsub.f32 %v6179_v51, %v4681_v61  ;;  %2830 = vmatpush3.bf16.msra.mxu0 %v963_v29 }
 0x17c   : > { %v4839_v6 = vpop.permute.xlu1 %1683  ;;  %3079 = vpow2.f32 %v1471_v27  ;;  %v6180_v3 = vsub.f32 %v6152_v16, %v4681_v61  ;;  %v6181_v27 = vsub.f32 %v6153_v54, %v4681_v61  ;;  %v2377_v46 = vmax.f32 %v4751_v60, %v2345_v56  ;;  %v6182_v54 = vld [vmem:[#allocation92_spill] sm:$0xff] }
 0x17d   : > { %6172 = vst [vmem:[#allocation74_spill] sm:$0xff] %v4839_v6  ;;  %v4854_v6 = vpop.eup %3055  ;;  %3081 = vpow2.f32 %v1473_v4  ;;  %v4889_v42 = vpop.permute.xlu0 %2245  ;;  %v2378_v14 = vmax.f32 %v4837_v20, %v2346_v34  ;;  %2831 = vmatprep.subr.bf16.mxu0 %v972_v59  ;;  %v2350_v41 = vmul.f32 0.2, %v2318_v33  ;;  %v973_v16 = vpack.c.bf16 %v4809_v63, %v4801_v5  ;;  %v6184_v63 = vld [vmem:[#allocation98_spill] sm:$0xff]  ;;  %v6188_v59 = vld [vmem:[#allocation25_spill] sm:$0xff] }
 0x17e   : > { %v4860_v15 = vpop.eup %3057  ;;  %v1445_v30 = vmul.f32 1.442695, %v6180_v3  ;;  %v1447_v28 = vmul.f32 1.442695, %v6181_v27  ;;  %v1430_v51 = vsub.f32 %v6182_v54, %v4681_v61  ;;  %v1479_v4 = vmul.f32 1.442695, %v1425_v36 }
 0x17f   : > { %v4868_v13 = vpop.eup %3059  ;;  %3083 = vpow2.f32 %v1475_v23  ;;  %v964_v29 = vpack.c.bf16 %v4635_v39, %v4622_v40  ;;  %v1481_v60 = vmul.f32 1.442695, %v1426_v47  ;;  %v4906_v20 = vadd.f32 %v2381_v8, %v6138_v0  ;;  %v6187_v0 = vld [vmem:[#allocation22_spill] sm:$0xff] }
 0x180   : > { %v4866_v49 = vpop.permute.xlu1 %1688  ;;  %v4872_v53 = vpop.eup %3061  ;;  %3085 = vpow2.f32 %v1477_v21  ;;  %v2382_v56 = vmax.f32 %v2318_v33, %v2350_v41  ;;  %v1431_v5 = vsub.f32 %v6184_v63, %v4681_v61  ;;  %v6185_v36 = vsub.f32 %v6155_v2, %v4681_v61 }
 0x181   : > { %v4879_v31 = vpop.eup %3063  ;;  %6183 = vst [vmem:[#allocation80_spill] sm:$0xff] %v4906_v20  ;;  %v6186_v40 = vsub.f32 %v6156_v55, %v4681_v61  ;;  %3087 = vpow2.f32 %v1445_v30  ;;  %2832 = vmatpush3.bf16.msra.mxu0 %v964_v29  ;;  %v4921_v21 = vadd.f32 %v2377_v46, %v6187_v0  ;;  %v4924_v8 = vadd.f32 %v2378_v14, %v6110_v25  ;;  %v4933_v41 = vpop.permute.xlu0 %2250  ;;  %v6193_v0 = vld [vmem:[#allocation52_spill] sm:$0xff] }
 0x182   : > { %v4891_v24 = vpop.eup %3065  ;;  %v1449_v23 = vmul.f32 1.442695, %v6185_v36  ;;  %3089 = vpow2.f32 %v1447_v28  ;;  %v4927_v33 = vadd.f32 %v2382_v56, %v6188_v59  ;;  %2833 = vmatprep.subr.bf16.mxu0 %v973_v16  ;;  %v1483_v27 = vmul.f32 1.442695, %v1427_v32  ;;  %v6189_v16 = vld [vmem:[#allocation96_spill] sm:$0xff] }
 0x183   : > { %v4897_v50 = vpop.eup %3067  ;;  %v1451_v39 = vmul.f32 1.442695, %v6186_v40  ;;  %v1485_v55 = vmul.f32 1.442695, %v1428_v38  ;;  %3091 = vpow2.f32 %v1479_v4  ;;  %v965_v30 = vpack.c.bf16 %v4648_v58, %v4644_v22  ;;  %v6190_v22 = vld [vmem:[#allocation60_spill] sm:$0xff] }
 0x184   : > { %v4908_v34 = vpop.eup %3069  ;;  %3093 = vpow2.f32 %v1481_v60  ;;  %v2441_v25 = vmax.f32 %v4921_v21, %v4906_v20  ;;  %v2442_v14 = vmax.f32 %v4924_v8, %v4927_v33  ;;  %v974_v32 = vpack.c.bf16 %v4824_v18, %v4815_v35 }
 0x185   : > { %v4903_v3 = vpop.permute.xlu1 %2215  ;;  %v4918_v47 = vpop.eup %3071  ;;  %v1432_v54 = vsub.f32 %v6189_v16, %v4681_v61  ;;  %v1434_v58 = vsub.f32 %v6190_v22, %v4681_v61  ;;  %v6191_v4 = vsub.f32 %v6157_v17, %v4681_v61  ;;  %3095 = vpow2.f32 %v1449_v23  ;;  %2834 = vmatpush3.bf16.msra.mxu0 %v965_v30 }
 0x186   : > { %v4929_v2 = vpop.eup %3073  ;;  %v6192_v56 = vsub.f32 %v6158_v48, %v4681_v61  ;;  %3097 = vpow2.f32 %v1451_v39  ;;  %v4953_v35 = vmax.f32 %v2441_v25, %v2442_v14  ;;  %2835 = vmatprep.subr.bf16.mxu0 %v974_v32  ;;  %v1499_v18 = vpack.c.bf16 %v4897_v50, %v4891_v24 }
 0x187   : > { %v3076_v46 = vpop.eup %3075  ;;  %v1453_v29 = vmul.f32 1.442695, %v6191_v4  ;;  %v1487_v40 = vmul.f32 1.442695, %v1429_v10  ;;  %3099 = vpow2.f32 %v1483_v27  ;;  %v4959_v17 = vadd.f32 %v4720_v7, %v6193_v0 }
 0x188   : > { %v3078_v38 = vpop.eup %3077  ;;  %v1455_v63 = vmul.f32 1.442695, %v6192_v56  ;;  %v6194_v59 = vsub.f32 %v6159_v19, %v4681_v61  ;;  %v6195_v39 = vsub.f32 %v6160_v11, %v4681_v61  ;;  %v1489_v25 = vmul.f32 1.442695, %v1430_v51 }
 0x189   : > { %v4935_v28 = vpop.permute.xlu1 %2220  ;;  %v3080_v60 = vpop.eup %3079  ;;  %v1507_v23 = vpack.c.bf16 %v3078_v38, %v3076_v46  ;;  %3101 = vpow2.f32 %v1485_v55  ;;  %v6196_v10 = vsub.f32 %v6161_v26, %v4681_v61  ;;  %v966_v19 = vpack.c.bf16 %v4668_v45, %v4657_v43 }
 0x18a   : > { %v3082_v36 = vpop.eup %3081  ;;  %v1457_v48 = vmul.f32 1.442695, %v6194_v59  ;;  %v1459_v30 = vmul.f32 1.442695, %v6195_v39  ;;  %3103 = vpow2.f32 %v1453_v29  ;;  %v4974_v46 = vpop.permute.xlu0 %2265  ;;  %v1491_v11 = vmul.f32 1.442695, %v1431_v5 }
 0x18b   : > { %v3084_v24 = vpop.eup %3083  ;;  %v1461_v50 = vmul.f32 1.442695, %v6196_v10  ;;  %2851 = vmatprep.subr.bf16.mxu1 %v1507_v23  ;;  %v1508_v27 = vpack.c.bf16 %v3082_v36, %v3080_v60  ;;  %3105 = vpow2.f32 %v1455_v63  ;;  %v2344_v51 = vmul.f32 0.2, %v4741_v37  ;;  %2836 = vmatpush3.bf16.msra.mxu0 %v966_v19  ;;  %v6198_v29 = vld [vmem:[#allocation14_spill] sm:$0xff]  ;;  %v6205_v10 = vld [vmem:[#allocation9_spill] sm:$0xff] }
 0x18c   : > { %v3086_v32 = vpop.eup %3085  ;;  %2852 = vmatpush3.bf16.msra.mxu1 %v1499_v18  ;;  %v975_v55 = vpack.c.bf16 %v4841_v62, %v4830_v52  ;;  %3107 = vpow2.f32 %v1487_v40  ;;  %v4980_v26 = vmul.f32 0.2, %v4959_v17  ;;  %v4984_v16 = vadd.f32 %v4720_v7, %v4633_v57  ;;  %v6206_v19 = vld [vmem:[#allocation7_spill] sm:$0xff] }
 0x18d   : > { %v3088_v38 = vpop.eup %3087  ;;  %2853 = vmatprep.subr.bf16.mxu1 %v1508_v27  ;;  %v967_v43 = vpack.c.bf16 %v4697_v9, %v4679_v44  ;;  %v6197_v5 = vsub.f32 %v6162_v1, %v4681_v61  ;;  %v1493_v62 = vmul.f32 1.442695, %v1432_v54  ;;  %3109 = vpow2.f32 %v1489_v25  ;;  %v6200_v1 = vld [vmem:[#allocation66_spill] sm:$0xff]  ;;  %v6204_v25 = vld [vmem:[#allocation65_spill] sm:$0xff] }
 0x18e   : > { %v4967_v14 = vpop.permute.xlu1 %1693  ;;  %v4988_v45 = vpop.eup %3089  ;;  %2837 = vmatprep.subr.bf16.mxu0 %v975_v55  ;;  %v1500_v22 = vpack.c.bf16 %v4918_v47, %v4908_v34  ;;  %v6199_v60 = vsub.f32 %v6198_v29, %v4681_v61  ;;  %v1497_v44 = vmul.f32 1.442695, %v1434_v58  ;;  %3111 = vpow2.f32 %v1457_v48  ;;  %v6201_v47 = vld [vmem:[#allocation61_spill] sm:$0xff] }
 0x18f   : > { %v1463_v52 = vmul.f32 1.442695, %v6197_v5  ;;  %v3092_v57 = vpop.eup %3091  ;;  %v1509_v9 = vpack.c.bf16 %v3086_v32, %v3084_v24  ;;  %3113 = vpow2.f32 %v1459_v30  ;;  %v5004_v54 = vadd.f32 %v4720_v7, %v6200_v1  ;;  %2838 = vmatpush3.bf16.msra.mxu0 %v967_v43  ;;  %v2271_v0 = vpop.permute.xlu0 %2270  ;;  %v6203_v30 = vld [vmem:[#allocation58_spill] sm:$0xff]  ;;  %v6208_v5 = vld [vmem:[#allocation20_spill] sm:$0xff] }
 0x190   : > { %v5000_v56 = vmul.f32 1.442695, %v6199_v60  ;;  %v3094_v63 = vpop.eup %3093  ;;  %2854 = vmatpush3.bf16.msra.mxu1 %v1500_v22  ;;  %v976_v34 = vpack.c.bf16 %v4854_v6, %v4849_v12  ;;  %v2321_v18 = vadd.f32 %v4720_v7, %v6201_v47  ;;  %3115 = vpow2.f32 %v1491_v11  ;;  %v6202_v12 = vld [vmem:[#allocation76_spill] sm:$0xff]  ;;  %v6207_v32 = vld [vmem:[#allocation10_spill] sm:$0xff] }
 0x191   : > { %v3096_v36 = vpop.eup %3095  ;;  %v2376_v61 = vmax.f32 %v4741_v37, %v2344_v51  ;;  %v2380_v58 = vmax.f32 %v4959_v17, %v4980_v26  ;;  %v2352_v40 = vmul.f32 0.2, %v4984_v16  ;;  %2855 = vmatprep.subr.bf16.mxu1 %v1509_v9  ;;  %3117 = vpow2.f32 %v1493_v62  ;;  %v2989_v26 = vld [vmem:[%s5713_s0 + $0x4] ss:$8 sps:$4 sm:$0xff]   ;;  %v6209_v60 = vld [vmem:[#allocation26_spill] sm:$0xff] }
 0x192   : > { %v4995_v4 = vpop.permute.xlu1 %1703  ;;  %v5014_v23 = vpop.eup %3097  ;;  %2839 = vmatprep.subr.bf16.mxu0 %v976_v34  ;;  %v1501_v6 = vpack.c.bf16 %v3088_v38, %v4929_v2  ;;  %v5019_v59 = vadd.f32 %v4720_v7, %v6202_v12  ;;  %v2353_v48 = vmul.f32 0.2, %v2321_v18  ;;  %v1510_v17 = vpack.c.bf16 %v3094_v63, %v3092_v57  ;;  %v6210_v63 = vld [vmem:[#allocation27_spill] sm:$0xff]  ;;  %1023 = vmatprep.mubr.bf16.mxu0 %v2989_v26 }
 0x193   : > { %v3100_v39 = vpop.eup %3099  ;;  %v968_v24 = vpack.c.bf16 %v6204_v25, %v6203_v30  ;;  %v2322_v27 = vadd.f32 %v4720_v7, %v6205_v10  ;;  %v969_v11 = vpack.c.bf16 %v6207_v32, %v6206_v19  ;;  %3119 = vpow2.f32 %v1461_v50  ;;  %v5049_v47 = vpop.permute.xlu0 %2285  ;;  %v6215_v10 = vld [vmem:[#allocation12_spill] sm:$0xff] }
 0x194   : > { %v3102_v51 = vpop.eup %3101  ;;  %v2356_v2 = vmul.f32 0.2, %v5004_v54  ;;  %2856 = vmatpush3.bf16.msra.mxu1 %v1501_v6  ;;  %v2385_v55 = vmax.f32 %v2321_v18, %v2353_v48  ;;  %v977_v38 = vpack.c.bf16 %v4868_v13, %v4860_v15  ;;  %3121 = vpow2.f32 %v1497_v44  ;;  %v6212_v6 = vld [vmem:[#allocation29_spill] sm:$0xff] }
 0x195   : > { %v3104_v43 = vpop.eup %3103  ;;  %v5036_v62 = vadd.f32 %v2376_v61, %v6208_v5  ;;  %v2384_v22 = vmax.f32 %v4984_v16, %v2352_v40  ;;  %2857 = vmatprep.subr.bf16.mxu1 %v1510_v17  ;;  %2840 = vmatpush3.bf16.msra.mxu0 %v968_v24  ;;  %v2354_v50 = vmul.f32 0.2, %v2322_v27  ;;  %v2360_v29 = vmul.f32 0.2, %v5019_v59  ;;  %v6214_v24 = vld [vmem:[#allocation69_spill] sm:$0xff]  ;;  %v6218_v5 = vld [vmem:[#allocation38_spill] sm:$0xff] }
 0x196   : > { %v5021_v37 = vpop.permute.xlu1 %1708  ;;  %v3106_v57 = vpop.eup %3105  ;;  %v5041_v9 = vadd.f32 %v2385_v55, %v6209_v60  ;;  %2841 = vmatprep.subr.bf16.mxu0 %v977_v38  ;;  %v1502_v13 = vpack.c.bf16 %v3096_v36, %v4988_v45  ;;  %v2332_v15 = vadd.f32 %v4720_v7, %v4933_v41  ;;  %3123 = vpow2.f32 %v1463_v52  ;;  %v6211_v41 = vld [vmem:[#allocation49_spill] sm:$0xff]  ;;  %v2987_v55 = vld [vmem:[%s5713_s0] ss:$8 sps:$4 sm:$0xff]  }
 0x197   : > { %v3108_v44 = vpop.eup %3107  ;;  %v5047_v1 = vadd.f32 %v2380_v58, %v6210_v63  ;;  %v1511_v16 = vpack.c.bf16 %v3102_v51, %v3100_v39  ;;  %v2386_v34 = vmax.f32 %v2322_v27, %v2354_v50  ;;  %v2388_v40 = vmax.f32 %v5004_v54, %v2356_v2  ;;  %v6213_v39 = vld [vmem:[#allocation31_spill] sm:$0xff]  ;;  %v6220_v63 = vld [vmem:[#allocation42_spill] sm:$0xff] }
 0x198   : > { %v3110_v61 = vpop.eup %3109  ;;  %v2446_v45 = vmax.f32 %v5041_v9, %v4953_v35  ;;  %2858 = vmatpush3.bf16.msra.mxu1 %v1502_v13  ;;  %v978_v52 = vpack.c.bf16 %v6211_v41, %v4872_v53  ;;  %v2364_v36 = vmul.f32 0.2, %v2332_v15  ;;  %3125 = vpow2.f32 %v5000_v56  ;;  %v2992_v53 = vld [vmem:[%s5713_s0 + $0x14] ss:$8 sps:$4 sm:$0xff]  }
 0x199   : > { %v3112_v58 = vpop.eup %3111  ;;  %2859 = vmatprep.subr.bf16.mxu1 %v1511_v16  ;;  %v5060_v12 = vadd.f32 %v2386_v34, %v6212_v6  ;;  %2842 = vmatpush3.bf16.msra.mxu0 %v969_v11  ;;  %v5063_v17 = vadd.f32 %v2384_v22, %v6213_v39  ;;  %v2392_v54 = vmax.f32 %v5019_v59, %v2360_v29 }
 0x19a   : > { %v3114_v48 = vpop.eup %3113  ;;  %2843 = vmatprep.subr.bf16.mxu0 %v978_v52  ;;  %v1503_v35 = vpack.c.bf16 %v3104_v43, %v5014_v23  ;;  %v1512_v25 = vpack.c.bf16 %v3110_v61, %v3108_v44  ;;  %v970_v27 = vpack.c.bf16 %v6215_v10, %v6214_v24  ;;  %v2336_v19 = vadd.f32 %v4720_v7, %v2271_v0  ;;  %v6216_v23 = vld [vmem:[#allocation35_spill] sm:$0xff]  ;;  %v2291_v0 = vpop.permute.xlu0 %2290  ;;  %v6222_v52 = vld [vmem:[#allocation16_spill] sm:$0xff] }
 0x19b   : > { %v5051_v18 = vpop.permute.xlu1 %2235  ;;  %v3116_v30 = vpop.eup %3115  ;;  %v2449_v56 = vmax.f32 %v5060_v12, %v2446_v45  ;;  %v2440_v59 = vmax.f32 %v5036_v62, %v5047_v1  ;;  %v5079_v51 = vadd.f32 %v2388_v40, %v6216_v23  ;;  %v2396_v2 = vmax.f32 %v2332_v15, %v2364_v36  ;;  %1560 = vmatprep.mubr.bf16.mxu1 %v2992_v53 }
 0x19c   : > { %v3118_v11 = vpop.eup %3117  ;;  %2860 = vmatpush3.bf16.msra.mxu1 %v1503_v35  ;;  %v2368_v38 = vmul.f32 0.2, %v2336_v19  ;;  %v5086_v22 = vadd.f32 %v2392_v54, %v6218_v5  ;;  %v1504_v50 = vpack.c.bf16 %v3112_v58, %v3106_v57  ;;  %v2325_v15 = vadd.f32 %v4720_v7, %v4903_v3 }
 0x19d   : > { %6217 = vst [vmem:[#allocation73_spill] sm:$0xff] %v5079_v51  ;;  %2861 = vmatprep.subr.bf16.mxu1 %v1512_v25  ;;  %2844 = vmatpush3.bf16.msra.mxu0 %v970_v27  ;;  %v3120_v26 = vpop.eup %3119  ;;  %v2444_v43 = vmax.f32 %v2440_v59, %v5063_v17  ;;  %v1513_v60 = vpack.c.bf16 %v3118_v11, %v3116_v30  ;;  %v6225_v59 = vld [vmem:[#allocation70_spill] sm:$0xff] }
 0x19e   : > { %6219 = vst [vmem:[#allocation79_spill] sm:$0xff] %v5086_v22  ;;  %v3122_v29 = vpop.eup %3121  ;;  %v2400_v13 = vmax.f32 %v2336_v19, %v2368_v38  ;;  %v5092_v16 = vadd.f32 %v2396_v2, %v6220_v63  ;;  %v2340_v34 = vadd.f32 %v4720_v7, %v2291_v0  ;;  %v2357_v57 = vmul.f32 0.2, %v2325_v15  ;;  %v6227_v0 = vld [vmem:[#allocation34_spill] sm:$0xff] }
 0x19f   : > { %v5074_v32 = vpop.permute.xlu1 %2240  ;;  %v2448_v44 = vmax.f32 %v2444_v43, %v5079_v51  ;;  %v2326_v45 = vadd.f32 %v4720_v7, %v4935_v28  ;;  %v1505_v3 = vpack.c.bf16 %v3120_v26, %v3114_v48  ;;  %v1514_v35 = vpack.c.bf16 %v3122_v29, %v4879_v31  ;;  %v6224_v28 = vld [vmem:[#allocation30_spill] sm:$0xff] }
 0x1a0   : > { %6221 = vst [vmem:[#allocation75_spill] sm:$0xff] %v5092_v16  ;;  %2862 = vmatpush3.bf16.msra.mxu1 %v1504_v50  ;;  %1024 = vmatmul.mubr.bf16.vlgmr.msra.gmra.mrb[0].mxu0 %v2987_v55  ;;  %v3124_v40 = vpop.eup %3123  ;;  %v5101_v36 = vadd.f32 %v2400_v13, %v6222_v52  ;;  %v2372_v58 = vmul.f32 0.2, %v2340_v34  ;;  %v2389_v53 = vmax.f32 %v2325_v15, %v2357_v57  ;;  %v2990_v55 = vld [vmem:[%s5713_s0 + $0x10] ss:$8 sps:$4 sm:$0xff]  }
 0x1a1   : > { %2863 = vmatprep.subr.bf16.mxu1 %v1513_v60  ;;  %v2452_v41 = vmax.f32 %v2448_v44, %v5086_v22  ;;  %v2358_v30 = vmul.f32 0.2, %v2326_v45  ;;  %v5123_v50 = vld [vmem:[%s3708_s11 + $0x2] ss:$0 sm:$0xff]  ;;  %v6228_v29 = vld [vmem:[#allocation50_spill] sm:$0xff] }
 0x1a2   : > { %6223 = vst [vmem:[#allocation82_spill] sm:$0xff] %v5101_v36  ;;  %v3126_v54 = vpop.eup %3125  ;;  %v2404_v24 = vmax.f32 %v2340_v34, %v2372_v58  ;;  %v5108_v27 = vadd.f32 %v2389_v53, %v6224_v28  ;;  %v1783_v60 = vadd.f32 %v5123_v50, %v6228_v29  ;;  %v6230_v57 = vld [vmem:[#allocation54_spill] sm:$0xff]  ;;  %v1791_v29 = vadd.f32 %v5123_v50, %v4967_v14 }
 0x1a3   : > { %v2456_v25 = vmax.f32 %v2452_v41, %v5092_v16  ;;  %v2390_v48 = vmax.f32 %v2326_v45, %v2358_v30  ;;  %v1506_v11 = vpack.c.bf16 %v3126_v54, %v3124_v40  ;;  %v1786_v45 = vadd.f32 %v5123_v50, %v6230_v57  ;;  %v6232_v30 = vld [vmem:[#allocation74_spill] sm:$0xff] }
 0x1a4   : > { %v5095_v61 = vpop.permute.xlu1 %1713  ;;  %2864 = vmatpush3.bf16.msra.mxu1 %v1505_v3  ;;  %v5112_v2 = vadd.f32 %v2404_v24, %v6225_v59  ;;  %v2450_v31 = vmax.f32 %v5108_v27, %v2449_v56  ;;  %v6229_v56 = vld [vmem:[#allocation55_spill] sm:$0xff]  ;;  %v1815_v40 = vmul.f32 0.2, %v1783_v60 }
 0x1a5   : > { %2865 = vmatprep.subr.bf16.mxu1 %v1514_v35  ;;  %v2460_v19 = vmax.f32 %v2456_v25, %v5101_v36  ;;  %v5120_v26 = vadd.f32 %v2390_v48, %v6227_v0  ;;  %v1785_v15 = vadd.f32 %v5123_v50, %v6229_v56  ;;  %v6231_v3 = vld [vmem:[#allocation19_spill] sm:$0xff]  ;;  %v1818_v53 = vmul.f32 0.2, %v1786_v45  ;;  %v6234_v56 = vld [vmem:[#allocation45_spill] sm:$0xff] }
 0x1a6   : > { %6226 = vst [vmem:[#allocation77_spill] sm:$0xff] %v5112_v2  ;;  %v1787_v58 = vadd.f32 %v5123_v50, %v6231_v3  ;;  %v1847_v35 = vmax.f32 %v1783_v60, %v1815_v40  ;;  %v1789_v25 = vadd.f32 %v5123_v50, %v6232_v30  ;;  %v1790_v48 = vadd.f32 %v5123_v50, %v4866_v49 }
 0x1a7   : > { %v2464_v38 = vmax.f32 %v2460_v19, %v5112_v2  ;;  %v1817_v41 = vmul.f32 0.2, %v1785_v15  ;;  %v6233_v19 = vld [vmem:[#allocation46_spill] sm:$0xff]  ;;  %v2319_v40 = vadd.f32 %v4720_v7, %v6234_v56  ;;  %v1793_v3 = vadd.f32 %v5123_v50, %v4995_v4 }
 0x1a8   : > { %v5105_v10 = vpop.permute.xlu1 %1723  ;;  %2866 = vmatpush3.bf16.msra.mxu1 %v1506_v11  ;;  %v1819_v28 = vmul.f32 0.2, %v1787_v58  ;;  %v2315_v11 = vadd.f32 %v4720_v7, %v6233_v19  ;;  %v1822_v49 = vmul.f32 0.2, %v1790_v48  ;;  %v1823_v30 = vmul.f32 0.2, %v1791_v29 }
 0x1a9   : > { %v5127_v13 = vmax.f32 %v2464_v38, %v2450_v31  ;;  %v1849_v24 = vmax.f32 %v1785_v15, %v1817_v41  ;;  %v5148_v31 = vadd.f32 %v1847_v35, %v6213_v39  ;;  %v1821_v38 = vmul.f32 0.2, %v1789_v25  ;;  %v6235_v39 = vld [vmem:[#allocation78_spill] sm:$0xff]  ;;  %v6236_v35 = vld [vmem:[#allocation28_spill] sm:$0xff] }
 0x1aa   : > { %v1851_v57 = vmax.f32 %v1787_v58, %v1819_v28  ;;  %v2347_v41 = vmul.f32 0.2, %v2315_v11  ;;  %v2351_v44 = vmul.f32 0.2, %v2319_v40  ;;  %v1854_v56 = vmax.f32 %v1790_v48, %v1822_v49 }
 0x1ab   : > { %1561 = vmatmul.mubr.bf16.vlgmr.msra.gmra.mrb[0].mxu1 %v2990_v55  ;;  %v1850_v55 = vmax.f32 %v1786_v45, %v1818_v53  ;;  %v5155_v15 = vadd.f32 %v1849_v24, %v6212_v6  ;;  %v1911_v45 = vmax.f32 %v5148_v31, %v6235_v39  ;;  %v1853_v14 = vmax.f32 %v1789_v25, %v1821_v38  ;;  %v6237_v24 = vld [vmem:[#allocation59_spill] sm:$0xff] }
 0x1ac   : > { %v1729_v43 = vpop.permute.xlu1 %1728  ;;  %v1794_v6 = vadd.f32 %v5123_v50, %v5021_v37  ;;  %v2323_v58 = vadd.f32 %v4720_v7, %v6237_v24  ;;  %v5170_v4 = vadd.f32 %v1851_v57, %v6216_v23  ;;  %v1825_v39 = vmul.f32 0.2, %v1793_v3  ;;  %v6238_v57 = vld [vmem:[#allocation87_spill] sm:$0xff] }
 0x1ad   : > { %v5162_v53 = vadd.f32 %v1850_v55, %v6236_v35  ;;  %v1913_v28 = vmax.f32 %v5155_v15, %v1911_v45  ;;  %v1795_v55 = vadd.f32 %v5123_v50, %v5095_v61  ;;  %v2379_v25 = vmax.f32 %v2315_v11, %v2347_v41  ;;  %v6239_v61 = vld [vmem:[#allocation32_spill] sm:$0xff] }
 0x1ae   : > { %v5176_v2 = vadd.f32 %v1853_v14, %v6227_v0  ;;  %v1855_v37 = vmax.f32 %v1791_v29, %v1823_v30  ;;  %v2383_v16 = vmax.f32 %v2319_v40, %v2351_v44  ;;  %v1826_v24 = vmul.f32 0.2, %v1794_v6  ;;  %v6240_v29 = vld [vmem:[#allocation21_spill] sm:$0xff]  ;;  %v6242_v40 = vld [vmem:[#allocation24_spill] sm:$0xff] }
 0x1af   : > { %v1914_v38 = vmax.f32 %v5162_v53, %v1913_v28  ;;  %v1797_v45 = vadd.f32 %v5123_v50, %v5105_v10  ;;  %v2355_v23 = vmul.f32 0.2, %v2323_v58  ;;  %v2327_v48 = vadd.f32 %v4720_v7, %v6238_v57 }
 0x1b0   : > { %v5184_v11 = vadd.f32 %v1854_v56, %v6239_v61  ;;  %v1857_v41 = vmax.f32 %v1793_v3, %v1825_v39  ;;  %v1827_v28 = vmul.f32 0.2, %v1795_v55  ;;  %v1798_v0 = vadd.f32 %v5123_v50, %v1729_v43 }
 0x1b1   : > { %v5133_v34 = vpop.permute.xlu1 %2255  ;;  %v1915_v49 = vmax.f32 %v5170_v4, %v1914_v38  ;;  %v5188_v14 = vadd.f32 %v2379_v25, %v6240_v29  ;;  %v5192_v10 = vadd.f32 %v1855_v37, %v6218_v5  ;;  %v5195_v30 = vadd.f32 %v2383_v16, %v6242_v40 }
 0x1b2   : > { %v1858_v57 = vmax.f32 %v1794_v6, %v1826_v24  ;;  %v1829_v38 = vmul.f32 0.2, %v1797_v45  ;;  %v2387_v3 = vmax.f32 %v2323_v58, %v2355_v23  ;;  %v2359_v39 = vmul.f32 0.2, %v2327_v48  ;;  %v6245_v24 = vld [vmem:[#allocation37_spill] sm:$0xff] }
 0x1b3   : > { %6241 = vst [vmem:[#allocation84_spill] sm:$0xff] %v5188_v14  ;;  %v1917_v44 = vmax.f32 %v5176_v2, %v1915_v49  ;;  %6243 = vst [vmem:[#allocation81_spill] sm:$0xff] %v5195_v30  ;;  %v2331_v43 = vadd.f32 %v4720_v7, %v4889_v42  ;;  %v6244_v49 = vld [vmem:[#allocation39_spill] sm:$0xff]  ;;  %v1859_v5 = vmax.f32 %v1795_v55, %v1827_v28  ;;  %v1830_v37 = vmul.f32 0.2, %v1798_v0 }
 0x1b4   : > { %v5204_v29 = vadd.f32 %v1857_v41, %v6244_v49  ;;  %v1861_v40 = vmax.f32 %v1797_v45, %v1829_v38  ;;  %v2443_v42 = vmax.f32 %v5188_v14, %v5195_v30  ;;  %v5217_v41 = vadd.f32 %v2387_v3, %v6236_v35  ;;  %v6247_v3 = vld [vmem:[#allocation68_spill] sm:$0xff] }
 0x1b5   : > { %v5139_v54 = vpop.permute.xlu1 %2260  ;;  %v1918_v25 = vmax.f32 %v5184_v11, %v1917_v44  ;;  %v2391_v55 = vmax.f32 %v2327_v48, %v2359_v39  ;;  %v2363_v28 = vmul.f32 0.2, %v2331_v43  ;;  %v5224_v45 = vadd.f32 %v1859_v5, %v6220_v63 }
 0x1b6   : > { %6246 = vst [vmem:[#allocation86_spill] sm:$0xff] %v5217_v41  ;;  %v2335_v38 = vadd.f32 %v4720_v7, %v4974_v46  ;;  %v5230_v48 = vadd.f32 %v1861_v40, %v6247_v3  ;;  %v2447_v30 = vmax.f32 %v2443_v42, %v5217_v41  ;;  %v2329_v40 = vadd.f32 %v4720_v7, %v5051_v18  ;;  %v2998_v18 = vld [vmem:[%s5713_s0 + $0x34] ss:$8 sps:$4 sm:$0xff]  }
 0x1b7   : > { %v1919_v6 = vmax.f32 %v5192_v10, %v1918_v25  ;;  %v2395_v63 = vmax.f32 %v2331_v43, %v2363_v28  ;;  %2634 = vmatprep.mubr.bf16.mxu1 %v2998_v18 }
 0x1b9   : > { %v1921_v44 = vmax.f32 %v5204_v29, %v1919_v6  ;;  %v5234_v6 = vadd.f32 %v2391_v55, %v6239_v61 }
 0x1ba   : > { %v1734_v60 = vpop.permute.xlu1 %1733 }
 0x1bb   : > { %v1799_v56 = vadd.f32 %v5123_v50, %v1734_v60  ;;  %v5209_v60 = vadd.f32 %v1858_v57, %v6245_v24  ;;  %6248 = vst [vmem:[#allocation83_spill] sm:$0xff] %v5234_v6  ;;  %v2451_v28 = vmax.f32 %v2447_v30, %v5234_v6 }
 0x1bd   : > { %v1831_v58 = vmul.f32 0.2, %v1799_v56  ;;  %v1922_v35 = vmax.f32 %v5209_v60, %v1921_v44  ;;  %v2367_v44 = vmul.f32 0.2, %v2335_v38 }
 0x1be   : > { %v1744_v19 = vpop.permute.xlu1 %1743 }
 0x1bf   : > { %v1801_v16 = vadd.f32 %v5123_v50, %v1744_v19  ;;  %v2995_v19 = vld [vmem:[%s5713_s0 + $0x24] ss:$8 sps:$4 sm:$0xff]   ;;  %v1863_v39 = vmax.f32 %v1799_v56, %v1831_v58  ;;  %v2339_v56 = vadd.f32 %v4720_v7, %v5049_v47  ;;  %v2306_v58 = vpop.permute.xlu0 %2305  ;;  %v2399_v30 = vmax.f32 %v2335_v38, %v2367_v44 }
 0x1c0   : > { %2097 = vmatprep.mubr.bf16.mxu0 %v2995_v19 }
 0x1c1   : > { %v1833_v57 = vmul.f32 0.2, %v1801_v16  ;;  %v5247_v43 = vadd.f32 %v1863_v39, %v6222_v52 }
 0x1c2   : > { %v1749_v36 = vpop.permute.xlu1 %1748 }
 0x1c3   : > { %v1802_v23 = vadd.f32 %v5123_v50, %v1749_v36  ;;  %v1862_v36 = vmax.f32 %v1798_v0, %v1830_v37  ;;  %v1923_v0 = vmax.f32 %v5224_v45, %v1922_v35  ;;  %v6249_v37 = vld [vmem:[#allocation43_spill] sm:$0xff]  ;;  %v1865_v46 = vmax.f32 %v1801_v16, %v1833_v57  ;;  %v6251_v35 = vld [vmem:[#allocation17_spill] sm:$0xff] }
 0x1c4   : > { %v5251_v16 = vadd.f32 %v2395_v63, %v6245_v24  ;;  %v2361_v24 = vmul.f32 0.2, %v2329_v40  ;;  %v2343_v63 = vadd.f32 %v4720_v7, %v2306_v58  ;;  %v5275_v58 = vadd.f32 %v2399_v30, %v6249_v37 }
 0x1c5   : > { %v1834_v25 = vmul.f32 0.2, %v1802_v23  ;;  %v5238_v20 = vadd.f32 %v1862_v36, %v6249_v37  ;;  %v1925_v61 = vmax.f32 %v5230_v48, %v1923_v0  ;;  %v2330_v36 = vadd.f32 %v4720_v7, %v5074_v32 }
 0x1c6   : > { %6250 = vst [vmem:[#allocation13_spill] sm:$0xff] %v5251_v16  ;;  %v5260_v52 = vadd.f32 %v1865_v46, %v6251_v35  ;;  %v2393_v18 = vmax.f32 %v2329_v40, %v2361_v24 }
 0x1c7   : > { %v5198_v22 = vpop.permute.xlu1 %2275  ;;  %v1866_v42 = vmax.f32 %v1802_v23, %v1834_v25  ;;  %v1926_v57 = vmax.f32 %v5238_v20, %v1925_v61  ;;  %v2371_v25 = vmul.f32 0.2, %v2339_v56  ;;  %v2455_v61 = vmax.f32 %v2451_v28, %v5251_v16  ;;  %v6253_v16 = vld [vmem:[#allocation72_spill] sm:$0xff] }
 0x1c8   : > { %v2362_v41 = vmul.f32 0.2, %v2330_v36 }
 0x1c9   : > { %v1927_v32 = vmax.f32 %v5247_v43, %v1926_v57  ;;  %v2333_v57 = vadd.f32 %v4720_v7, %v5133_v34  ;;  %v6254_v34 = vld [vmem:[#allocation36_spill] sm:$0xff] }
 0x1cb   : > { %v5212_v51 = vpop.permute.xlu1 %2280 }
 0x1d0   : > { %v1754_v5 = vpop.permute.xlu1 %1753 }
 0x1d1   : > { %v1803_v19 = vadd.f32 %v5123_v50, %v1754_v5  ;;  %v6252_v5 = vld [vmem:[#allocation33_spill] sm:$0xff] }
 0x1d2   : > { %v5266_v0 = vadd.f32 %v1866_v42, %v6252_v5  ;;  %v2375_v42 = vmul.f32 0.2, %v2343_v63 }
 0x1d3   : > { %v1835_v55 = vmul.f32 0.2, %v1803_v19 }
 0x1d4   : > { %v1764_v47 = vpop.permute.xlu1 %1763  ;;  %v2407_v30 = vmax.f32 %v2343_v63, %v2375_v42  ;;  %v6256_v63 = vmax.f32 %v5120_v26, %v5127_v13 }
 0x1d5   : > { %v1867_v23 = vmax.f32 %v1803_v19, %v1835_v55  ;;  %v1805_v39 = vadd.f32 %v5123_v50, %v1764_v47  ;;  %v1931_v19 = vmax.f32 %v1927_v32, %v5260_v52  ;;  %v2403_v47 = vmax.f32 %v2339_v56, %v2371_v25 }
 0x1d6   : > { %v2459_v56 = vmax.f32 %v2455_v61, %v5275_v58  ;;  %v2365_v25 = vmul.f32 0.2, %v2333_v57 }
 0x1d7   : > { %v1837_v6 = vmul.f32 0.2, %v1805_v39  ;;  %v5271_v55 = vadd.f32 %v1867_v23, %v6225_v59  ;;  %v1929_v28 = vmax.f32 %v5266_v0, %v1931_v19  ;;  %v2394_v59 = vmax.f32 %v2330_v36, %v2362_v41 }
 0x1d8   : > { %v1769_v46 = vpop.permute.xlu1 %1768  ;;  %v5288_v40 = vadd.f32 %v2403_v47, %v6252_v5  ;;  %v2337_v41 = vadd.f32 %v4720_v7, %v5198_v22  ;;  %v2338_v5 = vadd.f32 %v4720_v7, %v5212_v51 }
 0x1d9   : > { %v1869_v38 = vmax.f32 %v1805_v39, %v1837_v6  ;;  %v1806_v44 = vadd.f32 %v5123_v50, %v1769_v46  ;;  %v2334_v6 = vadd.f32 %v4720_v7, %v5139_v54  ;;  %v1930_v50 = vmax.f32 %v5271_v55, %v1929_v28  ;;  %v6255_v54 = vld [vmem:[#allocation71_spill] sm:$0xff] }
 0x1da   : > { %v5291_v39 = vadd.f32 %v2393_v18, %v6254_v34  ;;  %v5298_v46 = vadd.f32 %v2394_v59, %v6244_v49  ;;  %v2397_v18 = vmax.f32 %v2333_v57, %v2365_v25  ;;  %v2369_v49 = vmul.f32 0.2, %v2337_v41  ;;  %v6257_v34 = vld [vmem:[#allocation40_spill] sm:$0xff] }
 0x1db   : > { %v5281_v14 = vadd.f32 %v1869_v38, %v6253_v16  ;;  %v1838_v32 = vmul.f32 0.2, %v1806_v44  ;;  %v2366_v61 = vmul.f32 0.2, %v2334_v6  ;;  %v2463_v38 = vmax.f32 %v2459_v56, %v5288_v40 }
 0x1dc   : > { %v2457_v22 = vmax.f32 %v5291_v39, %v6256_v63  ;;  %v2370_v59 = vmul.f32 0.2, %v2338_v5 }
 0x1dd   : > { %v1870_v37 = vmax.f32 %v1806_v44, %v1838_v32  ;;  %v2296_v23 = vpop.permute.xlu1 %2295  ;;  %v1932_v36 = vmax.f32 %v5281_v14, %v1930_v50  ;;  %v5308_v44 = vadd.f32 %v2407_v30, %v6255_v54  ;;  %v2398_v51 = vmax.f32 %v2334_v6, %v2366_v61  ;;  %v6258_v61 = vld [vmem:[#allocation64_spill] sm:$0xff] }
 0x1de   : > { %v2341_v28 = vadd.f32 %v4720_v7, %v2296_v23  ;;  %v2458_v32 = vmax.f32 %v5298_v46, %v2457_v22  ;;  %v2401_v30 = vmax.f32 %v2337_v41, %v2369_v49  ;;  %v2402_v7 = vmax.f32 %v2338_v5, %v2370_v59  ;;  %v6259_v5 = vld [vmem:[#allocation8_spill] sm:$0xff] }
 0x1df   : > { %v1902_v24 = vadd.f32 %v1870_v37, %v6255_v54  ;;  %v3264_v37 = vld [vmem:[%s3708_s11 + $0x3] ss:$0 sm:$0xff]  ;;  %v2467_v13 = vmax.f32 %v2463_v38, %v5308_v44  ;;  %v5318_v25 = vadd.f32 %v2398_v51, %v6247_v3  ;;  %v6260_v51 = vld [vmem:[#allocation56_spill] sm:$0xff]  ;;  %s3271_s11 = scalar_lea.vmem %s3270_s8, 1024 }
 0x1e0   : > { %v2373_v63 = vmul.f32 0.2, %v2341_v28  ;;  %v5326_v41 = vadd.f32 %v2402_v7, %v6251_v35  ;;  %v6264_v7 = vld [vmem:[#allocation90_spill] sm:$0xff]  ;;  %p3273_p4 = scmp.lt.s32.totalorder %s3271_s11, %s3265_s7 }
 0x1e1   : > { %v1933_v19 = vmax.f32 %v1902_v24, %v1932_v36  ;;  %v2301_v47 = vpop.permute.xlu1 %2300  ;;  %v5315_v36 = vadd.f32 %v2397_v18, %v6257_v34  ;;  %v2461_v57 = vmax.f32 %v2467_v13, %v2458_v32 }
 0x1e2   : > { %v2342_v56 = vadd.f32 %v3264_v37, %v2301_v47  ;;  %v2405_v38 = vmax.f32 %v2341_v28, %v2373_v63  ;;  %p3274_p5 = por %p3273_p4, %p3272_p3 }
 0x1e3   : > { %v1934_v42 = vrot.slane %v1933_v19, 4  ;;  %v2462_v6 = vmax.f32 %v5315_v36, %v2461_v57 }
 0x1e4   : > { %v2374_v22 = vmul.f32 0.2, %v2342_v56  ;;  %v5332_v32 = vadd.f32 %v2405_v38, %v6259_v5  ;;  %v6267_v38 = vld [vmem:[#allocation95_spill] sm:$0xff]  ;;  %p3275_p7 = pnand %p3274_p5, %p3268_p2 }
 0x1e5   : > { %v1935_v50 = vmax.f32 %v1933_v19, %v1934_v42  ;;  %v5322_v19 = vadd.f32 %v2401_v30, %v6258_v61  ;;  %v2465_v18 = vmax.f32 %v5318_v25, %v2462_v6  ;;  %v6268_v5 = vld [vmem:[#allocation23_spill] sm:$0xff] }
 0x1e6   : > { %v2406_v42 = vmax.f32 %v2342_v56, %v2374_v22  ;;  %v6262_v56 = vld [vmem:[#allocation44_spill] sm:$0xff]  ;;  %v6265_v22 = vld [vmem:[#allocation57_spill] sm:$0xff] }
 0x1e7   : > { %v1936_v54 = vrot.slane %v1935_v50, 2  ;;  %v2468_v3 = vmax.f32 %v5322_v19, %v2465_v18 }
 0x1e8   : > { %v5341_v35 = vadd.f32 %v2406_v42, %v6253_v16  ;;  %v6266_v16 = vld [vmem:[#allocation91_spill] sm:$0xff] }
 0x1e9   : > { %v1937_v23 = vmax.f32 %v1935_v50, %v1936_v54  ;;  %v6261_v50 = vld [vmem:[#allocation62_spill] sm:$0xff]  ;;  %v2466_v28 = vmax.f32 %v5326_v41, %v2468_v3  ;;  %v6263_v54 = vld [vmem:[#allocation51_spill] sm:$0xff] }
 0x1eb   : > { %v1938_v47 = vrot.slane %v1937_v23, 1  ;;  %v2469_v30 = vmax.f32 %v2466_v28, %v5332_v32 }
 0x1ed   : > { %v5328_v49 = vmax.f32 %v1937_v23, %v1938_v47 }
 0x1ef   : > { %v1943_v59 = vsub.f32 %v6260_v51, %v5328_v49  ;;  %v1945_v37 = vsub.f32 %v6261_v50, %v5328_v49  ;;  %v1971_v13 = vsub.f32 %v1902_v24, %v5328_v49  ;;  %v1940_v34 = vsub.f32 %v6262_v56, %v5328_v49 }
 0x1f0   : > { %v1942_v63 = vsub.f32 %v6263_v54, %v5328_v49  ;;  %v1941_v23 = vsub.f32 %v6264_v7, %v5328_v49  ;;  %v1961_v6 = vsub.f32 %v6265_v22, %v5328_v49  ;;  %v2470_v24 = vmax.f32 %v5341_v35, %v2469_v30  ;;  %v6269_v30 = vld [vmem:[#allocation97_spill] sm:$0xff] }
 0x1f1   : > { %v2034_v57 = vmul.f32 1.442695, %v1971_v13  ;;  %v1944_v61 = vsub.f32 %v6266_v16, %v5328_v49  ;;  %v1972_v47 = vmul.f32 1.442695, %v1940_v34  ;;  %v1946_v18 = vsub.f32 %v6267_v38, %v5328_v49 }
 0x1f2   : > { %v1976_v42 = vmul.f32 1.442695, %v1942_v63  ;;  %v1978_v3 = vmul.f32 1.442695, %v1943_v59  ;;  %v1947_v51 = vsub.f32 %v6268_v5, %v5328_v49  ;;  %v1974_v50 = vmul.f32 1.442695, %v1941_v23 }
 0x1f3   : > { %3127 = vpow2.f32 %v2034_v57  ;;  %v2471_v28 = vrot.slane %v2470_v24, 4  ;;  %v1948_v13 = vsub.f32 %v5148_v31, %v5328_v49  ;;  %v1980_v56 = vmul.f32 1.442695, %v1944_v61  ;;  %v6270_v61 = vld [vmem:[#allocation67_spill] sm:$0xff] }
 0x1f4   : > { %3129 = vpow2.f32 %v1972_v47  ;;  %v1949_v54 = vsub.f32 %v6269_v30, %v5328_v49  ;;  %v1982_v34 = vmul.f32 1.442695, %v1945_v37  ;;  %v1950_v63 = vsub.f32 %v5155_v15, %v5328_v49  ;;  %v6271_v5 = vld [vmem:[#allocation47_spill] sm:$0xff] }
 0x1f5   : > { %3131 = vpow2.f32 %v1976_v42  ;;  %v1984_v59 = vmul.f32 1.442695, %v1946_v18  ;;  %v1951_v57 = vsub.f32 %v5162_v53, %v5328_v49  ;;  %v1986_v7 = vmul.f32 1.442695, %v1947_v51 }
 0x1f6   : > { %3133 = vpow2.f32 %v1978_v3  ;;  %v2472_v23 = vmax.f32 %v2470_v24, %v2471_v28  ;;  %v1952_v31 = vsub.f32 %v5170_v4, %v5328_v49  ;;  %v1988_v16 = vmul.f32 1.442695, %v1948_v13 }
 0x1f7   : > { %3135 = vpow2.f32 %v1974_v50  ;;  %v1953_v37 = vsub.f32 %v6270_v61, %v5328_v49  ;;  %v1990_v47 = vmul.f32 1.442695, %v1949_v54  ;;  %v1954_v15 = vsub.f32 %v5176_v2, %v5328_v49 }
 0x1f8   : > { %3137 = vpow2.f32 %v1980_v56  ;;  %v1992_v38 = vmul.f32 1.442695, %v1950_v63  ;;  %v1955_v53 = vsub.f32 %v5184_v11, %v5328_v49  ;;  %v1994_v24 = vmul.f32 1.442695, %v1951_v57 }
 0x1f9   : > { %3139 = vpow2.f32 %v1982_v34  ;;  %v2473_v18 = vrot.slane %v2472_v23, 2  ;;  %v1956_v4 = vsub.f32 %v5192_v10, %v5328_v49  ;;  %v1996_v42 = vmul.f32 1.442695, %v1952_v31 }
 0x1fa   : > { %3141 = vpow2.f32 %v1984_v59  ;;  %v1957_v51 = vsub.f32 %v6271_v5, %v5328_v49  ;;  %v1998_v50 = vmul.f32 1.442695, %v1953_v37  ;;  %v1958_v11 = vsub.f32 %v5204_v29, %v5328_v49 }
 0x1fb   : > { %3143 = vpow2.f32 %v1986_v7  ;;  %v2474_v2 = vmax.f32 %v2472_v23, %v2473_v18  ;;  %v1959_v13 = vsub.f32 %v5209_v60, %v5328_v49  ;;  %v2000_v56 = vmul.f32 1.442695, %v1954_v15 }
 0x1fc   : > { %3145 = vpow2.f32 %v1988_v16  ;;  %v1960_v30 = vsub.f32 %v5224_v45, %v5328_v49  ;;  %v2002_v54 = vmul.f32 1.442695, %v1955_v53  ;;  %v1962_v59 = vsub.f32 %v5230_v48, %v5328_v49  ;;  %v6272_v48 = vld [vmem:[#allocation53_spill] sm:$0xff] }
 0x1fd   : > { %v5377_v3 = vpop.eup %3127  ;;  %3147 = vpow2.f32 %v1990_v47  ;;  %v2475_v34 = vrot.slane %v2474_v2, 1  ;;  %v1963_v29 = vsub.f32 %v5238_v20, %v5328_v49  ;;  %v2004_v57 = vmul.f32 1.442695, %v1956_v4 }
 0x1fe   : > { %v5381_v28 = vpop.eup %3129  ;;  %3149 = vpow2.f32 %v1992_v38  ;;  %v2006_v7 = vmul.f32 1.442695, %v1957_v51  ;;  %v1964_v16 = vsub.f32 %v5247_v43, %v5328_v49  ;;  %v1965_v61 = vsub.f32 %v6272_v48, %v5328_v49 }
 0x1ff   : > { %v5387_v10 = vpop.eup %3131  ;;  %3151 = vpow2.f32 %v1994_v24  ;;  %v5399_v23 = vmax.f32 %v2474_v2, %v2475_v34  ;;  %v2008_v20 = vmul.f32 1.442695, %v1958_v11  ;;  %v1966_v47 = vsub.f32 %v5260_v52, %v5328_v49 }
 0x200   : > { %v5391_v63 = vpop.eup %3133  ;;  %3153 = vpow2.f32 %v1996_v42  ;;  %v2010_v15 = vmul.f32 1.442695, %v1959_v13  ;;  %v2012_v24 = vmul.f32 1.442695, %v1960_v30  ;;  %v1967_v52 = vsub.f32 %v5266_v0, %v5328_v49  ;;  %v6273_v30 = vld [vmem:[#allocation63_spill] sm:$0xff] }
 0x201   : > { %v5397_v60 = vpop.eup %3135  ;;  %3155 = vpow2.f32 %v1998_v50  ;;  %v2478_v38 = vsub.f32 %v4921_v21, %v5399_v23  ;;  %v2479_v43 = vsub.f32 %v4924_v8, %v5399_v23  ;;  %v2481_v18 = vsub.f32 %v5047_v1, %v5399_v23 }
 0x202   : > { %v5403_v31 = vpop.eup %3137  ;;  %3157 = vpow2.f32 %v2000_v56  ;;  %v2014_v42 = vmul.f32 1.442695, %v1961_v6  ;;  %v2483_v21 = vsub.f32 %v4927_v33, %v5399_v23  ;;  %v2016_v51 = vmul.f32 1.442695, %v1962_v59 }
 0x203   : > { %v5409_v37 = vpop.eup %3139  ;;  %3159 = vpow2.f32 %v2002_v54  ;;  %v2485_v8 = vsub.f32 %v5063_v17, %v5399_v23  ;;  %v2486_v1 = vsub.f32 %v5041_v9, %v5399_v23  ;;  %v1968_v0 = vsub.f32 %v5271_v55, %v5328_v49 }
 0x204   : > { %v5415_v53 = vpop.eup %3141  ;;  %3161 = vpow2.f32 %v2004_v57  ;;  %v2018_v22 = vmul.f32 1.442695, %v1963_v29  ;;  %v2487_v33 = vsub.f32 %v5060_v12, %v5399_v23  ;;  %v2020_v2 = vmul.f32 1.442695, %v1964_v16  ;;  %v6280_v12 = vld [vmem:[#allocation79_spill] sm:$0xff] }
 0x205   : > { %v5421_v4 = vpop.eup %3143  ;;  %3163 = vpow2.f32 %v2006_v7  ;;  %v2490_v11 = vsub.f32 %v5108_v27, %v5399_v23  ;;  %v2491_v13 = vsub.f32 %v5120_v26, %v5399_v23  ;;  %v1969_v55 = vsub.f32 %v6273_v30, %v5328_v49 }
 0x206   : > { %v5430_v5 = vpop.eup %3145  ;;  %3165 = vpow2.f32 %v2008_v20  ;;  %v2022_v54 = vmul.f32 1.442695, %v1965_v61  ;;  %v1970_v59 = vsub.f32 %v5281_v14, %v5328_v49  ;;  %v2024_v29 = vmul.f32 1.442695, %v1966_v47  ;;  %v6274_v14 = vld [vmem:[#allocation84_spill] sm:$0xff] }
 0x207   : > { %v5436_v50 = vpop.eup %3147  ;;  %3167 = vpow2.f32 %v2010_v15  ;;  %v2026_v7 = vmul.f32 1.442695, %v1967_v52  ;;  %v2477_v16 = vsub.f32 %v5036_v62, %v5399_v23  ;;  %v2028_v20 = vmul.f32 1.442695, %v1968_v0  ;;  %v6275_v62 = vld [vmem:[#allocation80_spill] sm:$0xff] }
 0x208   : > { %v5442_v6 = vpop.eup %3149  ;;  %3169 = vpow2.f32 %v2012_v24  ;;  %v2030_v15 = vmul.f32 1.442695, %v1969_v55  ;;  %v2480_v49 = vsub.f32 %v6274_v14, %v5399_v23  ;;  %v2511_v0 = vmul.f32 1.442695, %v2478_v38 }
 0x209   : > { %v5448_v56 = vpop.eup %3151  ;;  %3171 = vpow2.f32 %v2014_v42  ;;  %v2032_v42 = vmul.f32 1.442695, %v1970_v59  ;;  %v2509_v52 = vmul.f32 1.442695, %v2477_v16  ;;  %v2513_v30 = vmul.f32 1.442695, %v2479_v43 }
 0x20a   : > { %v5452_v34 = vpop.eup %3153  ;;  %3173 = vpow2.f32 %v2016_v51  ;;  %v2517_v45 = vmul.f32 1.442695, %v2481_v18  ;;  %v2521_v38 = vmul.f32 1.442695, %v2483_v21  ;;  %v6277_v43 = vld [vmem:[#allocation86_spill] sm:$0xff]  ;;  %v6278_v18 = vld [vmem:[#allocation73_spill] sm:$0xff]  ;;  %v2036_v21 = vpack.c.bf16 %v5397_v60, %v5381_v28 }
 0x20b   : > { %v5456_v57 = vpop.eup %3155  ;;  %3175 = vpow2.f32 %v2018_v22  ;;  %v2482_v22 = vsub.f32 %v6275_v62, %v5399_v23  ;;  %v2038_v28 = vpack.c.bf16 %v5409_v37, %v5403_v31  ;;  %v2494_v31 = vsub.f32 %v5291_v39, %v5399_v23  ;;  %v6281_v39 = vld [vmem:[#allocation13_spill] sm:$0xff] }
 0x20c   : > { %v5460_v48 = vpop.eup %3157  ;;  %3177 = vpow2.f32 %v2020_v2  ;;  %v2535_v37 = vmul.f32 1.442695, %v2490_v11  ;;  %v6282_v11 = vld [vmem:[#allocation75_spill] sm:$0xff] }
 0x20d   : > { %v5462_v61 = vpop.eup %3159  ;;  %3179 = vpow2.f32 %v2022_v54  ;;  %v6276_v54 = vld [vmem:[#allocation81_spill] sm:$0xff]  ;;  %v2519_v16 = vmul.f32 1.442695, %v2482_v22 }
 0x20e   : > { %v3162_v24 = vpop.eup %3161  ;;  %3181 = vpow2.f32 %v2024_v29  ;;  %v2484_v59 = vsub.f32 %v6276_v54, %v5399_v23  ;;  %v2515_v29 = vmul.f32 1.442695, %v2480_v49  ;;  %v2489_v49 = vsub.f32 %v6278_v18, %v5399_v23 }
 0x20f   : > { %v3164_v47 = vpop.eup %3163  ;;  %3183 = vpow2.f32 %v2026_v7  ;;  %v2498_v18 = vsub.f32 %v5315_v36, %v5399_v23  ;;  %v2499_v36 = vsub.f32 %v5318_v25, %v5399_v23  ;;  %v2039_v25 = vpack.c.bf16 %v5421_v4, %v5415_v53 }
 0x210   : > { %v3166_v51 = vpop.eup %3165  ;;  %3185 = vpow2.f32 %v2028_v20  ;;  %v2523_v62 = vmul.f32 1.442695, %v2484_v59 }
 0x211   : > { %v3168_v2 = vpop.eup %3167  ;;  %3187 = vpow2.f32 %v2030_v15 }
 0x212   : > { %v5468_v55 = vpop.eup %3169  ;;  %3189 = vpow2.f32 %v2032_v42  ;;  %v2488_v42 = vsub.f32 %v6277_v43, %v5399_v23 }
 0x213   : > { %v3172_v14 = vpop.eup %3171  ;;  %3191 = vpow2.f32 %v2509_v52  ;;  %v2525_v52 = vmul.f32 1.442695, %v2485_v8 }
 0x214   : > { %v5472_v7 = vpop.eup %3173  ;;  %3193 = vpow2.f32 %v2511_v0  ;;  %v2527_v0 = vmul.f32 1.442695, %v2486_v1  ;;  %v2046_v17 = vpack.c.bf16 %v3172_v14, %v5468_v55  ;;  %v2531_v8 = vmul.f32 1.442695, %v2488_v42 }
 0x215   : > { %v5474_v20 = vpop.eup %3175  ;;  %3195 = vpow2.f32 %v2513_v30  ;;  %v2044_v30 = vpack.c.bf16 %v3164_v47, %v3162_v24  ;;  %v2045_v1 = vpack.c.bf16 %v3168_v2, %v3166_v51  ;;  %v2533_v47 = vmul.f32 1.442695, %v2489_v49 }
 0x216   : > { %v5476_v15 = vpop.eup %3177  ;;  %3197 = vpow2.f32 %v2515_v29  ;;  %v2529_v29 = vmul.f32 1.442695, %v2487_v33  ;;  %v2493_v33 = vsub.f32 %v6280_v12, %v5399_v23  ;;  %v2495_v2 = vsub.f32 %v5298_v46, %v5399_v23 }
 0x217   : > { %v5480_v54 = vpop.eup %3179  ;;  %3199 = vpow2.f32 %v2517_v45  ;;  %v6279_v45 = vld [vmem:[#allocation83_spill] sm:$0xff]  ;;  %2873 = vmatprep.subr.bf16.mxu0 %v2044_v30  ;;  %v2537_v14 = vmul.f32 1.442695, %v2491_v13  ;;  %v2497_v42 = vsub.f32 %v6282_v11, %v5399_v23  ;;  %v6283_v46 = vpack.c.bf16 %v5391_v63, %v5387_v10 }
 0x218   : > { %v5489_v22 = vpop.eup %3181  ;;  %3201 = vpow2.f32 %v2519_v16  ;;  %v2492_v9 = vsub.f32 %v6279_v45, %v5399_v23  ;;  %2874 = vmatpush3.bf16.msra.mxu0 %v2036_v21  ;;  %v2543_v49 = vmul.f32 1.442695, %v2494_v31  ;;  %v2545_v21 = vmul.f32 1.442695, %v2495_v2 }
 0x219   : > { %v5494_v59 = vpop.eup %3183  ;;  %3203 = vpow2.f32 %v2521_v38  ;;  %2875 = vmatprep.subr.bf16.mxu0 %v2045_v1  ;;  %v2496_v38 = vsub.f32 %v6281_v39, %v5399_v23  ;;  %v2047_v30 = vpack.c.bf16 %v5474_v20, %v5472_v7  ;;  %v2551_v1 = vmul.f32 1.442695, %v2498_v18 }
 0x21a   : > { %v5502_v60 = vpop.eup %3185  ;;  %3205 = vpow2.f32 %v2523_v62  ;;  %v2539_v43 = vmul.f32 1.442695, %v2492_v9  ;;  %v2541_v62 = vmul.f32 1.442695, %v2493_v33  ;;  %v2048_v12 = vpack.c.bf16 %v5480_v54, %v5476_v15 }
 0x21b   : > { %v5506_v24 = vpop.eup %3187  ;;  %3207 = vpow2.f32 %v2525_v52  ;;  %v2547_v63 = vmul.f32 1.442695, %v2496_v38  ;;  %v2553_v31 = vmul.f32 1.442695, %v2499_v36  ;;  %v2040_v54 = vpack.c.bf16 %v5436_v50, %v5430_v5 }
 0x21c   : > { %v5510_v55 = vpop.eup %3189  ;;  %3209 = vpow2.f32 %v2527_v0  ;;  %2876 = vmatpush3.bf16.msra.mxu0 %v6283_v46  ;;  %v2049_v38 = vpack.c.bf16 %v5494_v59, %v5489_v22  ;;  %v2504_v50 = vsub.f32 %v5288_v40, %v5399_v23  ;;  %v2041_v59 = vpack.c.bf16 %v5448_v56, %v5442_v6 }
 0x21d   : > { %v5517_v51 = vpop.eup %3191  ;;  %3211 = vpow2.f32 %v2529_v29  ;;  %2877 = vmatprep.subr.bf16.mxu0 %v2046_v17  ;;  %v2549_v17 = vmul.f32 1.442695, %v2497_v42  ;;  %v2050_v18 = vpack.c.bf16 %v5506_v24, %v5502_v60  ;;  %v2042_v60 = vpack.c.bf16 %v5456_v57, %v5452_v34 }
 0x21e   : > { %v5524_v16 = vpop.eup %3193  ;;  %3213 = vpow2.f32 %v2531_v8  ;;  %v2500_v8 = vsub.f32 %v5275_v58, %v5399_v23  ;;  %v6284_v58 = vld [vmem:[#allocation82_spill] sm:$0xff]  ;;  %v2563_v6 = vmul.f32 1.442695, %v2504_v50 }
 0x21f   : > { %v5528_v27 = vpop.eup %3195  ;;  %3215 = vpow2.f32 %v2533_v47  ;;  %v2573_v26 = vpack.c.bf16 %v5524_v16, %v5517_v51  ;;  %v2501_v47 = vsub.f32 %v6284_v58, %v5399_v23  ;;  %v2043_v51 = vpack.c.bf16 %v5462_v61, %v5460_v48 }
 0x220   : > { %v5537_v13 = vpop.eup %3197  ;;  %3217 = vpow2.f32 %v2535_v37  ;;  %2878 = vmatpush3.bf16.msra.mxu0 %v2038_v28  ;;  %v2502_v37 = vsub.f32 %v5322_v19, %v5399_v23  ;;  %v2555_v2 = vmul.f32 1.442695, %v2500_v8  ;;  %v2503_v19 = vsub.f32 %v5326_v41, %v5399_v23 }
 0x221   : > { %v5541_v52 = vpop.eup %3199  ;;  %3219 = vpow2.f32 %v2537_v14  ;;  %v2574_v0 = vpack.c.bf16 %v5537_v13, %v5528_v27  ;;  %2879 = vmatprep.subr.bf16.mxu0 %v2047_v30  ;;  %v2557_v11 = vmul.f32 1.442695, %v2501_v47 }
 0x222   : > { %v5545_v10 = vpop.eup %3201  ;;  %3221 = vpow2.f32 %v2539_v43  ;;  %v2561_v30 = vmul.f32 1.442695, %v2503_v19 }
 0x223   : > { %v5549_v29 = vpop.eup %3203  ;;  %3223 = vpow2.f32 %v2541_v62  ;;  %v2575_v45 = vpack.c.bf16 %v5545_v10, %v5541_v52  ;;  %v2559_v62 = vmul.f32 1.442695, %v2502_v37 }
 0x224   : > { %v5555_v9 = vpop.eup %3205  ;;  %3225 = vpow2.f32 %v2543_v49  ;;  %2880 = vmatpush3.bf16.msra.mxu0 %v2039_v25 }
 0x225   : > { %v5559_v7 = vpop.eup %3207  ;;  %3227 = vpow2.f32 %v2545_v21  ;;  %v2576_v20 = vpack.c.bf16 %v5555_v9, %v5549_v29  ;;  %2881 = vmatprep.subr.bf16.mxu0 %v2048_v12  ;;  %v6285_v21 = vld [vmem:[#allocation77_spill] sm:$0xff]  ;;  %v2508_v12 = vsub.f32 %v5308_v44, %v5399_v23 }
 0x226   : > { %v5565_v28 = vpop.eup %3209  ;;  %3229 = vpow2.f32 %v2547_v63  ;;  %v2505_v63 = vsub.f32 %v6285_v21, %v5399_v23  ;;  %v2996_v29 = vld [vmem:[%s5713_s0 + $0x30] ss:$8 sps:$4 sm:$0xff]  }
 0x227   : > { %v5569_v33 = vpop.eup %3211  ;;  %3231 = vpow2.f32 %v2549_v17  ;;  %v2577_v53 = vpack.c.bf16 %v5565_v28, %v5559_v7  ;;  %v2506_v17 = vsub.f32 %v5332_v32, %v5399_v23  ;;  %v2507_v32 = vsub.f32 %v5341_v35, %v5399_v23  ;;  %v2993_v35 = vld [vmem:[%s5713_s0 + $0x20] ss:$8 sps:$4 sm:$0xff]  }
 0x228   : > { %v5575_v4 = vpop.eup %3213  ;;  %3233 = vpow2.f32 %v2551_v1  ;;  %2882 = vmatpush3.bf16.msra.mxu0 %v2040_v54  ;;  %v2051_v1 = vpack.c.bf16 %v5377_v3, %v5510_v55  ;;  %v2565_v25 = vmul.f32 1.442695, %v2505_v63  ;;  %v2571_v44 = vmul.f32 1.442695, %v2508_v12 }
 0x229   : > { %v5579_v15 = vpop.eup %3215  ;;  %v2578_v14 = vpack.c.bf16 %v5575_v4, %v5569_v33  ;;  %3235 = vpow2.f32 %v2553_v31  ;;  %2883 = vmatprep.subr.bf16.mxu0 %v2049_v38  ;;  %v2567_v58 = vmul.f32 1.442695, %v2506_v17  ;;  %v2569_v3 = vmul.f32 1.442695, %v2507_v32 }
 0x22a   : > { %v5585_v39 = vpop.eup %3217  ;;  %3237 = vpow2.f32 %v2555_v2  ;;  %v1033_v4 = vlaneseq }
 0x22b   : > { %v5589_v43 = vpop.eup %3219  ;;  %v2579_v42 = vpack.c.bf16 %v5585_v39, %v5579_v15  ;;  %3239 = vpow2.f32 %v2557_v11 }
 0x22c   : > { %v5595_v5 = vpop.eup %3221  ;;  %2884 = vmatpush3.bf16.msra.mxu0 %v2041_v59  ;;  %3241 = vpow2.f32 %v2559_v62  ;;  %v1034_v37 = vshrl.u32 %v1033_v4, 7  ;;  %v1575_v59 = vld [vmem:[%s5650_s15 + $0x8] sm:$0xff] }
 0x22d   : > { %v3224_v22 = vpop.eup %3223  ;;  %v2580_v41 = vpack.c.bf16 %v5595_v5, %v5589_v43  ;;  %2885 = vmatprep.subr.bf16.mxu0 %v2050_v18  ;;  %3243 = vpow2.f32 %v2561_v30 }
 0x22e   : > { %v3226_v46 = vpop.eup %3225  ;;  %3245 = vpow2.f32 %v2563_v6  ;;  %v1035_v39 = vsub.s32 0, %v1034_v37  ;;  %v2112_v6 = vld [vmem:[%s5650_s15 + $0x10] sm:$0xff] }
 0x22f   : > { %v3228_v49 = vpop.eup %3227  ;;  %v2581_v40 = vpack.c.bf16 %v3226_v46, %v3224_v22  ;;  %3247 = vpow2.f32 %v2565_v25 }
 0x230   : > { %v3230_v36 = vpop.eup %3229  ;;  %2886 = vmatpush3.bf16.msra.mxu0 %v2042_v60  ;;  %3249 = vpow2.f32 %v2567_v58 }
 0x231   : > { %v3232_v56 = vpop.eup %3231  ;;  %2895 = vmatprep.subr.bf16.mxu1 %v2581_v40  ;;  %v2582_v8 = vpack.c.bf16 %v3230_v36, %v3228_v49  ;;  %2887 = vmatprep.subr.bf16.mxu0 %v2051_v1  ;;  %3251 = vpow2.f32 %v2569_v3 }
 0x232   : > { %v3234_v24 = vpop.eup %3233  ;;  %2896 = vmatpush3.bf16.msra.mxu1 %v2573_v26  ;;  %3253 = vpow2.f32 %v2571_v44 }
 0x233   : > { %2897 = vmatprep.subr.bf16.mxu1 %v2582_v8  ;;  %v3236_v34 = vpop.eup %3235  ;;  %v2583_v57 = vpack.c.bf16 %v3234_v24, %v3232_v56 }
 0x234   : > { %v3238_v16 = vpop.eup %3237  ;;  %2888 = vmatpush3.bf16.msra.mxu0 %v2043_v51 }
 0x235   : > { %v3240_v23 = vpop.eup %3239  ;;  %v2584_v55 = vpack.c.bf16 %v3238_v16, %v3236_v34 }
 0x236   : > { %2898 = vmatpush3.bf16.msra.mxu1 %v2574_v0  ;;  %v3242_v26 = vpop.eup %3241 }
 0x237   : > { %2899 = vmatprep.subr.bf16.mxu1 %v2583_v57  ;;  %2098 = vmatmul.mubr.bf16.vlgmr.msra.gmra.mrb[4].mxu0 %v2993_v35  ;;  %v3244_v48 = vpop.eup %3243  ;;  %v2585_v61 = vpack.c.bf16 %v3242_v26, %v3240_v23  ;;  %v2649_v57 = vld [vmem:[%s5650_s15 + $0x18] sm:$0xff] }
 0x238   : > { %v3246_v27 = vpop.eup %3245 }
 0x239   : > { %v3248_v13 = vpop.eup %3247  ;;  %v2586_v0 = vpack.c.bf16 %v3246_v27, %v3244_v48 }
 0x23a   : > { %2900 = vmatpush3.bf16.msra.mxu1 %v2575_v45  ;;  %v3250_v47 = vpop.eup %3249 }
 0x23b   : > { %2901 = vmatprep.subr.bf16.mxu1 %v2584_v55  ;;  %v3252_v52 = vpop.eup %3251  ;;  %v2587_v10 = vpack.c.bf16 %v3250_v47, %v3248_v13 }
 0x23c   : > { %v3254_v45 = vpop.eup %3253 }
 0x23d   : > { %v2588_v31 = vpack.c.bf16 %v3254_v45, %v3252_v52 }
 0x23e   : > { %2902 = vmatpush3.bf16.msra.mxu1 %v2576_v20 }
 0x23f   : > { %2903 = vmatprep.subr.bf16.mxu1 %v2585_v61 }
 0x242   : > { %2904 = vmatpush3.bf16.msra.mxu1 %v2577_v53 }
 0x243   : > { %2905 = vmatprep.subr.bf16.mxu1 %v2586_v0 }
 0x246   : > { %2906 = vmatpush3.bf16.msra.mxu1 %v2578_v14 }
 0x247   : > { %2907 = vmatprep.subr.bf16.mxu1 %v2587_v10 }
 0x24a   : > { %2908 = vmatpush3.bf16.msra.mxu1 %v2579_v42  ;;  %v1038_v42 = vld [vmem:[%s5650_s15] sm:$0xff] }
 0x24b   : > { %2909 = vmatprep.subr.bf16.mxu1 %v2588_v31 }
 0x24e   : > { %2910 = vmatpush3.bf16.msra.mxu1 %v2580_v41 }
 0x251   : > { %2635 = vmatmul.mubr.bf16.vlgmr.msra.gmra.mrb[4].mxu1 %v2996_v29 }
 0x273   : > { %v2845_v9 = vpop.f32.mrb[0].mxu0 }
 0x274   : > { %v2846_v7 = vpop.f32.mrb[1].mxu0 }
 0x275   : > { %v2847_v20 = vadd.f32 %v2846_v7, %v2845_v9  ;;  %v2848_v28 = vpop.f32.mrb[2].mxu0 }
 0x276   : > { %v2849_v33 = vpop.f32.mrb[3].mxu0 }
 0x277   : > { %v2850_v53 = vadd.f32 %v2849_v33, %v2848_v28 }
 0x279   : > { %3255 = vrcp.f32 %v2850_v53 }
 0x27e   : > { %v2867_v2 = vpop.f32.mrb[0].mxu1 }
 0x27f   : > { %v2868_v15 = vpop.f32.mrb[1].mxu1 }
 0x280   : > { %v2869_v54 = vadd.f32 %v2868_v15, %v2867_v2  ;;  %v2870_v14 = vpop.f32.mrb[2].mxu1 }
 0x281   : > { %v2871_v38 = vpop.f32.mrb[3].mxu1 }
 0x282   : > { %v2872_v19 = vadd.f32 %v2871_v38, %v2870_v14 }
 0x283   : > { %v3256_v43 = vpop.eup %3255 }
 0x284   : > { %v1036_v11 = vrot.slane %v3256_v43, %v1035_v39  ;;  %3257 = vrcp.f32 %v2872_v19 }
 0x286   : > { %v1037_v5 = vmul.f32 %v2847_v20, %v1036_v11 }
 0x288   : > { %v1039_v50 = vadd.f32 %v1038_v42, %v1037_v5 }
 0x28a   : > { %1040 = vst [vmem:[%s5653_s16] sm:$0xff] %v1039_v50 }
 0x28e   : > { %v3258_v62 = vpop.eup %3257 }
 0x28f   : > { %v1573_v22 = vrot.slane %v3258_v62, %v1035_v39 }
 0x291   : > { %v1574_v41 = vmul.f32 %v2869_v54, %v1573_v22 }
 0x293   : > { %v1576_v46 = vadd.f32 %v1575_v59, %v1574_v41 }
 0x295   : > { %1577 = vst [vmem:[%s5653_s16 + $0x8] sm:$0xff] %v1576_v46 }
 0x30a   : > { %v2889_v18 = vpop.f32.mrb[4].mxu0 }
 0x30b   : > { %v2890_v49 = vpop.f32.mrb[5].mxu0 }
 0x30c   : > { %v2891_v21 = vadd.f32 %v2890_v49, %v2889_v18  ;;  %v2892_v63 = vpop.f32.mrb[6].mxu0 }
 0x30d   : > { %v2893_v30 = vpop.f32.mrb[7].mxu0 }
 0x30e   : > { %v2894_v40 = vadd.f32 %v2893_v30, %v2892_v63 }
 0x310   : > { %3259 = vrcp.f32 %v2894_v40 }
 0x31a   : > { %v3260_v36 = vpop.eup %3259 }
 0x31b   : > { %v2110_v17 = vrot.slane %v3260_v36, %v1035_v39 }
 0x31d   : > { %v2111_v56 = vmul.f32 %v2891_v21, %v2110_v17 }
 0x31f   : > { %v2113_v8 = vadd.f32 %v2112_v6, %v2111_v56 }
 0x321   : > { %2114 = vst [vmem:[%s5653_s16 + $0x10] sm:$0xff] %v2113_v8 }
 0x324   : > { %v2911_v60 = vpop.f32.mrb[4].mxu1 }
 0x325   : > { %v2912_v24 = vpop.f32.mrb[5].mxu1 }
 0x326   : > { %v2913_v1 = vadd.f32 %v2912_v24, %v2911_v60  ;;  %v2914_v32 = vpop.f32.mrb[6].mxu1 }
 0x327   : > { %v2915_v25 = vpop.f32.mrb[7].mxu1 }
 0x328   : > { %v2916_v12 = vadd.f32 %v2915_v25, %v2914_v32 }
 0x32a   : > { %3261 = vrcp.f32 %v2916_v12 }
 0x334   : > { %v3262_v58 = vpop.eup %3261 }
 0x335   : > { %v2647_v34 = vrot.slane %v3262_v58, %v1035_v39 }
 0x337   : > { %v2648_v51 = vmul.f32 %v2913_v1, %v2647_v34 }
 0x339   : > { %v2650_v16 = vadd.f32 %v2649_v57, %v2648_v51 }
 0x33b   : > { %2651 = vst [vmem:[%s5653_s16 + $0x18] sm:$0xff] %v2650_v16 }
 0x33c   : > { %3278 = shalt.err (!%p3275_p7)
}
 0x33d   : > { %s3279_s9 = scalar_lea.hbm %s5666_s28, 512  ;;  %s3283_s13 = scalar_lea.hbm %s5718_s5, 1024 }
 0x33e   : > { %p3280_p10 = scmp.ne.s32.totalorder %s5666_s28, %s3279_s9  ;;  %p3284_p13 = scmp.lt.u32.totalorder %s5666_s28, %s5718_s5 }
 0x33f   : > { %p3285_p0 = scmp.lt.u32.totalorder %s3283_s13, %s3279_s9  ;;  %p3287_p2 = scmp.lt.u32.totalorder %s3279_s9, %s5666_s28 }
 0x340   : > { %p3281_p11 = pnand %p3280_p10, %p3410_p6 }
 0x341   : > { %p3286_p1 = por %p3285_p0, %p3284_p13 }
 0x342   : > { %p3282_p12 = pneg %p3281_p11 }
 0x343   : > { %p3288_p3 = por %p3287_p2, %p3286_p1 }
 0x345   : > { %p3289_p4 = pnand %p3288_p3, %p3282_p12 }
 0x347   : > { %3292 = shalt.err (!%p3289_p4)
}
 0x348   : > { %s3334_s17 = smov 128   ;;  %s3335_s25 = smov 256  }
 0x349   : > { %s3336_s26 = smov 8  }
 0x34a   : > { %2917 = dma.vmem_to_hbm [thread:$0]  (%p3410_p6), %s5668_s23, 512, %s5666_s28, %s2653_s6, %s3334_s17, %s3335_s25, %s3336_s26  }
 0x34b PF: > { %s2680_s7 = sand.u32 1, %s3315_s18   ;;  %p2920_p5 = pnand %p2765_p9, %p3414_p8 }
 0x34c   : > { %s2681_s22 = scalar_lea.sflag [#allocation5], %s2680_s7 }
 0x34d   : > { %3310 = dma.done.wait (!%p2920_p5), %s2681_s22, 512  }
 0x34e   : > { %3312 = vsyncadd (!%p2920_p5), %s2681_s22, 4294966784  ;;  %p15_p7 = scmp.ge.s32.totalorder %s3392_s24, 4   ;;  %s6286_s18 = smov %s3319_s19 }
 0x34f   : > { %s6287_s19 = smov %s3323_s20  ;;  %s6288_s20 = smov %s3404_s27 }
 0x350   : > { %s6289_s21 = smov %s3392_s24  ;;  %17 = sbr.rel (!%p15_p7) target bundleno = 3 (0x3), region = 170 }
 0x357   :  { %2686 = vsyncpa [#allocation5], 1 }
 0x358   :  { %2688 = vsyncpa [#allocation5 + $0x1], 1 }

</bundles_post_ra>
